<compile_context>
chip_gen: v6e
topology: v6e:2x2x1
jax: 0.10.0
libtpu: 0.0.40
codegen_flags: <defaults>
</compile_context>

<pallas_src>
import jax
import jax.numpy as jnp
from jax import lax
from jax.experimental import pallas as pl
from jax.experimental.pallas import tpu as pltpu

# ---------------- small synthetic config ----------------
B, S = 2, 8          # batch, seq_len
H = 32               # config.model.hidden_size
LH = 16              # config.model.lstm_hidden_size (single LSTM layer)
E = 32               # config.model.entity_feature_size
P = 32               # config.model.prototype_dim
L = 5                # config.model.num_entity_labels
N_LANG = 5           # ['en','fr','de','es','it']
EPS = 1e-5           # nn.LayerNorm default eps
N = B * S


# ===================== fused kernel (one grid step = one batch row) =====================
def fused_kernel(lang_ref, len_ref,                       # scalar prefetch (SMEM)
                 x_ref,                                   # (S, H) tokens of this row
                 aw1_ref, ab1_ref, ag_ref, abe_ref, aw2_ref, ab2_ref,   # gathered adapter
                 wi_ref, bi_ref, whf_ref, whb_ref,        # BiLSTM (input proj fused fwd|bwd)
                 wp_ref, bp_ref,                          # projection
                 pw1_ref, pb1_ref, pg_ref, pbe_ref, pw2_ref, pb2_ref,   # prototype projector
                 we_ref, bwe_ref,                         # emission head
                 ef_ref, pf_ref, em_ref):                 # outputs (S,E),(S,P),(S,L)
    b = pl.program_id(0)
    length = len_ref[b]                                   # valid prefix length of this row

    # ---- language adapter (weights already gathered for lang_ids[b] via index_map) ----
    x = x_ref[...]                                                          # (S, H)
    h = jnp.dot(x, aw1_ref[...], preferred_element_type=jnp.float32) + ab1_ref[...]
    mu = jnp.mean(h, axis=-1, keepdims=True)
    var = jnp.mean((h - mu) ** 2, axis=-1, keepdims=True)
    h = jnp.maximum((h - mu) * lax.rsqrt(var + EPS) * ag_ref[...] + abe_ref[...], 0.0)
    adapted = jnp.dot(h, aw2_ref[...], preferred_element_type=jnp.float32) + ab2_ref[...]

    # ---- BiLSTM: input projection for BOTH directions hoisted out of the time loop ----
    # wi_ref: (H, 8*LH) columns = [i,f,o,g]_fwd ++ [i,f,o,g]_bwd   (128 lanes, full vreg)
    xg = jnp.dot(adapted, wi_ref[...], preferred_element_type=jnp.float32) + bi_ref[...]
    xg_f = xg[:, :4 * LH]
    xg_b = xg[:, 4 * LH:]

    def run_dir(xg_dir, wh_ref, reverse):
        wh = wh_ref[...]                                                    # (LH, 4*LH)
        hcur = jnp.zeros((1, LH), jnp.float32)
        ccur = jnp.zeros((1, LH), jnp.float32)
        outs = [None] * S
        ts = range(S - 1, -1, -1) if reverse else range(S)
        for t in ts:                                      # S=8 static -> fully unrolled
            m = (length > t).astype(jnp.float32)          # pack_padded gating (scalar)
            gates = xg_dir[t:t + 1, :] + jnp.dot(hcur, wh,
                                                 preferred_element_type=jnp.float32)
            sig = jax.nn.sigmoid(gates[:, :3 * LH])       # i, f, o in one wide slab
            i_g = sig[:, :LH]
            f_g = sig[:, LH:2 * LH]
            o_g = sig[:, 2 * LH:3 * LH]
            g_g = jnp.tanh(gates[:, 3 * LH:])
            c_new = f_g * ccur + i_g * g_g
            h_new = o_g * jnp.tanh(c_new)
            outs[t] = m * h_new                           # pad_packed padding_value=0
            hcur = m * h_new + (1.0 - m) * hcur           # inactive steps keep state
            ccur = m * c_new + (1.0 - m) * ccur
        return jnp.concatenate(outs, axis=0)              # (S, LH)

    out_f = run_dir(xg_f, whf_ref, reverse=False)
    out_b = run_dir(xg_b, whb_ref, reverse=True)
    lstm = jnp.concatenate([out_f, out_b], axis=-1)       # (S, 2*LH)

    # ---- projection -> prototype projector (LN/ReLU) -> emission head ----
    ef = jnp.dot(lstm, wp_ref[...], preferred_element_type=jnp.float32) + bp_ref[...]
    hh = jnp.dot(ef, pw1_ref[...], preferred_element_type=jnp.float32) + pb1_ref[...]
    mu = jnp.mean(hh, axis=-1, keepdims=True)
    var = jnp.mean((hh - mu) ** 2, axis=-1, keepdims=True)
    hh = jnp.maximum((hh - mu) * lax.rsqrt(var + EPS) * pg_ref[...] + pbe_ref[...], 0.0)
    # TODO(synk): nn.Dropout skipped (eval-mode semantics, identity).
    pf = jnp.dot(hh, pw2_ref[...], preferred_element_type=jnp.float32) + pb2_ref[...]
    # TODO(synk): CRF class not provided; crf.get_emission_score modelled as Linear(P, L).
    em = jnp.dot(pf, we_ref[...], preferred_element_type=jnp.float32) + bwe_ref[...]

    ef_ref[...] = ef
    pf_ref[...] = pf
    em_ref[...] = em


# ---------------- full forward (single fused pallas_call) ----------------
def entity_branch_forward(seq_out, attn_mask, lang_ids, ap, lp, hp):
    seq_out = seq_out.astype(jnp.float32)
    lengths = attn_mask.astype(jnp.int32).sum(axis=1)     # pack_padded lengths
    lang_ids = lang_ids.astype(jnp.int32)

    aw1, ab1, ag, abe, aw2, ab2 = ap
    wif, whf, bf, wib, whb, bb = lp
    wp, bp, pw1, pb1, pg, pbe, pw2, pb2, we, bwe = hp

    # one-time param prep: reorder PyTorch gate order i,f,g,o -> i,f,o,g and fuse the
    # forward/backward input projections into a single 128-lane-wide weight slab.
    def reorder(w):
        return jnp.concatenate([w[..., :2 * LH], w[..., 3 * LH:], w[..., 2 * LH:3 * LH]],
                               axis=-1)

    wi_all = jnp.concatenate([reorder(wif), reorder(wib)], axis=-1)   # (H, 8*LH)
    bi_all = jnp.concatenate([reorder(bf), reorder(bb)], axis=-1)     # (1, 8*LH)
    whf_r = reorder(whf)                                              # (LH, 4*LH)
    whb_r = reorder(whb)

    def shared(shape):
        return pl.BlockSpec(shape, lambda b, lang, lens: (0,) * len(shape))

    def gathered(shape2d):   # adapter weights: pick block lang_ids[b]
        return pl.BlockSpec((None,) + shape2d, lambda b, lang, lens: (lang[b], 0, 0))

    def per_row(shape2d):    # activations / outputs: one batch row per grid step
        return pl.BlockSpec((None,) + shape2d, lambda b, lang, lens: (b, 0, 0))

    grid_spec = pltpu.PrefetchScalarGridSpec(
        num_scalar_prefetch=2,
        grid=(B,),
        in_specs=[
            per_row((S, H)),                                            # sequence_output
            gathered((H, H)), gathered((1, H)), gathered((1, H)), gathered((1, H)),
            gathered((H, H)), gathered((1, H)),                         # adapter
            shared((H, 8 * LH)), shared((1, 8 * LH)),                   # fused LSTM Wi, b
            shared((LH, 4 * LH)), shared((LH, 4 * LH)),                 # Wh fwd / bwd
            shared((2 * LH, E)), shared((1, E)),                        # projection
            shared((E, P)), shared((1, P)), shared((1, P)), shared((1, P)),
            shared((P, P)), shared((1, P)),                             # prototype projector
            shared((P, L)), shared((1, L)),                             # emission head
        ],
        out_specs=(per_row((S, E)), per_row((S, P)), per_row((S, L))),
    )

    ef, pf, em = pl.pallas_call(
        fused_kernel,
        out_shape=(jax.ShapeDtypeStruct((B, S, E), jnp.float32),
                   jax.ShapeDtypeStruct((B, S, P), jnp.float32),
                   jax.ShapeDtypeStruct((B, S, L), jnp.float32)),
        grid_spec=grid_spec,
        compiler_params=pltpu.CompilerParams(dimension_semantics=("parallel",)),
    )(lang_ids, lengths, seq_out,
      aw1, ab1, ag, abe, aw2, ab2,
      wi_all, bi_all, whf_r, whb_r,
      wp, bp, pw1, pb1, pg, pbe, pw2, pb2, we, bwe)

    # TODO(synk): CRF.decode (Viterbi) not implemented — CRF class unavailable.
    return {"entity_features": ef, "prototype_features": pf, "emissions": em}


# ---------------- pure-JAX reference (same math, original layout / gate order) ----------------
def reference(seq_out, attn_mask, lang_ids, ap, lp, hp):
    w1, b1, g, be, w2, b2 = ap
    x = seq_out.reshape(N, H)
    lang_tok = jnp.repeat(lang_ids, S)
    adapted = jnp.zeros((N, H), jnp.float32)
    for l in range(N_LANG):
        h = x @ w1[l] + b1[l]
        mu = h.mean(-1, keepdims=True)
        var = ((h - mu) ** 2).mean(-1, keepdims=True)
        h = jnp.maximum((h - mu) / jnp.sqrt(var + EPS) * g[l] + be[l], 0.0)
        adapted += (lang_tok == l)[:, None].astype(jnp.float32) * (h @ w2[l] + b2[l])
    adapted = adapted.reshape(B, S, H)

    wif, whf, bf, wib, whb, bb = lp

    def cell(x_t, m_t, h, c, wi, wh, b):
        gates = x_t @ wi + h @ wh + b
        i_g = jax.nn.sigmoid(gates[:, :LH])
        f_g = jax.nn.sigmoid(gates[:, LH:2 * LH])
        g_g = jnp.tanh(gates[:, 2 * LH:3 * LH])
        o_g = jax.nn.sigmoid(gates[:, 3 * LH:])
        c_n = f_g * c + i_g * g_g
        h_n = o_g * jnp.tanh(c_n)
        return m_t * h_n, m_t * h_n + (1 - m_t) * h, m_t * c_n + (1 - m_t) * c

    mf = attn_mask.astype(jnp.float32)
    h = jnp.zeros((B, LH)); c = jnp.zeros((B, LH)); fwd = []
    for t in range(S):
        ho, h, c = cell(adapted[:, t], mf[:, t][:, None], h, c, wif, whf, bf)
        fwd.append(ho)
    h = jnp.zeros((B, LH)); c = jnp.zeros((B, LH)); bwd = [None] * S
    for t in range(S - 1, -1, -1):
        ho, h, c = cell(adapted[:, t], mf[:, t][:, None], h, c, wib, whb, bb)
        bwd[t] = ho
    lstm = jnp.concatenate([jnp.stack(fwd, 1), jnp.stack(bwd, 1)], -1).reshape(N, 2 * LH)

    wp, bp, pw1, pb1, pg, pbe, pw2, pb2, we, bwe = hp
    ef = lstm @ wp + bp
    hh = ef @ pw1 + pb1
    mu = hh.mean(-1, keepdims=True)
    var = ((hh - mu) ** 2).mean(-1, keepdims=True)
    hh = jnp.maximum((hh - mu) / jnp.sqrt(var + EPS) * pg + pbe, 0.0)
    pf = hh @ pw2 + pb2
    em = pf @ we + bwe
    return ef.reshape(B, S, E), pf.reshape(B, S, P), em.reshape(B, S, L)


# ---------------- deterministic parameter init ----------------
def make_params(key):
    ks = iter(jax.random.split(key, 32))

    def w(shape, scale=0.1):
        return (scale * jax.random.normal(next(ks), shape)).astype(jnp.float32)

    # language adapters (stacked over 5 languages)
    ap = (w((N_LANG, H, H)), w((N_LANG, 1, H), 0.01),
          jnp.ones((N_LANG, 1, H), jnp.float32), jnp.zeros((N_LANG, 1, H), jnp.float32),
          w((N_LANG, H, H)), w((N_LANG, 1, H), 0.01))
    # BiLSTM (forward / backward), combined bias b_ih + b_hh, gate order i,f,g,o
    lp = (w((H, 4 * LH)), w((LH, 4 * LH)), w((1, 4 * LH), 0.01),
          w((H, 4 * LH)), w((LH, 4 * LH)), w((1, 4 * LH), 0.01))
    # projection + prototype projector + emission head
    hp = (w((2 * LH, E)), w((1, E), 0.01),
          w((E, P)), w((1, P), 0.01),
          jnp.ones((1, P), jnp.float32), jnp.zeros((1, P), jnp.float32),
          w((P, P)), w((1, P), 0.01),
          w((P, L)), w((1, L), 0.01))
    return ap, lp, hp


if __name__ == "__main__":
    key = jax.random.PRNGKey(0)
    k_in, k_par = jax.random.split(key)
    seq_out = jax.random.normal(k_in, (B, S, H), jnp.float32)
    lengths = jnp.array([S, 5], jnp.int32)
    attn_mask = (jnp.arange(S)[None, :] < lengths[:, None]).astype(jnp.int32)  # [B, S]
    lang_ids = jnp.array([1, 3], jnp.int32)                                    # fr, es

    ap, lp, hp = make_params(k_par)

    outs = entity_branch_forward(seq_out, attn_mask, lang_ids, ap, lp, hp)
    jax.block_until_ready(outs)

    ref_ef, ref_pf, ref_em = reference(seq_out, attn_mask, lang_ids, ap, lp, hp)
    assert jnp.allclose(outs["entity_features"], ref_ef, atol=2e-2, rtol=2e-2)
    assert jnp.allclose(outs["prototype_features"], ref_pf, atol=2e-2, rtol=2e-2)
    assert jnp.allclose(outs["emissions"], ref_em, atol=2e-2, rtol=2e-2)

    print("KERNEL_OK")
</pallas_src>

<mosaic_0001>
module attributes {stable_mosaic.version = 11 : i64} {
  func.func @fused_kernel(%arg0: i32, %arg1: memref<2xi32, #tpu.memory_space<smem>>, %arg2: memref<2xi32, #tpu.memory_space<smem>>, %arg3: memref<1x8x32xf32, #tpu.memory_space<vmem>>, %arg4: memref<1x32x32xf32, #tpu.memory_space<vmem>>, %arg5: memref<1x1x32xf32, #tpu.memory_space<vmem>>, %arg6: memref<1x1x32xf32, #tpu.memory_space<vmem>>, %arg7: memref<1x1x32xf32, #tpu.memory_space<vmem>>, %arg8: memref<1x32x32xf32, #tpu.memory_space<vmem>>, %arg9: memref<1x1x32xf32, #tpu.memory_space<vmem>>, %arg10: memref<32x128xf32, #tpu.memory_space<vmem>>, %arg11: memref<1x128xf32, #tpu.memory_space<vmem>>, %arg12: memref<16x64xf32, #tpu.memory_space<vmem>>, %arg13: memref<16x64xf32, #tpu.memory_space<vmem>>, %arg14: memref<32x32xf32, #tpu.memory_space<vmem>>, %arg15: memref<1x32xf32, #tpu.memory_space<vmem>>, %arg16: memref<32x32xf32, #tpu.memory_space<vmem>>, %arg17: memref<1x32xf32, #tpu.memory_space<vmem>>, %arg18: memref<1x32xf32, #tpu.memory_space<vmem>>, %arg19: memref<1x32xf32, #tpu.memory_space<vmem>>, %arg20: memref<32x32xf32, #tpu.memory_space<vmem>>, %arg21: memref<1x32xf32, #tpu.memory_space<vmem>>, %arg22: memref<32x5xf32, #tpu.memory_space<vmem>>, %arg23: memref<1x5xf32, #tpu.memory_space<vmem>>, %arg24: memref<1x8x32xf32, #tpu.memory_space<vmem>>, %arg25: memref<1x8x32xf32, #tpu.memory_space<vmem>>, %arg26: memref<1x8x5xf32, #tpu.memory_space<vmem>>) attributes {dimension_semantics = [#tpu.dimension_semantics<parallel>], iteration_bounds = array<i64: 2>, scalar_prefetch = 2 : i64, scratch_operands = 0 : i64, tpu.core_type = #tpu.core_type<tc>, window_params = [{transform_indices = @transform_0, window_bounds = array<i64: 1, 8, 32>}, {transform_indices = @transform_1, window_bounds = array<i64: 1, 32, 32>}, {transform_indices = @transform_2, window_bounds = array<i64: 1, 1, 32>}, {transform_indices = @transform_3, window_bounds = array<i64: 1, 1, 32>}, {transform_indices = @transform_4, window_bounds = array<i64: 1, 1, 32>}, {transform_indices = @transform_5, window_bounds = array<i64: 1, 32, 32>}, {transform_indices = @transform_6, window_bounds = array<i64: 1, 1, 32>}, {pipeline_mode = #tpu.pipeline_mode<synchronous>, transform_indices = @transform_7, window_bounds = array<i64: 32, 128>}, {pipeline_mode = #tpu.pipeline_mode<synchronous>, transform_indices = @transform_8, window_bounds = array<i64: 1, 128>}, {pipeline_mode = #tpu.pipeline_mode<synchronous>, transform_indices = @transform_9, window_bounds = array<i64: 16, 64>}, {pipeline_mode = #tpu.pipeline_mode<synchronous>, transform_indices = @transform_10, window_bounds = array<i64: 16, 64>}, {pipeline_mode = #tpu.pipeline_mode<synchronous>, transform_indices = @transform_11, window_bounds = array<i64: 32, 32>}, {pipeline_mode = #tpu.pipeline_mode<synchronous>, transform_indices = @transform_12, window_bounds = array<i64: 1, 32>}, {pipeline_mode = #tpu.pipeline_mode<synchronous>, transform_indices = @transform_13, window_bounds = array<i64: 32, 32>}, {pipeline_mode = #tpu.pipeline_mode<synchronous>, transform_indices = @transform_14, window_bounds = array<i64: 1, 32>}, {pipeline_mode = #tpu.pipeline_mode<synchronous>, transform_indices = @transform_15, window_bounds = array<i64: 1, 32>}, {pipeline_mode = #tpu.pipeline_mode<synchronous>, transform_indices = @transform_16, window_bounds = array<i64: 1, 32>}, {pipeline_mode = #tpu.pipeline_mode<synchronous>, transform_indices = @transform_17, window_bounds = array<i64: 32, 32>}, {pipeline_mode = #tpu.pipeline_mode<synchronous>, transform_indices = @transform_18, window_bounds = array<i64: 1, 32>}, {pipeline_mode = #tpu.pipeline_mode<synchronous>, transform_indices = @transform_19, window_bounds = array<i64: 32, 5>}, {pipeline_mode = #tpu.pipeline_mode<synchronous>, transform_indices = @transform_20, window_bounds = array<i64: 1, 5>}, {transform_indices = @transform_21, window_bounds = array<i64: 1, 8, 32>}, {transform_indices = @transform_22, window_bounds = array<i64: 1, 8, 32>}, {transform_indices = @transform_23, window_bounds = array<i64: 1, 8, 5>}]} {
    %0 = arith.index_cast %arg0 : i32 to index
    %1 = memref.load %arg2[%0] : memref<2xi32, #tpu.memory_space<smem>>
    %c0 = arith.constant 0 : index
    %c0_0 = arith.constant 0 : index
    %c0_1 = arith.constant 0 : index
    %2 = vector.load %arg3[%c0, %c0_0, %c0_1] : memref<1x8x32xf32, #tpu.memory_space<vmem>>, vector<1x8x32xf32>
    %3 = vector.shape_cast %2 : vector<1x8x32xf32> to vector<8x32xf32>
    %c0_2 = arith.constant 0 : index
    %c0_3 = arith.constant 0 : index
    %c0_4 = arith.constant 0 : index
    %4 = vector.load %arg4[%c0_2, %c0_3, %c0_4] : memref<1x32x32xf32, #tpu.memory_space<vmem>>, vector<1x32x32xf32>
    %5 = vector.shape_cast %4 : vector<1x32x32xf32> to vector<32x32xf32>
    %cst = arith.constant dense<0.000000e+00> : vector<8x32xf32>
    %6 = tpu.matmul %3, %5, %cst {dimension_numbers = #tpu.dot_dimension_numbers<[1], [0], [0], [1], [0, 0, 1, 1], [], []>} : vector<8x32xf32>, vector<32x32xf32>, vector<8x32xf32> -> vector<8x32xf32>
    %c0_5 = arith.constant 0 : index
    %c0_6 = arith.constant 0 : index
    %c0_7 = arith.constant 0 : index
    %7 = vector.load %arg5[%c0_5, %c0_6, %c0_7] : memref<1x1x32xf32, #tpu.memory_space<vmem>>, vector<1x1x32xf32>
    %8 = vector.shape_cast %7 : vector<1x1x32xf32> to vector<1x32xf32>
    %9 = vector.broadcast %8 : vector<1x32xf32> to vector<8x32xf32>
    %10 = arith.addf %6, %9 : vector<8x32xf32>
    %cst_8 = arith.constant dense<0.000000e+00> : vector<8xf32>
    %11 = vector.multi_reduction <add>, %10, %cst_8 [1] : vector<8x32xf32> to vector<8xf32>
    %12 = vector.shape_cast %11 : vector<8xf32> to vector<8x1xf32>
    %cst_9 = arith.constant 3.200000e+01 : f32
    %13 = vector.broadcast %cst_9 : f32 to vector<8x1xf32>
    %14 = arith.divf %12, %13 : vector<8x1xf32>
    %15 = vector.broadcast %14 : vector<8x1xf32> to vector<8x32xf32>
    %16 = arith.subf %10, %15 : vector<8x32xf32>
    %17 = arith.mulf %16, %16 : vector<8x32xf32>
    %cst_10 = arith.constant dense<0.000000e+00> : vector<8xf32>
    %18 = vector.multi_reduction <add>, %17, %cst_10 [1] : vector<8x32xf32> to vector<8xf32>
    %19 = vector.shape_cast %18 : vector<8xf32> to vector<8x1xf32>
    %cst_11 = arith.constant 3.200000e+01 : f32
    %20 = vector.broadcast %cst_11 : f32 to vector<8x1xf32>
    %21 = arith.divf %19, %20 : vector<8x1xf32>
    %22 = vector.broadcast %14 : vector<8x1xf32> to vector<8x32xf32>
    %23 = arith.subf %10, %22 : vector<8x32xf32>
    %cst_12 = arith.constant 9.99999974E-6 : f32
    %24 = vector.broadcast %cst_12 : f32 to vector<8x1xf32>
    %25 = arith.addf %21, %24 : vector<8x1xf32>
    %26 = math.rsqrt %25 : vector<8x1xf32>
    %27 = vector.broadcast %26 : vector<8x1xf32> to vector<8x32xf32>
    %28 = arith.mulf %23, %27 : vector<8x32xf32>
    %c0_13 = arith.constant 0 : index
    %c0_14 = arith.constant 0 : index
    %c0_15 = arith.constant 0 : index
    %29 = vector.load %arg6[%c0_13, %c0_14, %c0_15] : memref<1x1x32xf32, #tpu.memory_space<vmem>>, vector<1x1x32xf32>
    %30 = vector.shape_cast %29 : vector<1x1x32xf32> to vector<1x32xf32>
    %31 = vector.broadcast %30 : vector<1x32xf32> to vector<8x32xf32>
    %32 = arith.mulf %28, %31 : vector<8x32xf32>
    %c0_16 = arith.constant 0 : index
    %c0_17 = arith.constant 0 : index
    %c0_18 = arith.constant 0 : index
    %33 = vector.load %arg7[%c0_16, %c0_17, %c0_18] : memref<1x1x32xf32, #tpu.memory_space<vmem>>, vector<1x1x32xf32>
    %34 = vector.shape_cast %33 : vector<1x1x32xf32> to vector<1x32xf32>
    %35 = vector.broadcast %34 : vector<1x32xf32> to vector<8x32xf32>
    %36 = arith.addf %32, %35 : vector<8x32xf32>
    %cst_19 = arith.constant 0.000000e+00 : f32
    %37 = vector.broadcast %cst_19 : f32 to vector<8x32xf32>
    %38 = arith.maximumf %36, %37 : vector<8x32xf32>
    %c0_20 = arith.constant 0 : index
    %c0_21 = arith.constant 0 : index
    %c0_22 = arith.constant 0 : index
    %39 = vector.load %arg8[%c0_20, %c0_21, %c0_22] : memref<1x32x32xf32, #tpu.memory_space<vmem>>, vector<1x32x32xf32>
    %40 = vector.shape_cast %39 : vector<1x32x32xf32> to vector<32x32xf32>
    %cst_23 = arith.constant dense<0.000000e+00> : vector<8x32xf32>
    %41 = tpu.matmul %38, %40, %cst_23 {dimension_numbers = #tpu.dot_dimension_numbers<[1], [0], [0], [1], [0, 0, 1, 1], [], []>} : vector<8x32xf32>, vector<32x32xf32>, vector<8x32xf32> -> vector<8x32xf32>
    %c0_24 = arith.constant 0 : index
    %c0_25 = arith.constant 0 : index
    %c0_26 = arith.constant 0 : index
    %42 = vector.load %arg9[%c0_24, %c0_25, %c0_26] : memref<1x1x32xf32, #tpu.memory_space<vmem>>, vector<1x1x32xf32>
    %43 = vector.shape_cast %42 : vector<1x1x32xf32> to vector<1x32xf32>
    %44 = vector.broadcast %43 : vector<1x32xf32> to vector<8x32xf32>
    %45 = arith.addf %41, %44 : vector<8x32xf32>
    %c0_27 = arith.constant 0 : index
    %c0_28 = arith.constant 0 : index
    %46 = vector.load %arg10[%c0_27, %c0_28] : memref<32x128xf32, #tpu.memory_space<vmem>>, vector<32x128xf32>
    %cst_29 = arith.constant dense<0.000000e+00> : vector<8x128xf32>
    %47 = tpu.matmul %45, %46, %cst_29 {dimension_numbers = #tpu.dot_dimension_numbers<[1], [0], [0], [1], [0, 0, 1, 1], [], []>} : vector<8x32xf32>, vector<32x128xf32>, vector<8x128xf32> -> vector<8x128xf32>
    %c0_30 = arith.constant 0 : index
    %c0_31 = arith.constant 0 : index
    %48 = vector.load %arg11[%c0_30, %c0_31] : memref<1x128xf32, #tpu.memory_space<vmem>>, vector<1x128xf32>
    %49 = vector.broadcast %48 : vector<1x128xf32> to vector<8x128xf32>
    %50 = arith.addf %47, %49 : vector<8x128xf32>
    %51 = vector.extract_strided_slice %50 {offsets = [0, 0], sizes = [8, 64], strides = [1, 1]} : vector<8x128xf32> to vector<8x64xf32>
    %52 = vector.extract_strided_slice %50 {offsets = [0, 64], sizes = [8, 64], strides = [1, 1]} : vector<8x128xf32> to vector<8x64xf32>
    %c0_32 = arith.constant 0 : index
    %c0_33 = arith.constant 0 : index
    %53 = vector.load %arg12[%c0_32, %c0_33] : memref<16x64xf32, #tpu.memory_space<vmem>>, vector<16x64xf32>
    %cst_34 = arith.constant 0.000000e+00 : f32
    %54 = vector.broadcast %cst_34 : f32 to vector<1x16xf32>
    %cst_35 = arith.constant 0.000000e+00 : f32
    %55 = vector.broadcast %cst_35 : f32 to vector<1x16xf32>
    %c0_i32 = arith.constant 0 : i32
    %56 = arith.cmpi sgt, %1, %c0_i32 : i32
    %57 = arith.extui %56 : i1 to i32
    %58 = arith.sitofp %57 : i32 to f32
    %59 = vector.extract_strided_slice %51 {offsets = [0, 0], sizes = [1, 64], strides = [1, 1]} : vector<8x64xf32> to vector<1x64xf32>
    %cst_36 = arith.constant dense<0.000000e+00> : vector<1x64xf32>
    %60 = tpu.matmul %54, %53, %cst_36 {dimension_numbers = #tpu.dot_dimension_numbers<[1], [0], [0], [1], [0, 0, 1, 1], [], []>} : vector<1x16xf32>, vector<16x64xf32>, vector<1x64xf32> -> vector<1x64xf32>
    %61 = arith.addf %59, %60 : vector<1x64xf32>
    %62 = vector.extract_strided_slice %61 {offsets = [0, 0], sizes = [1, 48], strides = [1, 1]} : vector<1x64xf32> to vector<1x48xf32>
    %63 = arith.negf %62 : vector<1x48xf32>
    %64 = math.exp %63 : vector<1x48xf32>
    %cst_37 = arith.constant 1.000000e+00 : f32
    %65 = vector.broadcast %cst_37 : f32 to vector<1x48xf32>
    %66 = arith.addf %65, %64 : vector<1x48xf32>
    %67 = arith.divf %65, %66 : vector<1x48xf32>
    %68 = vector.extract_strided_slice %67 {offsets = [0, 0], sizes = [1, 16], strides = [1, 1]} : vector<1x48xf32> to vector<1x16xf32>
    %69 = vector.extract_strided_slice %67 {offsets = [0, 16], sizes = [1, 16], strides = [1, 1]} : vector<1x48xf32> to vector<1x16xf32>
    %70 = vector.extract_strided_slice %67 {offsets = [0, 32], sizes = [1, 16], strides = [1, 1]} : vector<1x48xf32> to vector<1x16xf32>
    %71 = vector.extract_strided_slice %61 {offsets = [0, 48], sizes = [1, 16], strides = [1, 1]} : vector<1x64xf32> to vector<1x16xf32>
    %72 = math.tanh %71 : vector<1x16xf32>
    %73 = arith.mulf %69, %55 : vector<1x16xf32>
    %74 = arith.mulf %68, %72 : vector<1x16xf32>
    %75 = arith.addf %73, %74 : vector<1x16xf32>
    %76 = math.tanh %75 : vector<1x16xf32>
    %77 = arith.mulf %70, %76 : vector<1x16xf32>
    %78 = vector.broadcast %58 : f32 to vector<1x16xf32>
    %79 = arith.mulf %78, %77 : vector<1x16xf32>
    %80 = vector.broadcast %58 : f32 to vector<1x16xf32>
    %81 = arith.mulf %80, %77 : vector<1x16xf32>
    %cst_38 = arith.constant 1.000000e+00 : f32
    %82 = arith.subf %cst_38, %58 : f32
    %83 = vector.broadcast %82 : f32 to vector<1x16xf32>
    %84 = arith.mulf %83, %54 : vector<1x16xf32>
    %85 = arith.addf %81, %84 : vector<1x16xf32>
    %86 = vector.broadcast %58 : f32 to vector<1x16xf32>
    %87 = arith.mulf %86, %75 : vector<1x16xf32>
    %cst_39 = arith.constant 1.000000e+00 : f32
    %88 = arith.subf %cst_39, %58 : f32
    %89 = vector.broadcast %88 : f32 to vector<1x16xf32>
    %90 = arith.mulf %89, %55 : vector<1x16xf32>
    %91 = arith.addf %87, %90 : vector<1x16xf32>
    %c1_i32 = arith.constant 1 : i32
    %92 = arith.cmpi sgt, %1, %c1_i32 : i32
    %93 = arith.extui %92 : i1 to i32
    %94 = arith.sitofp %93 : i32 to f32
    %95 = vector.extract_strided_slice %51 {offsets = [1, 0], sizes = [1, 64], strides = [1, 1]} : vector<8x64xf32> to vector<1x64xf32>
    %cst_40 = arith.constant dense<0.000000e+00> : vector<1x64xf32>
    %96 = tpu.matmul %85, %53, %cst_40 {dimension_numbers = #tpu.dot_dimension_numbers<[1], [0], [0], [1], [0, 0, 1, 1], [], []>} : vector<1x16xf32>, vector<16x64xf32>, vector<1x64xf32> -> vector<1x64xf32>
    %97 = arith.addf %95, %96 : vector<1x64xf32>
    %98 = vector.extract_strided_slice %97 {offsets = [0, 0], sizes = [1, 48], strides = [1, 1]} : vector<1x64xf32> to vector<1x48xf32>
    %99 = arith.negf %98 : vector<1x48xf32>
    %100 = math.exp %99 : vector<1x48xf32>
    %cst_41 = arith.constant 1.000000e+00 : f32
    %101 = vector.broadcast %cst_41 : f32 to vector<1x48xf32>
    %102 = arith.addf %101, %100 : vector<1x48xf32>
    %103 = arith.divf %101, %102 : vector<1x48xf32>
    %104 = vector.extract_strided_slice %103 {offsets = [0, 0], sizes = [1, 16], strides = [1, 1]} : vector<1x48xf32> to vector<1x16xf32>
    %105 = vector.extract_strided_slice %103 {offsets = [0, 16], sizes = [1, 16], strides = [1, 1]} : vector<1x48xf32> to vector<1x16xf32>
    %106 = vector.extract_strided_slice %103 {offsets = [0, 32], sizes = [1, 16], strides = [1, 1]} : vector<1x48xf32> to vector<1x16xf32>
    %107 = vector.extract_strided_slice %97 {offsets = [0, 48], sizes = [1, 16], strides = [1, 1]} : vector<1x64xf32> to vector<1x16xf32>
    %108 = math.tanh %107 : vector<1x16xf32>
    %109 = arith.mulf %105, %91 : vector<1x16xf32>
    %110 = arith.mulf %104, %108 : vector<1x16xf32>
    %111 = arith.addf %109, %110 : vector<1x16xf32>
    %112 = math.tanh %111 : vector<1x16xf32>
    %113 = arith.mulf %106, %112 : vector<1x16xf32>
    %114 = vector.broadcast %94 : f32 to vector<1x16xf32>
    %115 = arith.mulf %114, %113 : vector<1x16xf32>
    %116 = vector.broadcast %94 : f32 to vector<1x16xf32>
    %117 = arith.mulf %116, %113 : vector<1x16xf32>
    %cst_42 = arith.constant 1.000000e+00 : f32
    %118 = arith.subf %cst_42, %94 : f32
    %119 = vector.broadcast %118 : f32 to vector<1x16xf32>
    %120 = arith.mulf %119, %85 : vector<1x16xf32>
    %121 = arith.addf %117, %120 : vector<1x16xf32>
    %122 = vector.broadcast %94 : f32 to vector<1x16xf32>
    %123 = arith.mulf %122, %111 : vector<1x16xf32>
    %cst_43 = arith.constant 1.000000e+00 : f32
    %124 = arith.subf %cst_43, %94 : f32
    %125 = vector.broadcast %124 : f32 to vector<1x16xf32>
    %126 = arith.mulf %125, %91 : vector<1x16xf32>
    %127 = arith.addf %123, %126 : vector<1x16xf32>
    %c2_i32 = arith.constant 2 : i32
    %128 = arith.cmpi sgt, %1, %c2_i32 : i32
    %129 = arith.extui %128 : i1 to i32
    %130 = arith.sitofp %129 : i32 to f32
    %131 = vector.extract_strided_slice %51 {offsets = [2, 0], sizes = [1, 64], strides = [1, 1]} : vector<8x64xf32> to vector<1x64xf32>
    %cst_44 = arith.constant dense<0.000000e+00> : vector<1x64xf32>
    %132 = tpu.matmul %121, %53, %cst_44 {dimension_numbers = #tpu.dot_dimension_numbers<[1], [0], [0], [1], [0, 0, 1, 1], [], []>} : vector<1x16xf32>, vector<16x64xf32>, vector<1x64xf32> -> vector<1x64xf32>
    %133 = arith.addf %131, %132 : vector<1x64xf32>
    %134 = vector.extract_strided_slice %133 {offsets = [0, 0], sizes = [1, 48], strides = [1, 1]} : vector<1x64xf32> to vector<1x48xf32>
    %135 = arith.negf %134 : vector<1x48xf32>
    %136 = math.exp %135 : vector<1x48xf32>
    %cst_45 = arith.constant 1.000000e+00 : f32
    %137 = vector.broadcast %cst_45 : f32 to vector<1x48xf32>
    %138 = arith.addf %137, %136 : vector<1x48xf32>
    %139 = arith.divf %137, %138 : vector<1x48xf32>
    %140 = vector.extract_strided_slice %139 {offsets = [0, 0], sizes = [1, 16], strides = [1, 1]} : vector<1x48xf32> to vector<1x16xf32>
    %141 = vector.extract_strided_slice %139 {offsets = [0, 16], sizes = [1, 16], strides = [1, 1]} : vector<1x48xf32> to vector<1x16xf32>
    %142 = vector.extract_strided_slice %139 {offsets = [0, 32], sizes = [1, 16], strides = [1, 1]} : vector<1x48xf32> to vector<1x16xf32>
    %143 = vector.extract_strided_slice %133 {offsets = [0, 48], sizes = [1, 16], strides = [1, 1]} : vector<1x64xf32> to vector<1x16xf32>
    %144 = math.tanh %143 : vector<1x16xf32>
    %145 = arith.mulf %141, %127 : vector<1x16xf32>
    %146 = arith.mulf %140, %144 : vector<1x16xf32>
    %147 = arith.addf %145, %146 : vector<1x16xf32>
    %148 = math.tanh %147 : vector<1x16xf32>
    %149 = arith.mulf %142, %148 : vector<1x16xf32>
    %150 = vector.broadcast %130 : f32 to vector<1x16xf32>
    %151 = arith.mulf %150, %149 : vector<1x16xf32>
    %152 = vector.broadcast %130 : f32 to vector<1x16xf32>
    %153 = arith.mulf %152, %149 : vector<1x16xf32>
    %cst_46 = arith.constant 1.000000e+00 : f32
    %154 = arith.subf %cst_46, %130 : f32
    %155 = vector.broadcast %154 : f32 to vector<1x16xf32>
    %156 = arith.mulf %155, %121 : vector<1x16xf32>
    %157 = arith.addf %153, %156 : vector<1x16xf32>
    %158 = vector.broadcast %130 : f32 to vector<1x16xf32>
    %159 = arith.mulf %158, %147 : vector<1x16xf32>
    %cst_47 = arith.constant 1.000000e+00 : f32
    %160 = arith.subf %cst_47, %130 : f32
    %161 = vector.broadcast %160 : f32 to vector<1x16xf32>
    %162 = arith.mulf %161, %127 : vector<1x16xf32>
    %163 = arith.addf %159, %162 : vector<1x16xf32>
    %c3_i32 = arith.constant 3 : i32
    %164 = arith.cmpi sgt, %1, %c3_i32 : i32
    %165 = arith.extui %164 : i1 to i32
    %166 = arith.sitofp %165 : i32 to f32
    %167 = vector.extract_strided_slice %51 {offsets = [3, 0], sizes = [1, 64], strides = [1, 1]} : vector<8x64xf32> to vector<1x64xf32>
    %cst_48 = arith.constant dense<0.000000e+00> : vector<1x64xf32>
    %168 = tpu.matmul %157, %53, %cst_48 {dimension_numbers = #tpu.dot_dimension_numbers<[1], [0], [0], [1], [0, 0, 1, 1], [], []>} : vector<1x16xf32>, vector<16x64xf32>, vector<1x64xf32> -> vector<1x64xf32>
    %169 = arith.addf %167, %168 : vector<1x64xf32>
    %170 = vector.extract_strided_slice %169 {offsets = [0, 0], sizes = [1, 48], strides = [1, 1]} : vector<1x64xf32> to vector<1x48xf32>
    %171 = arith.negf %170 : vector<1x48xf32>
    %172 = math.exp %171 : vector<1x48xf32>
    %cst_49 = arith.constant 1.000000e+00 : f32
    %173 = vector.broadcast %cst_49 : f32 to vector<1x48xf32>
    %174 = arith.addf %173, %172 : vector<1x48xf32>
    %175 = arith.divf %173, %174 : vector<1x48xf32>
    %176 = vector.extract_strided_slice %175 {offsets = [0, 0], sizes = [1, 16], strides = [1, 1]} : vector<1x48xf32> to vector<1x16xf32>
    %177 = vector.extract_strided_slice %175 {offsets = [0, 16], sizes = [1, 16], strides = [1, 1]} : vector<1x48xf32> to vector<1x16xf32>
    %178 = vector.extract_strided_slice %175 {offsets = [0, 32], sizes = [1, 16], strides = [1, 1]} : vector<1x48xf32> to vector<1x16xf32>
    %179 = vector.extract_strided_slice %169 {offsets = [0, 48], sizes = [1, 16], strides = [1, 1]} : vector<1x64xf32> to vector<1x16xf32>
    %180 = math.tanh %179 : vector<1x16xf32>
    %181 = arith.mulf %177, %163 : vector<1x16xf32>
    %182 = arith.mulf %176, %180 : vector<1x16xf32>
    %183 = arith.addf %181, %182 : vector<1x16xf32>
    %184 = math.tanh %183 : vector<1x16xf32>
    %185 = arith.mulf %178, %184 : vector<1x16xf32>
    %186 = vector.broadcast %166 : f32 to vector<1x16xf32>
    %187 = arith.mulf %186, %185 : vector<1x16xf32>
    %188 = vector.broadcast %166 : f32 to vector<1x16xf32>
    %189 = arith.mulf %188, %185 : vector<1x16xf32>
    %cst_50 = arith.constant 1.000000e+00 : f32
    %190 = arith.subf %cst_50, %166 : f32
    %191 = vector.broadcast %190 : f32 to vector<1x16xf32>
    %192 = arith.mulf %191, %157 : vector<1x16xf32>
    %193 = arith.addf %189, %192 : vector<1x16xf32>
    %194 = vector.broadcast %166 : f32 to vector<1x16xf32>
    %195 = arith.mulf %194, %183 : vector<1x16xf32>
    %cst_51 = arith.constant 1.000000e+00 : f32
    %196 = arith.subf %cst_51, %166 : f32
    %197 = vector.broadcast %196 : f32 to vector<1x16xf32>
    %198 = arith.mulf %197, %163 : vector<1x16xf32>
    %199 = arith.addf %195, %198 : vector<1x16xf32>
    %c4_i32 = arith.constant 4 : i32
    %200 = arith.cmpi sgt, %1, %c4_i32 : i32
    %201 = arith.extui %200 : i1 to i32
    %202 = arith.sitofp %201 : i32 to f32
    %203 = vector.extract_strided_slice %51 {offsets = [4, 0], sizes = [1, 64], strides = [1, 1]} : vector<8x64xf32> to vector<1x64xf32>
    %cst_52 = arith.constant dense<0.000000e+00> : vector<1x64xf32>
    %204 = tpu.matmul %193, %53, %cst_52 {dimension_numbers = #tpu.dot_dimension_numbers<[1], [0], [0], [1], [0, 0, 1, 1], [], []>} : vector<1x16xf32>, vector<16x64xf32>, vector<1x64xf32> -> vector<1x64xf32>
    %205 = arith.addf %203, %204 : vector<1x64xf32>
    %206 = vector.extract_strided_slice %205 {offsets = [0, 0], sizes = [1, 48], strides = [1, 1]} : vector<1x64xf32> to vector<1x48xf32>
    %207 = arith.negf %206 : vector<1x48xf32>
    %208 = math.exp %207 : vector<1x48xf32>
    %cst_53 = arith.constant 1.000000e+00 : f32
    %209 = vector.broadcast %cst_53 : f32 to vector<1x48xf32>
    %210 = arith.addf %209, %208 : vector<1x48xf32>
    %211 = arith.divf %209, %210 : vector<1x48xf32>
    %212 = vector.extract_strided_slice %211 {offsets = [0, 0], sizes = [1, 16], strides = [1, 1]} : vector<1x48xf32> to vector<1x16xf32>
    %213 = vector.extract_strided_slice %211 {offsets = [0, 16], sizes = [1, 16], strides = [1, 1]} : vector<1x48xf32> to vector<1x16xf32>
    %214 = vector.extract_strided_slice %211 {offsets = [0, 32], sizes = [1, 16], strides = [1, 1]} : vector<1x48xf32> to vector<1x16xf32>
    %215 = vector.extract_strided_slice %205 {offsets = [0, 48], sizes = [1, 16], strides = [1, 1]} : vector<1x64xf32> to vector<1x16xf32>
    %216 = math.tanh %215 : vector<1x16xf32>
    %217 = arith.mulf %213, %199 : vector<1x16xf32>
    %218 = arith.mulf %212, %216 : vector<1x16xf32>
    %219 = arith.addf %217, %218 : vector<1x16xf32>
    %220 = math.tanh %219 : vector<1x16xf32>
    %221 = arith.mulf %214, %220 : vector<1x16xf32>
    %222 = vector.broadcast %202 : f32 to vector<1x16xf32>
    %223 = arith.mulf %222, %221 : vector<1x16xf32>
    %224 = vector.broadcast %202 : f32 to vector<1x16xf32>
    %225 = arith.mulf %224, %221 : vector<1x16xf32>
    %cst_54 = arith.constant 1.000000e+00 : f32
    %226 = arith.subf %cst_54, %202 : f32
    %227 = vector.broadcast %226 : f32 to vector<1x16xf32>
    %228 = arith.mulf %227, %193 : vector<1x16xf32>
    %229 = arith.addf %225, %228 : vector<1x16xf32>
    %230 = vector.broadcast %202 : f32 to vector<1x16xf32>
    %231 = arith.mulf %230, %219 : vector<1x16xf32>
    %cst_55 = arith.constant 1.000000e+00 : f32
    %232 = arith.subf %cst_55, %202 : f32
    %233 = vector.broadcast %232 : f32 to vector<1x16xf32>
    %234 = arith.mulf %233, %199 : vector<1x16xf32>
    %235 = arith.addf %231, %234 : vector<1x16xf32>
    %c5_i32 = arith.constant 5 : i32
    %236 = arith.cmpi sgt, %1, %c5_i32 : i32
    %237 = arith.extui %236 : i1 to i32
    %238 = arith.sitofp %237 : i32 to f32
    %239 = vector.extract_strided_slice %51 {offsets = [5, 0], sizes = [1, 64], strides = [1, 1]} : vector<8x64xf32> to vector<1x64xf32>
    %cst_56 = arith.constant dense<0.000000e+00> : vector<1x64xf32>
    %240 = tpu.matmul %229, %53, %cst_56 {dimension_numbers = #tpu.dot_dimension_numbers<[1], [0], [0], [1], [0, 0, 1, 1], [], []>} : vector<1x16xf32>, vector<16x64xf32>, vector<1x64xf32> -> vector<1x64xf32>
    %241 = arith.addf %239, %240 : vector<1x64xf32>
    %242 = vector.extract_strided_slice %241 {offsets = [0, 0], sizes = [1, 48], strides = [1, 1]} : vector<1x64xf32> to vector<1x48xf32>
    %243 = arith.negf %242 : vector<1x48xf32>
    %244 = math.exp %243 : vector<1x48xf32>
    %cst_57 = arith.constant 1.000000e+00 : f32
    %245 = vector.broadcast %cst_57 : f32 to vector<1x48xf32>
    %246 = arith.addf %245, %244 : vector<1x48xf32>
    %247 = arith.divf %245, %246 : vector<1x48xf32>
    %248 = vector.extract_strided_slice %247 {offsets = [0, 0], sizes = [1, 16], strides = [1, 1]} : vector<1x48xf32> to vector<1x16xf32>
    %249 = vector.extract_strided_slice %247 {offsets = [0, 16], sizes = [1, 16], strides = [1, 1]} : vector<1x48xf32> to vector<1x16xf32>
    %250 = vector.extract_strided_slice %247 {offsets = [0, 32], sizes = [1, 16], strides = [1, 1]} : vector<1x48xf32> to vector<1x16xf32>
    %251 = vector.extract_strided_slice %241 {offsets = [0, 48], sizes = [1, 16], strides = [1, 1]} : vector<1x64xf32> to vector<1x16xf32>
    %252 = math.tanh %251 : vector<1x16xf32>
    %253 = arith.mulf %249, %235 : vector<1x16xf32>
    %254 = arith.mulf %248, %252 : vector<1x16xf32>
    %255 = arith.addf %253, %254 : vector<1x16xf32>
    %256 = math.tanh %255 : vector<1x16xf32>
    %257 = arith.mulf %250, %256 : vector<1x16xf32>
    %258 = vector.broadcast %238 : f32 to vector<1x16xf32>
    %259 = arith.mulf %258, %257 : vector<1x16xf32>
    %260 = vector.broadcast %238 : f32 to vector<1x16xf32>
    %261 = arith.mulf %260, %257 : vector<1x16xf32>
    %cst_58 = arith.constant 1.000000e+00 : f32
    %262 = arith.subf %cst_58, %238 : f32
    %263 = vector.broadcast %262 : f32 to vector<1x16xf32>
    %264 = arith.mulf %263, %229 : vector<1x16xf32>
    %265 = arith.addf %261, %264 : vector<1x16xf32>
    %266 = vector.broadcast %238 : f32 to vector<1x16xf32>
    %267 = arith.mulf %266, %255 : vector<1x16xf32>
    %cst_59 = arith.constant 1.000000e+00 : f32
    %268 = arith.subf %cst_59, %238 : f32
    %269 = vector.broadcast %268 : f32 to vector<1x16xf32>
    %270 = arith.mulf %269, %235 : vector<1x16xf32>
    %271 = arith.addf %267, %270 : vector<1x16xf32>
    %c6_i32 = arith.constant 6 : i32
    %272 = arith.cmpi sgt, %1, %c6_i32 : i32
    %273 = arith.extui %272 : i1 to i32
    %274 = arith.sitofp %273 : i32 to f32
    %275 = vector.extract_strided_slice %51 {offsets = [6, 0], sizes = [1, 64], strides = [1, 1]} : vector<8x64xf32> to vector<1x64xf32>
    %cst_60 = arith.constant dense<0.000000e+00> : vector<1x64xf32>
    %276 = tpu.matmul %265, %53, %cst_60 {dimension_numbers = #tpu.dot_dimension_numbers<[1], [0], [0], [1], [0, 0, 1, 1], [], []>} : vector<1x16xf32>, vector<16x64xf32>, vector<1x64xf32> -> vector<1x64xf32>
    %277 = arith.addf %275, %276 : vector<1x64xf32>
    %278 = vector.extract_strided_slice %277 {offsets = [0, 0], sizes = [1, 48], strides = [1, 1]} : vector<1x64xf32> to vector<1x48xf32>
    %279 = arith.negf %278 : vector<1x48xf32>
    %280 = math.exp %279 : vector<1x48xf32>
    %cst_61 = arith.constant 1.000000e+00 : f32
    %281 = vector.broadcast %cst_61 : f32 to vector<1x48xf32>
    %282 = arith.addf %281, %280 : vector<1x48xf32>
    %283 = arith.divf %281, %282 : vector<1x48xf32>
    %284 = vector.extract_strided_slice %283 {offsets = [0, 0], sizes = [1, 16], strides = [1, 1]} : vector<1x48xf32> to vector<1x16xf32>
    %285 = vector.extract_strided_slice %283 {offsets = [0, 16], sizes = [1, 16], strides = [1, 1]} : vector<1x48xf32> to vector<1x16xf32>
    %286 = vector.extract_strided_slice %283 {offsets = [0, 32], sizes = [1, 16], strides = [1, 1]} : vector<1x48xf32> to vector<1x16xf32>
    %287 = vector.extract_strided_slice %277 {offsets = [0, 48], sizes = [1, 16], strides = [1, 1]} : vector<1x64xf32> to vector<1x16xf32>
    %288 = math.tanh %287 : vector<1x16xf32>
    %289 = arith.mulf %285, %271 : vector<1x16xf32>
    %290 = arith.mulf %284, %288 : vector<1x16xf32>
    %291 = arith.addf %289, %290 : vector<1x16xf32>
    %292 = math.tanh %291 : vector<1x16xf32>
    %293 = arith.mulf %286, %292 : vector<1x16xf32>
    %294 = vector.broadcast %274 : f32 to vector<1x16xf32>
    %295 = arith.mulf %294, %293 : vector<1x16xf32>
    %296 = vector.broadcast %274 : f32 to vector<1x16xf32>
    %297 = arith.mulf %296, %293 : vector<1x16xf32>
    %cst_62 = arith.constant 1.000000e+00 : f32
    %298 = arith.subf %cst_62, %274 : f32
    %299 = vector.broadcast %298 : f32 to vector<1x16xf32>
    %300 = arith.mulf %299, %265 : vector<1x16xf32>
    %301 = arith.addf %297, %300 : vector<1x16xf32>
    %302 = vector.broadcast %274 : f32 to vector<1x16xf32>
    %303 = arith.mulf %302, %291 : vector<1x16xf32>
    %cst_63 = arith.constant 1.000000e+00 : f32
    %304 = arith.subf %cst_63, %274 : f32
    %305 = vector.broadcast %304 : f32 to vector<1x16xf32>
    %306 = arith.mulf %305, %271 : vector<1x16xf32>
    %307 = arith.addf %303, %306 : vector<1x16xf32>
    %c7_i32 = arith.constant 7 : i32
    %308 = arith.cmpi sgt, %1, %c7_i32 : i32
    %309 = arith.extui %308 : i1 to i32
    %310 = arith.sitofp %309 : i32 to f32
    %311 = vector.extract_strided_slice %51 {offsets = [7, 0], sizes = [1, 64], strides = [1, 1]} : vector<8x64xf32> to vector<1x64xf32>
    %cst_64 = arith.constant dense<0.000000e+00> : vector<1x64xf32>
    %312 = tpu.matmul %301, %53, %cst_64 {dimension_numbers = #tpu.dot_dimension_numbers<[1], [0], [0], [1], [0, 0, 1, 1], [], []>} : vector<1x16xf32>, vector<16x64xf32>, vector<1x64xf32> -> vector<1x64xf32>
    %313 = arith.addf %311, %312 : vector<1x64xf32>
    %314 = vector.extract_strided_slice %313 {offsets = [0, 0], sizes = [1, 48], strides = [1, 1]} : vector<1x64xf32> to vector<1x48xf32>
    %315 = arith.negf %314 : vector<1x48xf32>
    %316 = math.exp %315 : vector<1x48xf32>
    %cst_65 = arith.constant 1.000000e+00 : f32
    %317 = vector.broadcast %cst_65 : f32 to vector<1x48xf32>
    %318 = arith.addf %317, %316 : vector<1x48xf32>
    %319 = arith.divf %317, %318 : vector<1x48xf32>
    %320 = vector.extract_strided_slice %319 {offsets = [0, 0], sizes = [1, 16], strides = [1, 1]} : vector<1x48xf32> to vector<1x16xf32>
    %321 = vector.extract_strided_slice %319 {offsets = [0, 16], sizes = [1, 16], strides = [1, 1]} : vector<1x48xf32> to vector<1x16xf32>
    %322 = vector.extract_strided_slice %319 {offsets = [0, 32], sizes = [1, 16], strides = [1, 1]} : vector<1x48xf32> to vector<1x16xf32>
    %323 = vector.extract_strided_slice %313 {offsets = [0, 48], sizes = [1, 16], strides = [1, 1]} : vector<1x64xf32> to vector<1x16xf32>
    %324 = math.tanh %323 : vector<1x16xf32>
    %325 = arith.mulf %321, %307 : vector<1x16xf32>
    %326 = arith.mulf %320, %324 : vector<1x16xf32>
    %327 = arith.addf %325, %326 : vector<1x16xf32>
    %328 = math.tanh %327 : vector<1x16xf32>
    %329 = arith.mulf %322, %328 : vector<1x16xf32>
    %330 = vector.broadcast %310 : f32 to vector<1x16xf32>
    %331 = arith.mulf %330, %329 : vector<1x16xf32>
    %332 = tpu.concatenate %79, %115, %151, %187, %223, %259, %295, %331 in 0 : vector<1x16xf32>, vector<1x16xf32>, vector<1x16xf32>, vector<1x16xf32>, vector<1x16xf32>, vector<1x16xf32>, vector<1x16xf32>, vector<1x16xf32> -> vector<8x16xf32>
    %c0_66 = arith.constant 0 : index
    %c0_67 = arith.constant 0 : index
    %333 = vector.load %arg13[%c0_66, %c0_67] : memref<16x64xf32, #tpu.memory_space<vmem>>, vector<16x64xf32>
    %cst_68 = arith.constant 0.000000e+00 : f32
    %334 = vector.broadcast %cst_68 : f32 to vector<1x16xf32>
    %cst_69 = arith.constant 0.000000e+00 : f32
    %335 = vector.broadcast %cst_69 : f32 to vector<1x16xf32>
    %c7_i32_70 = arith.constant 7 : i32
    %336 = arith.cmpi sgt, %1, %c7_i32_70 : i32
    %337 = arith.extui %336 : i1 to i32
    %338 = arith.sitofp %337 : i32 to f32
    %339 = vector.extract_strided_slice %52 {offsets = [7, 0], sizes = [1, 64], strides = [1, 1]} : vector<8x64xf32> to vector<1x64xf32>
    %cst_71 = arith.constant dense<0.000000e+00> : vector<1x64xf32>
    %340 = tpu.matmul %334, %333, %cst_71 {dimension_numbers = #tpu.dot_dimension_numbers<[1], [0], [0], [1], [0, 0, 1, 1], [], []>} : vector<1x16xf32>, vector<16x64xf32>, vector<1x64xf32> -> vector<1x64xf32>
    %341 = arith.addf %339, %340 : vector<1x64xf32>
    %342 = vector.extract_strided_slice %341 {offsets = [0, 0], sizes = [1, 48], strides = [1, 1]} : vector<1x64xf32> to vector<1x48xf32>
    %343 = arith.negf %342 : vector<1x48xf32>
    %344 = math.exp %343 : vector<1x48xf32>
    %cst_72 = arith.constant 1.000000e+00 : f32
    %345 = vector.broadcast %cst_72 : f32 to vector<1x48xf32>
    %346 = arith.addf %345, %344 : vector<1x48xf32>
    %347 = arith.divf %345, %346 : vector<1x48xf32>
    %348 = vector.extract_strided_slice %347 {offsets = [0, 0], sizes = [1, 16], strides = [1, 1]} : vector<1x48xf32> to vector<1x16xf32>
    %349 = vector.extract_strided_slice %347 {offsets = [0, 16], sizes = [1, 16], strides = [1, 1]} : vector<1x48xf32> to vector<1x16xf32>
    %350 = vector.extract_strided_slice %347 {offsets = [0, 32], sizes = [1, 16], strides = [1, 1]} : vector<1x48xf32> to vector<1x16xf32>
    %351 = vector.extract_strided_slice %341 {offsets = [0, 48], sizes = [1, 16], strides = [1, 1]} : vector<1x64xf32> to vector<1x16xf32>
    %352 = math.tanh %351 : vector<1x16xf32>
    %353 = arith.mulf %349, %335 : vector<1x16xf32>
    %354 = arith.mulf %348, %352 : vector<1x16xf32>
    %355 = arith.addf %353, %354 : vector<1x16xf32>
    %356 = math.tanh %355 : vector<1x16xf32>
    %357 = arith.mulf %350, %356 : vector<1x16xf32>
    %358 = vector.broadcast %338 : f32 to vector<1x16xf32>
    %359 = arith.mulf %358, %357 : vector<1x16xf32>
    %360 = vector.broadcast %338 : f32 to vector<1x16xf32>
    %361 = arith.mulf %360, %357 : vector<1x16xf32>
    %cst_73 = arith.constant 1.000000e+00 : f32
    %362 = arith.subf %cst_73, %338 : f32
    %363 = vector.broadcast %362 : f32 to vector<1x16xf32>
    %364 = arith.mulf %363, %334 : vector<1x16xf32>
    %365 = arith.addf %361, %364 : vector<1x16xf32>
    %366 = vector.broadcast %338 : f32 to vector<1x16xf32>
    %367 = arith.mulf %366, %355 : vector<1x16xf32>
    %cst_74 = arith.constant 1.000000e+00 : f32
    %368 = arith.subf %cst_74, %338 : f32
    %369 = vector.broadcast %368 : f32 to vector<1x16xf32>
    %370 = arith.mulf %369, %335 : vector<1x16xf32>
    %371 = arith.addf %367, %370 : vector<1x16xf32>
    %c6_i32_75 = arith.constant 6 : i32
    %372 = arith.cmpi sgt, %1, %c6_i32_75 : i32
    %373 = arith.extui %372 : i1 to i32
    %374 = arith.sitofp %373 : i32 to f32
    %375 = vector.extract_strided_slice %52 {offsets = [6, 0], sizes = [1, 64], strides = [1, 1]} : vector<8x64xf32> to vector<1x64xf32>
    %cst_76 = arith.constant dense<0.000000e+00> : vector<1x64xf32>
    %376 = tpu.matmul %365, %333, %cst_76 {dimension_numbers = #tpu.dot_dimension_numbers<[1], [0], [0], [1], [0, 0, 1, 1], [], []>} : vector<1x16xf32>, vector<16x64xf32>, vector<1x64xf32> -> vector<1x64xf32>
    %377 = arith.addf %375, %376 : vector<1x64xf32>
    %378 = vector.extract_strided_slice %377 {offsets = [0, 0], sizes = [1, 48], strides = [1, 1]} : vector<1x64xf32> to vector<1x48xf32>
    %379 = arith.negf %378 : vector<1x48xf32>
    %380 = math.exp %379 : vector<1x48xf32>
    %cst_77 = arith.constant 1.000000e+00 : f32
    %381 = vector.broadcast %cst_77 : f32 to vector<1x48xf32>
    %382 = arith.addf %381, %380 : vector<1x48xf32>
    %383 = arith.divf %381, %382 : vector<1x48xf32>
    %384 = vector.extract_strided_slice %383 {offsets = [0, 0], sizes = [1, 16], strides = [1, 1]} : vector<1x48xf32> to vector<1x16xf32>
    %385 = vector.extract_strided_slice %383 {offsets = [0, 16], sizes = [1, 16], strides = [1, 1]} : vector<1x48xf32> to vector<1x16xf32>
    %386 = vector.extract_strided_slice %383 {offsets = [0, 32], sizes = [1, 16], strides = [1, 1]} : vector<1x48xf32> to vector<1x16xf32>
    %387 = vector.extract_strided_slice %377 {offsets = [0, 48], sizes = [1, 16], strides = [1, 1]} : vector<1x64xf32> to vector<1x16xf32>
    %388 = math.tanh %387 : vector<1x16xf32>
    %389 = arith.mulf %385, %371 : vector<1x16xf32>
    %390 = arith.mulf %384, %388 : vector<1x16xf32>
    %391 = arith.addf %389, %390 : vector<1x16xf32>
    %392 = math.tanh %391 : vector<1x16xf32>
    %393 = arith.mulf %386, %392 : vector<1x16xf32>
    %394 = vector.broadcast %374 : f32 to vector<1x16xf32>
    %395 = arith.mulf %394, %393 : vector<1x16xf32>
    %396 = vector.broadcast %374 : f32 to vector<1x16xf32>
    %397 = arith.mulf %396, %393 : vector<1x16xf32>
    %cst_78 = arith.constant 1.000000e+00 : f32
    %398 = arith.subf %cst_78, %374 : f32
    %399 = vector.broadcast %398 : f32 to vector<1x16xf32>
    %400 = arith.mulf %399, %365 : vector<1x16xf32>
    %401 = arith.addf %397, %400 : vector<1x16xf32>
    %402 = vector.broadcast %374 : f32 to vector<1x16xf32>
    %403 = arith.mulf %402, %391 : vector<1x16xf32>
    %cst_79 = arith.constant 1.000000e+00 : f32
    %404 = arith.subf %cst_79, %374 : f32
    %405 = vector.broadcast %404 : f32 to vector<1x16xf32>
    %406 = arith.mulf %405, %371 : vector<1x16xf32>
    %407 = arith.addf %403, %406 : vector<1x16xf32>
    %c5_i32_80 = arith.constant 5 : i32
    %408 = arith.cmpi sgt, %1, %c5_i32_80 : i32
    %409 = arith.extui %408 : i1 to i32
    %410 = arith.sitofp %409 : i32 to f32
    %411 = vector.extract_strided_slice %52 {offsets = [5, 0], sizes = [1, 64], strides = [1, 1]} : vector<8x64xf32> to vector<1x64xf32>
    %cst_81 = arith.constant dense<0.000000e+00> : vector<1x64xf32>
    %412 = tpu.matmul %401, %333, %cst_81 {dimension_numbers = #tpu.dot_dimension_numbers<[1], [0], [0], [1], [0, 0, 1, 1], [], []>} : vector<1x16xf32>, vector<16x64xf32>, vector<1x64xf32> -> vector<1x64xf32>
    %413 = arith.addf %411, %412 : vector<1x64xf32>
    %414 = vector.extract_strided_slice %413 {offsets = [0, 0], sizes = [1, 48], strides = [1, 1]} : vector<1x64xf32> to vector<1x48xf32>
    %415 = arith.negf %414 : vector<1x48xf32>
    %416 = math.exp %415 : vector<1x48xf32>
    %cst_82 = arith.constant 1.000000e+00 : f32
    %417 = vector.broadcast %cst_82 : f32 to vector<1x48xf32>
    %418 = arith.addf %417, %416 : vector<1x48xf32>
    %419 = arith.divf %417, %418 : vector<1x48xf32>
    %420 = vector.extract_strided_slice %419 {offsets = [0, 0], sizes = [1, 16], strides = [1, 1]} : vector<1x48xf32> to vector<1x16xf32>
    %421 = vector.extract_strided_slice %419 {offsets = [0, 16], sizes = [1, 16], strides = [1, 1]} : vector<1x48xf32> to vector<1x16xf32>
    %422 = vector.extract_strided_slice %419 {offsets = [0, 32], sizes = [1, 16], strides = [1, 1]} : vector<1x48xf32> to vector<1x16xf32>
    %423 = vector.extract_strided_slice %413 {offsets = [0, 48], sizes = [1, 16], strides = [1, 1]} : vector<1x64xf32> to vector<1x16xf32>
    %424 = math.tanh %423 : vector<1x16xf32>
    %425 = arith.mulf %421, %407 : vector<1x16xf32>
    %426 = arith.mulf %420, %424 : vector<1x16xf32>
    %427 = arith.addf %425, %426 : vector<1x16xf32>
    %428 = math.tanh %427 : vector<1x16xf32>
    %429 = arith.mulf %422, %428 : vector<1x16xf32>
    %430 = vector.broadcast %410 : f32 to vector<1x16xf32>
    %431 = arith.mulf %430, %429 : vector<1x16xf32>
    %432 = vector.broadcast %410 : f32 to vector<1x16xf32>
    %433 = arith.mulf %432, %429 : vector<1x16xf32>
    %cst_83 = arith.constant 1.000000e+00 : f32
    %434 = arith.subf %cst_83, %410 : f32
    %435 = vector.broadcast %434 : f32 to vector<1x16xf32>
    %436 = arith.mulf %435, %401 : vector<1x16xf32>
    %437 = arith.addf %433, %436 : vector<1x16xf32>
    %438 = vector.broadcast %410 : f32 to vector<1x16xf32>
    %439 = arith.mulf %438, %427 : vector<1x16xf32>
    %cst_84 = arith.constant 1.000000e+00 : f32
    %440 = arith.subf %cst_84, %410 : f32
    %441 = vector.broadcast %440 : f32 to vector<1x16xf32>
    %442 = arith.mulf %441, %407 : vector<1x16xf32>
    %443 = arith.addf %439, %442 : vector<1x16xf32>
    %c4_i32_85 = arith.constant 4 : i32
    %444 = arith.cmpi sgt, %1, %c4_i32_85 : i32
    %445 = arith.extui %444 : i1 to i32
    %446 = arith.sitofp %445 : i32 to f32
    %447 = vector.extract_strided_slice %52 {offsets = [4, 0], sizes = [1, 64], strides = [1, 1]} : vector<8x64xf32> to vector<1x64xf32>
    %cst_86 = arith.constant dense<0.000000e+00> : vector<1x64xf32>
    %448 = tpu.matmul %437, %333, %cst_86 {dimension_numbers = #tpu.dot_dimension_numbers<[1], [0], [0], [1], [0, 0, 1, 1], [], []>} : vector<1x16xf32>, vector<16x64xf32>, vector<1x64xf32> -> vector<1x64xf32>
    %449 = arith.addf %447, %448 : vector<1x64xf32>
    %450 = vector.extract_strided_slice %449 {offsets = [0, 0], sizes = [1, 48], strides = [1, 1]} : vector<1x64xf32> to vector<1x48xf32>
    %451 = arith.negf %450 : vector<1x48xf32>
    %452 = math.exp %451 : vector<1x48xf32>
    %cst_87 = arith.constant 1.000000e+00 : f32
    %453 = vector.broadcast %cst_87 : f32 to vector<1x48xf32>
    %454 = arith.addf %453, %452 : vector<1x48xf32>
    %455 = arith.divf %453, %454 : vector<1x48xf32>
    %456 = vector.extract_strided_slice %455 {offsets = [0, 0], sizes = [1, 16], strides = [1, 1]} : vector<1x48xf32> to vector<1x16xf32>
    %457 = vector.extract_strided_slice %455 {offsets = [0, 16], sizes = [1, 16], strides = [1, 1]} : vector<1x48xf32> to vector<1x16xf32>
    %458 = vector.extract_strided_slice %455 {offsets = [0, 32], sizes = [1, 16], strides = [1, 1]} : vector<1x48xf32> to vector<1x16xf32>
    %459 = vector.extract_strided_slice %449 {offsets = [0, 48], sizes = [1, 16], strides = [1, 1]} : vector<1x64xf32> to vector<1x16xf32>
    %460 = math.tanh %459 : vector<1x16xf32>
    %461 = arith.mulf %457, %443 : vector<1x16xf32>
    %462 = arith.mulf %456, %460 : vector<1x16xf32>
    %463 = arith.addf %461, %462 : vector<1x16xf32>
    %464 = math.tanh %463 : vector<1x16xf32>
    %465 = arith.mulf %458, %464 : vector<1x16xf32>
    %466 = vector.broadcast %446 : f32 to vector<1x16xf32>
    %467 = arith.mulf %466, %465 : vector<1x16xf32>
    %468 = vector.broadcast %446 : f32 to vector<1x16xf32>
    %469 = arith.mulf %468, %465 : vector<1x16xf32>
    %cst_88 = arith.constant 1.000000e+00 : f32
    %470 = arith.subf %cst_88, %446 : f32
    %471 = vector.broadcast %470 : f32 to vector<1x16xf32>
    %472 = arith.mulf %471, %437 : vector<1x16xf32>
    %473 = arith.addf %469, %472 : vector<1x16xf32>
    %474 = vector.broadcast %446 : f32 to vector<1x16xf32>
    %475 = arith.mulf %474, %463 : vector<1x16xf32>
    %cst_89 = arith.constant 1.000000e+00 : f32
    %476 = arith.subf %cst_89, %446 : f32
    %477 = vector.broadcast %476 : f32 to vector<1x16xf32>
    %478 = arith.mulf %477, %443 : vector<1x16xf32>
    %479 = arith.addf %475, %478 : vector<1x16xf32>
    %c3_i32_90 = arith.constant 3 : i32
    %480 = arith.cmpi sgt, %1, %c3_i32_90 : i32
    %481 = arith.extui %480 : i1 to i32
    %482 = arith.sitofp %481 : i32 to f32
    %483 = vector.extract_strided_slice %52 {offsets = [3, 0], sizes = [1, 64], strides = [1, 1]} : vector<8x64xf32> to vector<1x64xf32>
    %cst_91 = arith.constant dense<0.000000e+00> : vector<1x64xf32>
    %484 = tpu.matmul %473, %333, %cst_91 {dimension_numbers = #tpu.dot_dimension_numbers<[1], [0], [0], [1], [0, 0, 1, 1], [], []>} : vector<1x16xf32>, vector<16x64xf32>, vector<1x64xf32> -> vector<1x64xf32>
    %485 = arith.addf %483, %484 : vector<1x64xf32>
    %486 = vector.extract_strided_slice %485 {offsets = [0, 0], sizes = [1, 48], strides = [1, 1]} : vector<1x64xf32> to vector<1x48xf32>
    %487 = arith.negf %486 : vector<1x48xf32>
    %488 = math.exp %487 : vector<1x48xf32>
    %cst_92 = arith.constant 1.000000e+00 : f32
    %489 = vector.broadcast %cst_92 : f32 to vector<1x48xf32>
    %490 = arith.addf %489, %488 : vector<1x48xf32>
    %491 = arith.divf %489, %490 : vector<1x48xf32>
    %492 = vector.extract_strided_slice %491 {offsets = [0, 0], sizes = [1, 16], strides = [1, 1]} : vector<1x48xf32> to vector<1x16xf32>
    %493 = vector.extract_strided_slice %491 {offsets = [0, 16], sizes = [1, 16], strides = [1, 1]} : vector<1x48xf32> to vector<1x16xf32>
    %494 = vector.extract_strided_slice %491 {offsets = [0, 32], sizes = [1, 16], strides = [1, 1]} : vector<1x48xf32> to vector<1x16xf32>
    %495 = vector.extract_strided_slice %485 {offsets = [0, 48], sizes = [1, 16], strides = [1, 1]} : vector<1x64xf32> to vector<1x16xf32>
    %496 = math.tanh %495 : vector<1x16xf32>
    %497 = arith.mulf %493, %479 : vector<1x16xf32>
    %498 = arith.mulf %492, %496 : vector<1x16xf32>
    %499 = arith.addf %497, %498 : vector<1x16xf32>
    %500 = math.tanh %499 : vector<1x16xf32>
    %501 = arith.mulf %494, %500 : vector<1x16xf32>
    %502 = vector.broadcast %482 : f32 to vector<1x16xf32>
    %503 = arith.mulf %502, %501 : vector<1x16xf32>
    %504 = vector.broadcast %482 : f32 to vector<1x16xf32>
    %505 = arith.mulf %504, %501 : vector<1x16xf32>
    %cst_93 = arith.constant 1.000000e+00 : f32
    %506 = arith.subf %cst_93, %482 : f32
    %507 = vector.broadcast %506 : f32 to vector<1x16xf32>
    %508 = arith.mulf %507, %473 : vector<1x16xf32>
    %509 = arith.addf %505, %508 : vector<1x16xf32>
    %510 = vector.broadcast %482 : f32 to vector<1x16xf32>
    %511 = arith.mulf %510, %499 : vector<1x16xf32>
    %cst_94 = arith.constant 1.000000e+00 : f32
    %512 = arith.subf %cst_94, %482 : f32
    %513 = vector.broadcast %512 : f32 to vector<1x16xf32>
    %514 = arith.mulf %513, %479 : vector<1x16xf32>
    %515 = arith.addf %511, %514 : vector<1x16xf32>
    %c2_i32_95 = arith.constant 2 : i32
    %516 = arith.cmpi sgt, %1, %c2_i32_95 : i32
    %517 = arith.extui %516 : i1 to i32
    %518 = arith.sitofp %517 : i32 to f32
    %519 = vector.extract_strided_slice %52 {offsets = [2, 0], sizes = [1, 64], strides = [1, 1]} : vector<8x64xf32> to vector<1x64xf32>
    %cst_96 = arith.constant dense<0.000000e+00> : vector<1x64xf32>
    %520 = tpu.matmul %509, %333, %cst_96 {dimension_numbers = #tpu.dot_dimension_numbers<[1], [0], [0], [1], [0, 0, 1, 1], [], []>} : vector<1x16xf32>, vector<16x64xf32>, vector<1x64xf32> -> vector<1x64xf32>
    %521 = arith.addf %519, %520 : vector<1x64xf32>
    %522 = vector.extract_strided_slice %521 {offsets = [0, 0], sizes = [1, 48], strides = [1, 1]} : vector<1x64xf32> to vector<1x48xf32>
    %523 = arith.negf %522 : vector<1x48xf32>
    %524 = math.exp %523 : vector<1x48xf32>
    %cst_97 = arith.constant 1.000000e+00 : f32
    %525 = vector.broadcast %cst_97 : f32 to vector<1x48xf32>
    %526 = arith.addf %525, %524 : vector<1x48xf32>
    %527 = arith.divf %525, %526 : vector<1x48xf32>
    %528 = vector.extract_strided_slice %527 {offsets = [0, 0], sizes = [1, 16], strides = [1, 1]} : vector<1x48xf32> to vector<1x16xf32>
    %529 = vector.extract_strided_slice %527 {offsets = [0, 16], sizes = [1, 16], strides = [1, 1]} : vector<1x48xf32> to vector<1x16xf32>
    %530 = vector.extract_strided_slice %527 {offsets = [0, 32], sizes = [1, 16], strides = [1, 1]} : vector<1x48xf32> to vector<1x16xf32>
    %531 = vector.extract_strided_slice %521 {offsets = [0, 48], sizes = [1, 16], strides = [1, 1]} : vector<1x64xf32> to vector<1x16xf32>
    %532 = math.tanh %531 : vector<1x16xf32>
    %533 = arith.mulf %529, %515 : vector<1x16xf32>
    %534 = arith.mulf %528, %532 : vector<1x16xf32>
    %535 = arith.addf %533, %534 : vector<1x16xf32>
    %536 = math.tanh %535 : vector<1x16xf32>
    %537 = arith.mulf %530, %536 : vector<1x16xf32>
    %538 = vector.broadcast %518 : f32 to vector<1x16xf32>
    %539 = arith.mulf %538, %537 : vector<1x16xf32>
    %540 = vector.broadcast %518 : f32 to vector<1x16xf32>
    %541 = arith.mulf %540, %537 : vector<1x16xf32>
    %cst_98 = arith.constant 1.000000e+00 : f32
    %542 = arith.subf %cst_98, %518 : f32
    %543 = vector.broadcast %542 : f32 to vector<1x16xf32>
    %544 = arith.mulf %543, %509 : vector<1x16xf32>
    %545 = arith.addf %541, %544 : vector<1x16xf32>
    %546 = vector.broadcast %518 : f32 to vector<1x16xf32>
    %547 = arith.mulf %546, %535 : vector<1x16xf32>
    %cst_99 = arith.constant 1.000000e+00 : f32
    %548 = arith.subf %cst_99, %518 : f32
    %549 = vector.broadcast %548 : f32 to vector<1x16xf32>
    %550 = arith.mulf %549, %515 : vector<1x16xf32>
    %551 = arith.addf %547, %550 : vector<1x16xf32>
    %c1_i32_100 = arith.constant 1 : i32
    %552 = arith.cmpi sgt, %1, %c1_i32_100 : i32
    %553 = arith.extui %552 : i1 to i32
    %554 = arith.sitofp %553 : i32 to f32
    %555 = vector.extract_strided_slice %52 {offsets = [1, 0], sizes = [1, 64], strides = [1, 1]} : vector<8x64xf32> to vector<1x64xf32>
    %cst_101 = arith.constant dense<0.000000e+00> : vector<1x64xf32>
    %556 = tpu.matmul %545, %333, %cst_101 {dimension_numbers = #tpu.dot_dimension_numbers<[1], [0], [0], [1], [0, 0, 1, 1], [], []>} : vector<1x16xf32>, vector<16x64xf32>, vector<1x64xf32> -> vector<1x64xf32>
    %557 = arith.addf %555, %556 : vector<1x64xf32>
    %558 = vector.extract_strided_slice %557 {offsets = [0, 0], sizes = [1, 48], strides = [1, 1]} : vector<1x64xf32> to vector<1x48xf32>
    %559 = arith.negf %558 : vector<1x48xf32>
    %560 = math.exp %559 : vector<1x48xf32>
    %cst_102 = arith.constant 1.000000e+00 : f32
    %561 = vector.broadcast %cst_102 : f32 to vector<1x48xf32>
    %562 = arith.addf %561, %560 : vector<1x48xf32>
    %563 = arith.divf %561, %562 : vector<1x48xf32>
    %564 = vector.extract_strided_slice %563 {offsets = [0, 0], sizes = [1, 16], strides = [1, 1]} : vector<1x48xf32> to vector<1x16xf32>
    %565 = vector.extract_strided_slice %563 {offsets = [0, 16], sizes = [1, 16], strides = [1, 1]} : vector<1x48xf32> to vector<1x16xf32>
    %566 = vector.extract_strided_slice %563 {offsets = [0, 32], sizes = [1, 16], strides = [1, 1]} : vector<1x48xf32> to vector<1x16xf32>
    %567 = vector.extract_strided_slice %557 {offsets = [0, 48], sizes = [1, 16], strides = [1, 1]} : vector<1x64xf32> to vector<1x16xf32>
    %568 = math.tanh %567 : vector<1x16xf32>
    %569 = arith.mulf %565, %551 : vector<1x16xf32>
    %570 = arith.mulf %564, %568 : vector<1x16xf32>
    %571 = arith.addf %569, %570 : vector<1x16xf32>
    %572 = math.tanh %571 : vector<1x16xf32>
    %573 = arith.mulf %566, %572 : vector<1x16xf32>
    %574 = vector.broadcast %554 : f32 to vector<1x16xf32>
    %575 = arith.mulf %574, %573 : vector<1x16xf32>
    %576 = vector.broadcast %554 : f32 to vector<1x16xf32>
    %577 = arith.mulf %576, %573 : vector<1x16xf32>
    %cst_103 = arith.constant 1.000000e+00 : f32
    %578 = arith.subf %cst_103, %554 : f32
    %579 = vector.broadcast %578 : f32 to vector<1x16xf32>
    %580 = arith.mulf %579, %545 : vector<1x16xf32>
    %581 = arith.addf %577, %580 : vector<1x16xf32>
    %582 = vector.broadcast %554 : f32 to vector<1x16xf32>
    %583 = arith.mulf %582, %571 : vector<1x16xf32>
    %cst_104 = arith.constant 1.000000e+00 : f32
    %584 = arith.subf %cst_104, %554 : f32
    %585 = vector.broadcast %584 : f32 to vector<1x16xf32>
    %586 = arith.mulf %585, %551 : vector<1x16xf32>
    %587 = arith.addf %583, %586 : vector<1x16xf32>
    %c0_i32_105 = arith.constant 0 : i32
    %588 = arith.cmpi sgt, %1, %c0_i32_105 : i32
    %589 = arith.extui %588 : i1 to i32
    %590 = arith.sitofp %589 : i32 to f32
    %591 = vector.extract_strided_slice %52 {offsets = [0, 0], sizes = [1, 64], strides = [1, 1]} : vector<8x64xf32> to vector<1x64xf32>
    %cst_106 = arith.constant dense<0.000000e+00> : vector<1x64xf32>
    %592 = tpu.matmul %581, %333, %cst_106 {dimension_numbers = #tpu.dot_dimension_numbers<[1], [0], [0], [1], [0, 0, 1, 1], [], []>} : vector<1x16xf32>, vector<16x64xf32>, vector<1x64xf32> -> vector<1x64xf32>
    %593 = arith.addf %591, %592 : vector<1x64xf32>
    %594 = vector.extract_strided_slice %593 {offsets = [0, 0], sizes = [1, 48], strides = [1, 1]} : vector<1x64xf32> to vector<1x48xf32>
    %595 = arith.negf %594 : vector<1x48xf32>
    %596 = math.exp %595 : vector<1x48xf32>
    %cst_107 = arith.constant 1.000000e+00 : f32
    %597 = vector.broadcast %cst_107 : f32 to vector<1x48xf32>
    %598 = arith.addf %597, %596 : vector<1x48xf32>
    %599 = arith.divf %597, %598 : vector<1x48xf32>
    %600 = vector.extract_strided_slice %599 {offsets = [0, 0], sizes = [1, 16], strides = [1, 1]} : vector<1x48xf32> to vector<1x16xf32>
    %601 = vector.extract_strided_slice %599 {offsets = [0, 16], sizes = [1, 16], strides = [1, 1]} : vector<1x48xf32> to vector<1x16xf32>
    %602 = vector.extract_strided_slice %599 {offsets = [0, 32], sizes = [1, 16], strides = [1, 1]} : vector<1x48xf32> to vector<1x16xf32>
    %603 = vector.extract_strided_slice %593 {offsets = [0, 48], sizes = [1, 16], strides = [1, 1]} : vector<1x64xf32> to vector<1x16xf32>
    %604 = math.tanh %603 : vector<1x16xf32>
    %605 = arith.mulf %601, %587 : vector<1x16xf32>
    %606 = arith.mulf %600, %604 : vector<1x16xf32>
    %607 = arith.addf %605, %606 : vector<1x16xf32>
    %608 = math.tanh %607 : vector<1x16xf32>
    %609 = arith.mulf %602, %608 : vector<1x16xf32>
    %610 = vector.broadcast %590 : f32 to vector<1x16xf32>
    %611 = arith.mulf %610, %609 : vector<1x16xf32>
    %612 = tpu.concatenate %611, %575, %539, %503, %467, %431, %395, %359 in 0 : vector<1x16xf32>, vector<1x16xf32>, vector<1x16xf32>, vector<1x16xf32>, vector<1x16xf32>, vector<1x16xf32>, vector<1x16xf32>, vector<1x16xf32> -> vector<8x16xf32>
    %613 = tpu.concatenate %332, %612 in 1 : vector<8x16xf32>, vector<8x16xf32> -> vector<8x32xf32>
    %c0_108 = arith.constant 0 : index
    %c0_109 = arith.constant 0 : index
    %614 = vector.load %arg14[%c0_108, %c0_109] : memref<32x32xf32, #tpu.memory_space<vmem>>, vector<32x32xf32>
    %cst_110 = arith.constant dense<0.000000e+00> : vector<8x32xf32>
    %615 = tpu.matmul %613, %614, %cst_110 {dimension_numbers = #tpu.dot_dimension_numbers<[1], [0], [0], [1], [0, 0, 1, 1], [], []>} : vector<8x32xf32>, vector<32x32xf32>, vector<8x32xf32> -> vector<8x32xf32>
    %c0_111 = arith.constant 0 : index
    %c0_112 = arith.constant 0 : index
    %616 = vector.load %arg15[%c0_111, %c0_112] : memref<1x32xf32, #tpu.memory_space<vmem>>, vector<1x32xf32>
    %617 = vector.broadcast %616 : vector<1x32xf32> to vector<8x32xf32>
    %618 = arith.addf %615, %617 : vector<8x32xf32>
    %c0_113 = arith.constant 0 : index
    %c0_114 = arith.constant 0 : index
    %619 = vector.load %arg16[%c0_113, %c0_114] : memref<32x32xf32, #tpu.memory_space<vmem>>, vector<32x32xf32>
    %cst_115 = arith.constant dense<0.000000e+00> : vector<8x32xf32>
    %620 = tpu.matmul %618, %619, %cst_115 {dimension_numbers = #tpu.dot_dimension_numbers<[1], [0], [0], [1], [0, 0, 1, 1], [], []>} : vector<8x32xf32>, vector<32x32xf32>, vector<8x32xf32> -> vector<8x32xf32>
    %c0_116 = arith.constant 0 : index
    %c0_117 = arith.constant 0 : index
    %621 = vector.load %arg17[%c0_116, %c0_117] : memref<1x32xf32, #tpu.memory_space<vmem>>, vector<1x32xf32>
    %622 = vector.broadcast %621 : vector<1x32xf32> to vector<8x32xf32>
    %623 = arith.addf %620, %622 : vector<8x32xf32>
    %cst_118 = arith.constant dense<0.000000e+00> : vector<8xf32>
    %624 = vector.multi_reduction <add>, %623, %cst_118 [1] : vector<8x32xf32> to vector<8xf32>
    %625 = vector.shape_cast %624 : vector<8xf32> to vector<8x1xf32>
    %cst_119 = arith.constant 3.200000e+01 : f32
    %626 = vector.broadcast %cst_119 : f32 to vector<8x1xf32>
    %627 = arith.divf %625, %626 : vector<8x1xf32>
    %628 = vector.broadcast %627 : vector<8x1xf32> to vector<8x32xf32>
    %629 = arith.subf %623, %628 : vector<8x32xf32>
    %630 = arith.mulf %629, %629 : vector<8x32xf32>
    %cst_120 = arith.constant dense<0.000000e+00> : vector<8xf32>
    %631 = vector.multi_reduction <add>, %630, %cst_120 [1] : vector<8x32xf32> to vector<8xf32>
    %632 = vector.shape_cast %631 : vector<8xf32> to vector<8x1xf32>
    %cst_121 = arith.constant 3.200000e+01 : f32
    %633 = vector.broadcast %cst_121 : f32 to vector<8x1xf32>
    %634 = arith.divf %632, %633 : vector<8x1xf32>
    %635 = vector.broadcast %627 : vector<8x1xf32> to vector<8x32xf32>
    %636 = arith.subf %623, %635 : vector<8x32xf32>
    %cst_122 = arith.constant 9.99999974E-6 : f32
    %637 = vector.broadcast %cst_122 : f32 to vector<8x1xf32>
    %638 = arith.addf %634, %637 : vector<8x1xf32>
    %639 = math.rsqrt %638 : vector<8x1xf32>
    %640 = vector.broadcast %639 : vector<8x1xf32> to vector<8x32xf32>
    %641 = arith.mulf %636, %640 : vector<8x32xf32>
    %c0_123 = arith.constant 0 : index
    %c0_124 = arith.constant 0 : index
    %642 = vector.load %arg18[%c0_123, %c0_124] : memref<1x32xf32, #tpu.memory_space<vmem>>, vector<1x32xf32>
    %643 = vector.broadcast %642 : vector<1x32xf32> to vector<8x32xf32>
    %644 = arith.mulf %641, %643 : vector<8x32xf32>
    %c0_125 = arith.constant 0 : index
    %c0_126 = arith.constant 0 : index
    %645 = vector.load %arg19[%c0_125, %c0_126] : memref<1x32xf32, #tpu.memory_space<vmem>>, vector<1x32xf32>
    %646 = vector.broadcast %645 : vector<1x32xf32> to vector<8x32xf32>
    %647 = arith.addf %644, %646 : vector<8x32xf32>
    %cst_127 = arith.constant 0.000000e+00 : f32
    %648 = vector.broadcast %cst_127 : f32 to vector<8x32xf32>
    %649 = arith.maximumf %647, %648 : vector<8x32xf32>
    %c0_128 = arith.constant 0 : index
    %c0_129 = arith.constant 0 : index
    %650 = vector.load %arg20[%c0_128, %c0_129] : memref<32x32xf32, #tpu.memory_space<vmem>>, vector<32x32xf32>
    %cst_130 = arith.constant dense<0.000000e+00> : vector<8x32xf32>
    %651 = tpu.matmul %649, %650, %cst_130 {dimension_numbers = #tpu.dot_dimension_numbers<[1], [0], [0], [1], [0, 0, 1, 1], [], []>} : vector<8x32xf32>, vector<32x32xf32>, vector<8x32xf32> -> vector<8x32xf32>
    %c0_131 = arith.constant 0 : index
    %c0_132 = arith.constant 0 : index
    %652 = vector.load %arg21[%c0_131, %c0_132] : memref<1x32xf32, #tpu.memory_space<vmem>>, vector<1x32xf32>
    %653 = vector.broadcast %652 : vector<1x32xf32> to vector<8x32xf32>
    %654 = arith.addf %651, %653 : vector<8x32xf32>
    %c0_133 = arith.constant 0 : index
    %c0_134 = arith.constant 0 : index
    %655 = vector.load %arg22[%c0_133, %c0_134] : memref<32x5xf32, #tpu.memory_space<vmem>>, vector<32x5xf32>
    %cst_135 = arith.constant dense<0.000000e+00> : vector<8x5xf32>
    %656 = tpu.matmul %654, %655, %cst_135 {dimension_numbers = #tpu.dot_dimension_numbers<[1], [0], [0], [1], [0, 0, 1, 1], [], []>} : vector<8x32xf32>, vector<32x5xf32>, vector<8x5xf32> -> vector<8x5xf32>
    %c0_136 = arith.constant 0 : index
    %c0_137 = arith.constant 0 : index
    %657 = vector.load %arg23[%c0_136, %c0_137] : memref<1x5xf32, #tpu.memory_space<vmem>>, vector<1x5xf32>
    %658 = vector.broadcast %657 : vector<1x5xf32> to vector<8x5xf32>
    %659 = arith.addf %656, %658 : vector<8x5xf32>
    %c0_138 = arith.constant 0 : index
    %c0_139 = arith.constant 0 : index
    %c0_140 = arith.constant 0 : index
    %660 = vector.load %arg24[%c0_138, %c0_139, %c0_140] : memref<1x8x32xf32, #tpu.memory_space<vmem>>, vector<1x8x32xf32>
    %661 = vector.shape_cast %660 : vector<1x8x32xf32> to vector<8x32xf32>
    %662 = vector.shape_cast %618 : vector<8x32xf32> to vector<1x8x32xf32>
    tpu.vector_store %arg24[%c0_138, %c0_139, %c0_140], %662 {strides = array<i32>} : memref<1x8x32xf32, #tpu.memory_space<vmem>>, vector<1x8x32xf32>,
    %c0_141 = arith.constant 0 : index
    %c0_142 = arith.constant 0 : index
    %c0_143 = arith.constant 0 : index
    %663 = vector.load %arg25[%c0_141, %c0_142, %c0_143] : memref<1x8x32xf32, #tpu.memory_space<vmem>>, vector<1x8x32xf32>
    %664 = vector.shape_cast %663 : vector<1x8x32xf32> to vector<8x32xf32>
    %665 = vector.shape_cast %654 : vector<8x32xf32> to vector<1x8x32xf32>
    tpu.vector_store %arg25[%c0_141, %c0_142, %c0_143], %665 {strides = array<i32>} : memref<1x8x32xf32, #tpu.memory_space<vmem>>, vector<1x8x32xf32>,
    %c0_144 = arith.constant 0 : index
    %c0_145 = arith.constant 0 : index
    %c0_146 = arith.constant 0 : index
    %666 = vector.load %arg26[%c0_144, %c0_145, %c0_146] : memref<1x8x5xf32, #tpu.memory_space<vmem>>, vector<1x8x5xf32>
    %667 = vector.shape_cast %666 : vector<1x8x5xf32> to vector<8x5xf32>
    %668 = vector.shape_cast %659 : vector<8x5xf32> to vector<1x8x5xf32>
    tpu.vector_store %arg26[%c0_144, %c0_145, %c0_146], %668 {strides = array<i32>} : memref<1x8x5xf32, #tpu.memory_space<vmem>>, vector<1x8x5xf32>,
    return
  }
  func.func @transform_0(%arg0: i32, %arg1: memref<2xi32, #tpu.memory_space<smem>>, %arg2: memref<2xi32, #tpu.memory_space<smem>>) -> (i32, i32, i32) {
    %c0_i32 = arith.constant 0 : i32
    %c0_i32_0 = arith.constant 0 : i32
    %c0_i32_1 = arith.constant 0 : i32
    return %arg0, %c0_i32, %c0_i32_0 : i32, i32, i32
  }
  func.func @transform_1(%arg0: i32, %arg1: memref<2xi32, #tpu.memory_space<smem>>, %arg2: memref<2xi32, #tpu.memory_space<smem>>) -> (i32, i32, i32) {
    %0 = arith.index_cast %arg0 : i32 to index
    %1 = memref.load %arg1[%0] : memref<2xi32, #tpu.memory_space<smem>>
    %c0_i32 = arith.constant 0 : i32
    %c0_i32_0 = arith.constant 0 : i32
    %c0_i32_1 = arith.constant 0 : i32
    return %1, %c0_i32, %c0_i32_0 : i32, i32, i32
  }
  func.func @transform_2(%arg0: i32, %arg1: memref<2xi32, #tpu.memory_space<smem>>, %arg2: memref<2xi32, #tpu.memory_space<smem>>) -> (i32, i32, i32) {
    %0 = arith.index_cast %arg0 : i32 to index
    %1 = memref.load %arg1[%0] : memref<2xi32, #tpu.memory_space<smem>>
    %c0_i32 = arith.constant 0 : i32
    %c0_i32_0 = arith.constant 0 : i32
    %c0_i32_1 = arith.constant 0 : i32
    return %1, %c0_i32, %c0_i32_0 : i32, i32, i32
  }
  func.func @transform_3(%arg0: i32, %arg1: memref<2xi32, #tpu.memory_space<smem>>, %arg2: memref<2xi32, #tpu.memory_space<smem>>) -> (i32, i32, i32) {
    %0 = arith.index_cast %arg0 : i32 to index
    %1 = memref.load %arg1[%0] : memref<2xi32, #tpu.memory_space<smem>>
    %c0_i32 = arith.constant 0 : i32
    %c0_i32_0 = arith.constant 0 : i32
    %c0_i32_1 = arith.constant 0 : i32
    return %1, %c0_i32, %c0_i32_0 : i32, i32, i32
  }
  func.func @transform_4(%arg0: i32, %arg1: memref<2xi32, #tpu.memory_space<smem>>, %arg2: memref<2xi32, #tpu.memory_space<smem>>) -> (i32, i32, i32) {
    %0 = arith.index_cast %arg0 : i32 to index
    %1 = memref.load %arg1[%0] : memref<2xi32, #tpu.memory_space<smem>>
    %c0_i32 = arith.constant 0 : i32
    %c0_i32_0 = arith.constant 0 : i32
    %c0_i32_1 = arith.constant 0 : i32
    return %1, %c0_i32, %c0_i32_0 : i32, i32, i32
  }
  func.func @transform_5(%arg0: i32, %arg1: memref<2xi32, #tpu.memory_space<smem>>, %arg2: memref<2xi32, #tpu.memory_space<smem>>) -> (i32, i32, i32) {
    %0 = arith.index_cast %arg0 : i32 to index
    %1 = memref.load %arg1[%0] : memref<2xi32, #tpu.memory_space<smem>>
    %c0_i32 = arith.constant 0 : i32
    %c0_i32_0 = arith.constant 0 : i32
    %c0_i32_1 = arith.constant 0 : i32
    return %1, %c0_i32, %c0_i32_0 : i32, i32, i32
  }
  func.func @transform_6(%arg0: i32, %arg1: memref<2xi32, #tpu.memory_space<smem>>, %arg2: memref<2xi32, #tpu.memory_space<smem>>) -> (i32, i32, i32) {
    %0 = arith.index_cast %arg0 : i32 to index
    %1 = memref.load %arg1[%0] : memref<2xi32, #tpu.memory_space<smem>>
    %c0_i32 = arith.constant 0 : i32
    %c0_i32_0 = arith.constant 0 : i32
    %c0_i32_1 = arith.constant 0 : i32
    return %1, %c0_i32, %c0_i32_0 : i32, i32, i32
  }
  func.func @transform_7(%arg0: i32, %arg1: memref<2xi32, #tpu.memory_space<smem>>, %arg2: memref<2xi32, #tpu.memory_space<smem>>) -> (i32, i32) {
    %c0_i32 = arith.constant 0 : i32
    %c0_i32_0 = arith.constant 0 : i32
    %c0_i32_1 = arith.constant 0 : i32
    return %c0_i32, %c0_i32_0 : i32, i32
  }
  func.func @transform_8(%arg0: i32, %arg1: memref<2xi32, #tpu.memory_space<smem>>, %arg2: memref<2xi32, #tpu.memory_space<smem>>) -> (i32, i32) {
    %c0_i32 = arith.constant 0 : i32
    %c0_i32_0 = arith.constant 0 : i32
    %c0_i32_1 = arith.constant 0 : i32
    return %c0_i32, %c0_i32_0 : i32, i32
  }
  func.func @transform_9(%arg0: i32, %arg1: memref<2xi32, #tpu.memory_space<smem>>, %arg2: memref<2xi32, #tpu.memory_space<smem>>) -> (i32, i32) {
    %c0_i32 = arith.constant 0 : i32
    %c0_i32_0 = arith.constant 0 : i32
    %c0_i32_1 = arith.constant 0 : i32
    return %c0_i32, %c0_i32_0 : i32, i32
  }
  func.func @transform_10(%arg0: i32, %arg1: memref<2xi32, #tpu.memory_space<smem>>, %arg2: memref<2xi32, #tpu.memory_space<smem>>) -> (i32, i32) {
    %c0_i32 = arith.constant 0 : i32
    %c0_i32_0 = arith.constant 0 : i32
    %c0_i32_1 = arith.constant 0 : i32
    return %c0_i32, %c0_i32_0 : i32, i32
  }
  func.func @transform_11(%arg0: i32, %arg1: memref<2xi32, #tpu.memory_space<smem>>, %arg2: memref<2xi32, #tpu.memory_space<smem>>) -> (i32, i32) {
    %c0_i32 = arith.constant 0 : i32
    %c0_i32_0 = arith.constant 0 : i32
    %c0_i32_1 = arith.constant 0 : i32
    return %c0_i32, %c0_i32_0 : i32, i32
  }
  func.func @transform_12(%arg0: i32, %arg1: memref<2xi32, #tpu.memory_space<smem>>, %arg2: memref<2xi32, #tpu.memory_space<smem>>) -> (i32, i32) {
    %c0_i32 = arith.constant 0 : i32
    %c0_i32_0 = arith.constant 0 : i32
    %c0_i32_1 = arith.constant 0 : i32
    return %c0_i32, %c0_i32_0 : i32, i32
  }
  func.func @transform_13(%arg0: i32, %arg1: memref<2xi32, #tpu.memory_space<smem>>, %arg2: memref<2xi32, #tpu.memory_space<smem>>) -> (i32, i32) {
    %c0_i32 = arith.constant 0 : i32
    %c0_i32_0 = arith.constant 0 : i32
    %c0_i32_1 = arith.constant 0 : i32
    return %c0_i32, %c0_i32_0 : i32, i32
  }
  func.func @transform_14(%arg0: i32, %arg1: memref<2xi32, #tpu.memory_space<smem>>, %arg2: memref<2xi32, #tpu.memory_space<smem>>) -> (i32, i32) {
    %c0_i32 = arith.constant 0 : i32
    %c0_i32_0 = arith.constant 0 : i32
    %c0_i32_1 = arith.constant 0 : i32
    return %c0_i32, %c0_i32_0 : i32, i32
  }
  func.func @transform_15(%arg0: i32, %arg1: memref<2xi32, #tpu.memory_space<smem>>, %arg2: memref<2xi32, #tpu.memory_space<smem>>) -> (i32, i32) {
    %c0_i32 = arith.constant 0 : i32
    %c0_i32_0 = arith.constant 0 : i32
    %c0_i32_1 = arith.constant 0 : i32
    return %c0_i32, %c0_i32_0 : i32, i32
  }
  func.func @transform_16(%arg0: i32, %arg1: memref<2xi32, #tpu.memory_space<smem>>, %arg2: memref<2xi32, #tpu.memory_space<smem>>) -> (i32, i32) {
    %c0_i32 = arith.constant 0 : i32
    %c0_i32_0 = arith.constant 0 : i32
    %c0_i32_1 = arith.constant 0 : i32
    return %c0_i32, %c0_i32_0 : i32, i32
  }
  func.func @transform_17(%arg0: i32, %arg1: memref<2xi32, #tpu.memory_space<smem>>, %arg2: memref<2xi32, #tpu.memory_space<smem>>) -> (i32, i32) {
    %c0_i32 = arith.constant 0 : i32
    %c0_i32_0 = arith.constant 0 : i32
    %c0_i32_1 = arith.constant 0 : i32
    return %c0_i32, %c0_i32_0 : i32, i32
  }
  func.func @transform_18(%arg0: i32, %arg1: memref<2xi32, #tpu.memory_space<smem>>, %arg2: memref<2xi32, #tpu.memory_space<smem>>) -> (i32, i32) {
    %c0_i32 = arith.constant 0 : i32
    %c0_i32_0 = arith.constant 0 : i32
    %c0_i32_1 = arith.constant 0 : i32
    return %c0_i32, %c0_i32_0 : i32, i32
  }
  func.func @transform_19(%arg0: i32, %arg1: memref<2xi32, #tpu.memory_space<smem>>, %arg2: memref<2xi32, #tpu.memory_space<smem>>) -> (i32, i32) {
    %c0_i32 = arith.constant 0 : i32
    %c0_i32_0 = arith.constant 0 : i32
    %c0_i32_1 = arith.constant 0 : i32
    return %c0_i32, %c0_i32_0 : i32, i32
  }
  func.func @transform_20(%arg0: i32, %arg1: memref<2xi32, #tpu.memory_space<smem>>, %arg2: memref<2xi32, #tpu.memory_space<smem>>) -> (i32, i32) {
    %c0_i32 = arith.constant 0 : i32
    %c0_i32_0 = arith.constant 0 : i32
    %c0_i32_1 = arith.constant 0 : i32
    return %c0_i32, %c0_i32_0 : i32, i32
  }
  func.func @transform_21(%arg0: i32, %arg1: memref<2xi32, #tpu.memory_space<smem>>, %arg2: memref<2xi32, #tpu.memory_space<smem>>) -> (i32, i32, i32) {
    %c0_i32 = arith.constant 0 : i32
    %c0_i32_0 = arith.constant 0 : i32
    %c0_i32_1 = arith.constant 0 : i32
    return %arg0, %c0_i32, %c0_i32_0 : i32, i32, i32
  }
  func.func @transform_22(%arg0: i32, %arg1: memref<2xi32, #tpu.memory_space<smem>>, %arg2: memref<2xi32, #tpu.memory_space<smem>>) -> (i32, i32, i32) {
    %c0_i32 = arith.constant 0 : i32
    %c0_i32_0 = arith.constant 0 : i32
    %c0_i32_1 = arith.constant 0 : i32
    return %arg0, %c0_i32, %c0_i32_0 : i32, i32, i32
  }
  func.func @transform_23(%arg0: i32, %arg1: memref<2xi32, #tpu.memory_space<smem>>, %arg2: memref<2xi32, #tpu.memory_space<smem>>) -> (i32, i32, i32) {
    %c0_i32 = arith.constant 0 : i32
    %c0_i32_0 = arith.constant 0 : i32
    %c0_i32_1 = arith.constant 0 : i32
    return %arg0, %c0_i32, %c0_i32_0 : i32, i32, i32
  }
}

</mosaic_0001>

<bundles_post_ra>
// kernel: tpu_custom_call.1
= control target key start
LH: loop header
LB: loop body
LE: loop exit
PB: predicated region body
PF: predicated region fallthrough
CT: control target
= control target key end

     0   :  { %s5662_s29 = smov [#allocation3]   ;;  %s5663_s30 = smov [#allocation4]   ;;  %s7218_s0 = inlined_call_operand.hbm [shape: s32[2], index: 0, kind: input, shape index: {}]   ;;  %s7219_s2 = inlined_call_operand.hbm [shape: f32[2,8,32], index: 2, kind: input, shape index: {}]   ;;  %s7220_s3 = inlined_call_operand.hbm [shape: f32[5,32,32], index: 3, kind: input, shape index: {}]   ;;  %s7221_s4 = inlined_call_operand.hbm [shape: f32[5,1,32], index: 4, kind: input, shape index: {}]   ;;  %s7222_s5 = inlined_call_operand.hbm [shape: f32[5,1,32], index: 5, kind: input, shape index: {}]   ;;  %s7223_s6 = inlined_call_operand.hbm [shape: f32[5,1,32], index: 6, kind: input, shape index: {}]   ;;  %s7224_s7 = inlined_call_operand.hbm [shape: f32[5,32,32], index: 7, kind: input, shape index: {}]   ;;  %s7225_s8 = inlined_call_operand.hbm [shape: f32[5,1,32], index: 8, kind: input, shape index: {}]   ;;  %s7226_s9 = inlined_call_operand.vmem [shape: f32[32,128], index: 9, kind: input, shape index: {}]   ;;  %s7227_s10 = inlined_call_operand.hbm [shape: f32[1,128], index: 10, kind: input, shape index: {}]   ;;  %s7228_s11 = inlined_call_operand.hbm [shape: f32[16,64], index: 11, kind: input, shape index: {}]   ;;  %s7229_s12 = inlined_call_operand.hbm [shape: f32[16,64], index: 12, kind: input, shape index: {}]   ;;  %s7230_s13 = inlined_call_operand.hbm [shape: f32[32,32], index: 13, kind: input, shape index: {}]   ;;  %s7231_s14 = inlined_call_operand.hbm [shape: f32[1,32], index: 14, kind: input, shape index: {}]   ;;  %s7232_s15 = inlined_call_operand.vmem [shape: f32[32,32], index: 15, kind: input, shape index: {}]   ;;  %s7233_s16 = inlined_call_operand.hbm [shape: f32[1,32], index: 16, kind: input, shape index: {}]   ;;  %s7234_s17 = inlined_call_operand.hbm [shape: f32[1,32], index: 17, kind: input, shape index: {}]   ;;  %s7235_s18 = inlined_call_operand.hbm [shape: f32[1,32], index: 18, kind: input, shape index: {}]   ;;  %s7236_s19 = inlined_call_operand.hbm [shape: f32[32,32], index: 19, kind: input, shape index: {}]   ;;  %s7237_s20 = inlined_call_operand.vmem [shape: f32[1,32], index: 20, kind: input, shape index: {}]   ;;  %s7238_s21 = inlined_call_operand.vmem [shape: f32[32,5], index: 21, kind: input, shape index: {}]   ;;  %s7239_s22 = inlined_call_operand.vmem [shape: f32[1,5], index: 22, kind: input, shape index: {}]   ;;  %s7240_s23 = inlined_call_operand.hbm [shape: f32[2,8,32], index: 23, kind: output, shape index: {0}]   ;;  %s7241_s24 = inlined_call_operand.hbm [shape: f32[2,8,32], index: 24, kind: output, shape index: {1}]   ;;  %s7242_s25 = inlined_call_operand.vmem [shape: f32[2,8,5], index: 25, kind: output, shape index: {2}]   ;;  %s7243_s1 = inlined_call_operand.hbm [shape: s32[2], index: 1, kind: input, shape index: {}]  }
   0x1   :  { %7310 = sst [smem:[#allocation86_spill]] %s7218_s0 }
   0x2   :  { %7311 = sst [smem:[#allocation87_spill]] %s7219_s2 }
   0x3   :  { %7312 = sst [smem:[#allocation88_spill]] %s7220_s3 }
   0x4   :  { %7313 = sst [smem:[#allocation89_spill]] %s7221_s4 }
   0x5   :  { %7314 = sst [smem:[#allocation90_spill]] %s7222_s5 }
   0x6   :  { %7315 = sst [smem:[#allocation91_spill]] %s7223_s6 }
   0x7   :  { %7316 = sst [smem:[#allocation92_spill]] %s7224_s7 }
   0x8   :  { %7317 = sst [smem:[#allocation93_spill]] %s7225_s8 }
   0x9   :  { %7318 = sst [smem:[#allocation94_spill]] %s7226_s9 }
   0xa   :  { %7319 = sst [smem:[#allocation95_spill]] %s7227_s10 }
   0xb   :  { %7320 = sst [smem:[#allocation96_spill]] %s7228_s11 }
   0xc   :  { %7321 = sst [smem:[#allocation97_spill]] %s7229_s12 }
   0xd   :  { %7322 = sst [smem:[#allocation98_spill]] %s7230_s13 }
   0xe   :  { %7323 = sst [smem:[#allocation99_spill]] %s7231_s14 }
   0xf   :  { %7324 = sst [smem:[#allocation100_spill]] %s7232_s15 }
  0x10   :  { %7325 = sst [smem:[#allocation101_spill]] %s7233_s16 }
  0x11   :  { %7326 = sst [smem:[#allocation102_spill]] %s7234_s17 }
  0x12   :  { %7327 = sst [smem:[#allocation103_spill]] %s7235_s18 }
  0x13   :  { %7328 = sst [smem:[#allocation104_spill]] %s7236_s19 }
  0x14   :  { %7329 = sst [smem:[#allocation105_spill]] %s7237_s20 }
  0x15   :  { %7330 = sst [smem:[#allocation106_spill]] %s7238_s21 }
  0x16   :  { %7331 = sst [smem:[#allocation107_spill]] %s7239_s22 }
  0x17   :  { %7332 = sst [smem:[#allocation108_spill]] %s7240_s23 }
  0x18   :  { %7333 = sst [smem:[#allocation109_spill]] %s7241_s24 }
  0x19   :  { %7334 = sst [smem:[#allocation110_spill]] %s7242_s25 }
  0x1a   :  { %s7335_s20 = sld [smem:[#allocation86_spill]] }
  0x20   :  { %32 = dma.hbm_to_smem %s7335_s20, 16, %s5662_s29, [#allocation2] }
  0x21   :  { %34 = dma.hbm_to_smem %s7243_s1, 16, %s5663_s30, [#allocation2] }
  0x22   :  { %5516 = dma.done.wait [#allocation2], 32 }
  0x23   :  { %5517 = vsyncadd [#allocation2], 4294967264 }
  0x24   :  { %36 = sfence }
  0x25   :  { %37 = vsyncpa [#allocation6], 0 }
  0x26   :  { %39 = vsyncpa [#allocation6 + $0x1], 0 }
  0x27   :  { %40 = vsyncpa [#allocation9], 0 }
  0x28   :  { %42 = vsyncpa [#allocation9 + $0x1], 0 }
  0x29   :  { %43 = vsyncpa [#allocation12], 0 }
  0x2a   :  { %45 = vsyncpa [#allocation12 + $0x1], 0 }
  0x2b   :  { %46 = vsyncpa [#allocation15], 0 }
  0x2c   :  { %48 = vsyncpa [#allocation15 + $0x1], 0 }
  0x2d   :  { %49 = vsyncpa [#allocation18], 0 }
  0x2e   :  { %50 = vsyncpa [#allocation21], 0 }
  0x2f   :  { %51 = vsyncpa [#allocation24], 0 }
  0x30   :  { %52 = vsyncpa [#allocation27], 0 }
  0x31   :  { %53 = vsyncpa [#allocation30], 0 }
  0x32   :  { %54 = vsyncpa [#allocation7], 0 }
  0x33   :  { %56 = vsyncpa [#allocation7 + $0x1], 0 }
  0x34   :  { %57 = vsyncpa [#allocation33], 0 }
  0x35   :  { %59 = vsyncpa [#allocation33 + $0x1], 0  ;;  %s5828_s1 = smov 0   ;;  %s5830_s20 = smov 0  }
  0x36   :  { %s5832_s26 = smov 0   ;;  %s5834_s2 = smov 0  }
  0x37   :  { %s5836_s9 = smov 0   ;;  %s5838_s27 = smov 0  }
  0x38   :  { %s5840_s5 = smov 0   ;;  %s5842_s28 = smov 0  }
  0x39   :  { %s5844_s10 = smov 0   ;;  %s5846_s6 = smov 0  }
  0x3a   :  { %s5848_s0 = smov 0   ;;  %s5850_s29 = smov 0  }
  0x3b   :  { %7336 = sst [smem:[#allocation61_spill]] %s5848_s0  ;;  %s5852_s3 = smov 0  }
  0x3c   :  { %s5854_s7 = smov 0   ;;  %s5856_s30 = smov 0  }
  0x3d   :  { %s5858_s8 = smov 0   ;;  %s5860_s4 = smov 0  }
  0x3e   :  { %s5862_s25 = smov 0   ;;  %s5864_s22 = smov 0  }
  0x3f   :  { %s5866_s24 = smov 0   ;;  %s5868_s23 = smov 0  }
  0x40   :  { %s5870_s21 = smov 0  }
  0x41 LB: > { %s7338_s0 = sld [smem:[#allocation61_spill]]  ;;  %s5664_s15 = smov [#allocation17]   ;;  %s5660_s21 = sphi %s5870_s21, %s7511_s21   ;;  %s5656_s23 = sphi %s5868_s23, %s7531_s23   ;;  %s5652_s24 = sphi %s5866_s24, %s7529_s24   ;;  %s5648_s22 = sphi %s5864_s22, %s7535_s22   ;;  %s5644_s25 = sphi %s5862_s25, %s7525_s25   ;;  %s5640_s4 = sphi %s5860_s4, %s7524_s4   ;;  %s5636_s8 = sphi %s5858_s8, %s7523_s8   ;;  %s5632_s30 = sphi %s5856_s30, %s7522_s30   ;;  %s5628_s7 = sphi %s5854_s7, %s7521_s7   ;;  %s5624_s3 = sphi %s5852_s3, %s7520_s3   ;;  %s5620_s29 = sphi %s5850_s29, %s7519_s29   ;;  %s5612_s6 = sphi %s5846_s6, %s7517_s6   ;;  %s5608_s10 = sphi %s5844_s10, %s7516_s10   ;;  %s5604_s28 = sphi %s5842_s28, %s7515_s28   ;;  %s5600_s5 = sphi %s5840_s5, %s7514_s5   ;;  %s5596_s27 = sphi %s5838_s27, %s7532_s27   ;;  %s5592_s9 = sphi %s5836_s9, %s7530_s9   ;;  %s5588_s2 = sphi %s5834_s2, %s7528_s2   ;;  %s5584_s26 = sphi %s5832_s26, %s7526_s26   ;;  %s5580_s20 = sphi %s5830_s20, %s7513_s20   ;;  %s5576_s1 = sphi %s5828_s1, %s7512_s1  }
  0x42   : > { %7339 = sst [smem:[#allocation61_spill]] %s5576_s1  ;;  %s652_s1 = sshll.u32 %s5664_s15, 4  ;;  %s653_s1 = int_to_ptr.vmem [resolvable:$true] %s652_s1 }
  0x43   : > { %7340 = sst [smem:[#allocation62_spill]] %s5580_s20  ;;  %p4079_p0 = scmp.ge.s32.totalorder %s5660_s21, 1 }
  0x44   : > { %7341 = sst [smem:[#allocation63_spill]] %s5584_s26  ;;  %s5939_s26 = sadd.s32 4294967295, %s5660_s21  }
  0x45   : > { %7342 = sst [smem:[#allocation64_spill]] %s5600_s5  ;;  %p7276_p1 = scmp.eq.s32.totalorder %s5939_s26, 0 }
  0x46   : > { %7343 = sst [smem:[#allocation65_spill]] %s5604_s28  ;;  %p636_p2 = scmp.lt.s32.totalorder %s5660_s21, 3 }
  0x47   : > { %7344 = sst [smem:[#allocation66_spill]] %s5608_s10  ;;  %s5665_s5 = smov [#allocation20]  }
  0x48   : > { %7345 = sst [smem:[#allocation67_spill]] %s7338_s0  ;;  %p5944_p3 = pnand %p4079_p0, %p636_p2 }
  0x49   : > { %7346 = sst [smem:[#allocation68_spill]] %s5620_s29  ;;  %s675_s10 = sshll.u32 %s5665_s5, 4  ;;  %s5957_s10 = int_to_ptr.vmem [resolvable:$true] %s675_s10 }
  0x4a   : > { %7347 = sst [smem:[#allocation69_spill]] %s5624_s3  ;;  %p4512_p5 = pneg %p5944_p3 }
  0x4b   : > { %7348 = sst [smem:[#allocation70_spill]] %s5628_s7  ;;  %s5666_s28 = smov [#allocation23]  }
  0x4c   : > { %7349 = sst [smem:[#allocation71_spill]] %s5632_s30  ;;  %p5953_p6 = pnand %p4512_p5, %p7276_p1 }
  0x4d   : > { %7350 = sst [smem:[#allocation72_spill]] %s5640_s4  ;;  %s702_s3 = sshll.u32 %s5666_s28, 4  ;;  %s5959_s3 = int_to_ptr.vmem [resolvable:$true] %s702_s3 }
  0x4e   : > { %7351 = sst [smem:[#allocation73_spill]] %s5644_s25  ;;  %p5963_p7 = pneg %p5953_p6 }
  0x4f   : > { %7352 = sst [smem:[#allocation74_spill]] %s5648_s22  ;;  %s4964_s5 = scalar_lea.vmem %s653_s1, 32 }
  0x50   : > { %7353 = sst [smem:[#allocation75_spill]] %s5652_s24  ;;  %p4965_p11 = scmp.lt.s32.totalorder %s653_s1, %s653_s1 }
  0x51   : > { %7354 = sst [smem:[#allocation76_spill]] %s5656_s23 }
  0x52   : > { %s7355_s20 = scalar_select %p5944_p3, 1, 0 }
  0x53   : > { %s7357_s15 = scalar_select %p5953_p6, 1, 0 }
  0x54   : > { %7356 = sst [smem:[#allocation77_spill]] %s7355_s20  ;;  %s4957_s20 = scalar_lea.vmem %s653_s1, 16 }
  0x55   : > { %s7358_s30 = scalar_select %p5963_p7, 1, 0 }
  0x56   : > { %p4958_p8 = scmp.ne.s32.totalorder %s653_s1, %s4957_s20  ;;  %p4966_p12 = scmp.lt.s32.totalorder %s4964_s5, %s4957_s20 }
  0x58   : > { %p4960_p9 = pnand %p4958_p8, %p5963_p7  ;;  %p4967_p13 = por %p4966_p12, %p4965_p11 }
  0x5a   : > { %p4961_p10 = pneg %p4960_p9 }
  0x5c   : > { %p4968_p0 = pnand %p4967_p13, %p4961_p10 }
  0x5e   : > { %4971 = shalt.err (!%p4968_p0)
}
  0x5f   : > { %s7359_s22 = sld [smem:[#allocation95_spill]]  ;;  %s4983_s24 = scalar_lea.vmem %s5957_s10, 256 }
  0x60   : > { %p4984_p2 = scmp.ne.s32.totalorder %s5957_s10, %s4983_s24  ;;  %p4991_p9 = scmp.lt.s32.totalorder %s5957_s10, %s5957_s10 }
  0x61   : > { %p4992_p11 = scmp.lt.s32.totalorder %s4983_s24, %s4983_s24 }
  0x62   : > { %p4986_p5 = pnand %p4984_p2, %p5963_p7 }
  0x63   : > { %p4993_p10 = por %p4992_p11, %p4991_p9 }
  0x64   : > { %p4987_p8 = pneg %p4986_p5 }
  0x65   : > { %4515 = dma.hbm_to_vmem [thread:$0]  (!%p5953_p6), %s7359_s22, 16, %s653_s1, [#allocation18]  }
  0x66   : > { %p4994_p12 = pnand %p4993_p10, %p4987_p8 }
  0x68   : > { %4997 = shalt.err (!%p4994_p12)
}
  0x69   : > { %s7265_s20 = smov 128   ;;  %s7267_s22 = smov 8  }
  0x6a   : > { %s7360_s12 = sld [smem:[#allocation97_spill]]  ;;  %s5009_s24 = scalar_lea.vmem %s5959_s3, 16 }
  0x6b   : > { %p5010_p13 = scmp.ne.s32.totalorder %s5959_s3, %s5009_s24  ;;  %s5016_s5 = scalar_lea.vmem %s5959_s3, 32 }
  0x6c   : > { %p5017_p5 = scmp.lt.s32.totalorder %s5959_s3, %s5959_s3  ;;  %p5018_p8 = scmp.lt.s32.totalorder %s5016_s5, %s5009_s24 }
  0x6d   : > { %p5012_p0 = pnand %p5010_p13, %p5963_p7 }
  0x6e   : > { %p5019_p9 = por %p5018_p8, %p5017_p5 }
  0x6f   : > { %p5013_p2 = pneg %p5012_p0 }
  0x70   : > { %4521 = dma.hbm_to_vmem [thread:$0]  (!%p5953_p6), %s7360_s12, 256, %s5957_s10, [#allocation21], %s7265_s20, %s7265_s20, %s7267_s22  }
  0x71   : > { %p5020_p11 = pnand %p5019_p9, %p5013_p2 }
  0x73   : > { %5023 = shalt.err (!%p5020_p11)
}
  0x74   : > { %s7361_s14 = sld [smem:[#allocation99_spill]]  ;;  %s5669_s10 = smov [#allocation26]  }
  0x75   : > { %s727_s1 = sshll.u32 %s5669_s10, 4  ;;  %s728_s1 = int_to_ptr.vmem [resolvable:$true] %s727_s1 }
  0x76   : > { %s5035_s7 = scalar_lea.vmem %s728_s1, 16  ;;  %s5042_s24 = scalar_lea.vmem %s728_s1, 32 }
  0x77   : > { %p5036_p10 = scmp.ne.s32.totalorder %s728_s1, %s5035_s7  ;;  %p5043_p0 = scmp.lt.s32.totalorder %s728_s1, %s728_s1 }
  0x78   : > { %p5044_p2 = scmp.lt.s32.totalorder %s5042_s24, %s5035_s7 }
  0x79   : > { %p5038_p12 = pnand %p5036_p10, %p5963_p7 }
  0x7a   : > { %4527 = dma.hbm_to_vmem [thread:$0]  (!%p5953_p6), %s7361_s14, 16, %s5959_s3, [#allocation24]  }
  0x7b   : > { %p5039_p13 = pneg %p5038_p12  ;;  %p5045_p5 = por %p5044_p2, %p5043_p0 }
  0x7d   : > { %p5046_p8 = pnand %p5045_p5, %p5039_p13 }
  0x7f   : > { %5049 = shalt.err (!%p5046_p8)
}
  0x80   : > { %s7362_s17 = sld [smem:[#allocation102_spill]]  ;;  %s6010_s3 = sadd.s32 1, %s5660_s21  }
  0x81   : > { %7363 = sst [smem:[#allocation78_spill]] %s6010_s3  ;;  %p7273_p9 = scmp.eq.s32.totalorder %s5660_s21, 0 }
  0x82   : > { %s95_s28 = sld [smem:[#allocation3 + %s5660_s21]]  ;;  %s100_s10 = sadd.s32 1, %s5644_s25 }
  0x83   : > { %s96_s7 = sld [smem:[#allocation3 + %s6010_s3]]  ;;  %p107_p11 = scmp.ne.s32.totalorder %s5644_s25, %s5640_s4 }
  0x84   : > { %p113_p10 = scmp.ne.s32.totalorder %s5640_s4, %s5636_s8  ;;  %p7274_p12 = scmp.lt.s32.totalorder %s5660_s21, 2 }
  0x85   : > { %p6023_p13 = por %p107_p11, %p7273_p9  ;;  %s791_s8 = sand.u32 1, %s5644_s25  }
  0x86   : > { %4533 = dma.hbm_to_vmem [thread:$0]  (!%p5953_p6), %s7362_s17, 16, %s728_s1, [#allocation27]  }
  0x87   : > { %s6028_s1 = sand.u32 1, %s5660_s21   ;;  %p6032_p0 = por %p113_p10, %p7276_p1 }
  0x88   : > { %p6041_p2 = pnand %p7274_p12, %p6023_p13  ;;  %s4092_s20 = sshll.u32 %s791_s8, 5 }
  0x89   : > { %s7365_s5 = scalar_select %p6032_p0, 1, 0 }
  0x8a   : > { %s97_s22 = ssub.s32 %s95_s28, %s96_s7  ;;  %s793_s12 = scalar_lea.vmem [#allocation8], %s4092_s20 }
  0x8b   : > { %7366 = sst [smem:[#allocation79_spill]] %s7365_s5  ;;  %p98_p5 = scmp.eq.s32.totalorder %s97_s22, 0 }
  0x8c   : > { %s801_s14 = sshll.u32 %s793_s12, 4  ;;  %s6060_s22 = sld [smem:[#allocation3 + %s5660_s21]]  ;;  %s6057_s14 = int_to_ptr.vmem [resolvable:$true] %s801_s14 }
  0x8d   : > { %s4465_s17 = scalar_select %p6023_p13, [#allocation3], [#allocation34] }
  0x8e   : > { %s6048_s5 = scalar_select %p98_p5, %s5644_s25, %s100_s10  }
  0x8f   : > { %s4466_s4 = scalar_select %p6023_p13, %s5660_s21, 0 }
  0x90   : > { %7368 = sst [smem:[#allocation80_spill]] %s6048_s5  ;;  %s7537_s17 = smov (!%p7274_p12, %s4465_s17), [#allocation40] }
  0x91   : > { %s7539_s4 = smov (!%p7274_p12, %s4466_s4), 0  ;;  %s6064_s12 = sld [smem:[#allocation3 + %s6010_s3]] }
  0x92   : > { %s794_s28 = sld [smem:[%s7537_s17 + %s7539_s4]]  ;;  %p163_p8 = scmp.ne.s32.totalorder %s5620_s29, %s7338_s0 }
  0x93   : > { %p169_p11 = scmp.ne.s32.totalorder %s7338_s0, %s5612_s6  ;;  %s7370_s5 = sld [smem:[#allocation88_spill]] }
  0x94   : > { %p6072_p10 = por %p163_p8, %p7273_p9  ;;  %p5052_p8 = pneg %p6041_p2 }
  0x95   : > { %p6083_p13 = por %p169_p11, %p7276_p1 }
  0x96   : > { %s7369_s10 = scalar_select %p6072_p10, 1, 0 }
  0x97   : > { %s7372_s17 = scalar_select %p6083_p13, 1, 0 }
  0x98   : > { %s4172_s7 = sshll.u32 %s794_s28, 9 }
  0x99   : > { %s7371_s19 = smov %s7370_s5  ;;  %s6079_s25 = scalar_lea.hbm %s7370_s5, %s4172_s7 }
  0x9a   : > { %7373 = sst [smem:[#allocation81_spill]] %s7372_s17  ;;  %s5050_s4 = scalar_lea.hbm %s6079_s25, 512 }
  0x9b   : > { %p5051_p5 = scmp.ne.s32.totalorder %s6079_s25, %s5050_s4  ;;  %s5055_s5 = scalar_lea.hbm %s7371_s19, 2560 }
  0x9c   : > { %p5056_p12 = scmp.lt.s32.totalorder %s6079_s25, %s7371_s19  ;;  %p5057_p0 = scmp.lt.s32.totalorder %s5055_s5, %s5050_s4 }
  0x9d   : > { %p5053_p4 = pnand %p5052_p8, %p5051_p5 }
  0x9e   : > { %p5058_p11 = por %p5057_p0, %p5056_p12 }
  0x9f   : > { %p5054_p9 = pneg %p5053_p4 }
  0xa1   : > { %p5059_p1 = pnand %p5058_p11, %p5054_p9 }
  0xa3   : > { %5062 = shalt.err (!%p5059_p1)
}
  0xa4   : > { %s5063_s8 = scalar_lea.vmem %s6057_s14, 512  ;;  %s5670_s6 = smov [#allocation8]  }
  0xa5   : > { %p5064_p13 = scmp.ne.s32.totalorder %s6057_s14, %s5063_s8  ;;  %s5068_s17 = sshll.u32 %s5670_s6, 4  ;;  %s5069_s17 = int_to_ptr.vmem [resolvable:$false] %s5068_s17 }
  0xa6   : > { %s5070_s20 = scalar_lea.vmem %s5069_s17, 1024  ;;  %p5071_p4 = scmp.lt.s32.totalorder %s6057_s14, %s5069_s17 }
  0xa7   : > { %p5066_p3 = pnand %p5064_p13, %p5052_p8  ;;  %p5072_p6 = scmp.lt.s32.totalorder %s5070_s20, %s5063_s8 }
  0xa9   : > { %p5067_p5 = pneg %p5066_p3  ;;  %p5073_p7 = por %p5072_p6, %p5071_p4 }
  0xab   : > { %p5074_p10 = pnand %p5073_p7, %p5067_p5 }
  0xad   : > { %5077 = shalt.err (!%p5074_p10)
}
  0xae   : > { %s7374_s4 = smov 8   ;;  %s7375_s28 = smov 128  }
  0xaf   : > { %s7376_s5 = scalar_lea.sflag [#allocation9], %s6028_s1  ;;  %s831_s23 = sand.u32 1, %s5620_s29  }
  0xb0   : > { %4548 = dma.hbm_to_vmem [thread:$0]  (!%p6041_p2), %s6079_s25, 512, %s6057_s14, %s7376_s5, %s7375_s28, %s7375_s28, %s7374_s4  }
  0xb1   : > { %p7377_p1 = scmp.ne.s32.totalorder %s7369_s10, 0  ;;  %p7378_p3 = scmp.lt.s32.totalorder %s5660_s21, 2 }
  0xb2   : > { %s153_s6 = ssub.s32 %s6060_s22, %s6064_s12  ;;  %s832_s7 = scalar_lea.vmem [#allocation11], %s831_s23 }
  0xb3   : > { %p6116_p6 = pnand %p7378_p3, %p7377_p1  ;;  %p154_p7 = scmp.eq.s32.totalorder %s153_s6, 0 }
  0xb4   : > { %s840_s24 = sshll.u32 %s832_s7, 4  ;;  %s7380_s25 = sadd.s32 1, %s5620_s29  ;;  %s6136_s24 = int_to_ptr.vmem [resolvable:$true] %s840_s24 }
  0xb5   : > { %s4471_s14 = scalar_select %p7377_p1, [#allocation3], [#allocation36] }
  0xb6   : > { %s6127_s8 = scalar_select %p154_p7, %s5620_s29, %s7380_s25  }
  0xb7   : > { %s4472_s20 = scalar_select %p7377_p1, %s5660_s21, 0 }
  0xb8   : > { %7381 = sst [smem:[#allocation82_spill]] %s6127_s8  ;;  %p7382_p9 = pmov %p7378_p3 }
  0xb9   : > { %p7383_p12 = pmov %p7378_p3  ;;  %s6139_s12 = sld [smem:[#allocation3 + %s5660_s21]] }
  0xba   : > { %s7541_s14 = smov (!%p7382_p9, %s4471_s14), [#allocation42]  ;;  %s6142_s5 = sld [smem:[#allocation3 + %s6010_s3]] }
  0xbb   : > { %s7543_s20 = smov (!%p7383_p12, %s4472_s20), 0  ;;  %p219_p0 = scmp.ne.s32.totalorder %s5596_s27, %s5592_s9 }
  0xbc   : > { %s833_s22 = sld [smem:[%s7541_s14 + %s7543_s20]]  ;;  %p7386_p10 = scmp.eq.s32.totalorder %s5660_s21, 0 }
  0xbd   : > { %s7384_s10 = sld [smem:[#allocation90_spill]]  ;;  %s7293_s0 = scalar_lea.sflag [#allocation12], %s6028_s1 }
  0xbe   : > { %p6154_p13 = por %p219_p0, %p7386_p10  ;;  %p5080_p11 = pneg %p6116_p6 }
  0xc0   : > { %s7387_s29 = scalar_select %p6154_p13, 1, 0 }
  0xc2   : > { %s4096_s6 = sshll.u32 %s833_s22, 4 }
  0xc3   : > { %s7385_s19 = smov %s7384_s10  ;;  %s838_s8 = scalar_lea.hbm %s7384_s10, %s4096_s6 }
  0xc4   : > { %s5078_s18 = scalar_lea.hbm %s838_s8, 16  ;;  %s5083_s22 = scalar_lea.hbm %s7385_s19, 80 }
  0xc5   : > { %p5079_p8 = scmp.ne.s32.totalorder %s838_s8, %s5078_s18  ;;  %p5084_p1 = scmp.lt.s32.totalorder %s838_s8, %s7385_s19 }
  0xc6   : > { %p5085_p3 = scmp.lt.s32.totalorder %s5083_s22, %s5078_s18 }
  0xc7   : > { %p5081_p5 = pnand %p5080_p11, %p5079_p8 }
  0xc8   : > { %p5086_p7 = por %p5085_p3, %p5084_p1 }
  0xc9   : > { %p5082_p4 = pneg %p5081_p5 }
  0xcb   : > { %p5087_p9 = pnand %p5086_p7, %p5082_p4 }
  0xcd   : > { %5090 = shalt.err (!%p5087_p9)
}
  0xce   : > { %s5091_s6 = scalar_lea.vmem %s6136_s24, 16  ;;  %s5671_s7 = smov [#allocation11]  }
  0xcf   : > { %p5092_p12 = scmp.ne.s32.totalorder %s6136_s24, %s5091_s6  ;;  %s5096_s25 = sshll.u32 %s5671_s7, 4  ;;  %s5097_s25 = int_to_ptr.vmem [resolvable:$false] %s5096_s25 }
  0xd0   : > { %s5098_s10 = scalar_lea.vmem %s5097_s25, 32  ;;  %p5099_p8 = scmp.lt.s32.totalorder %s6136_s24, %s5097_s25 }
  0xd1   : > { %p5094_p0 = pnand %p5092_p12, %p5080_p11  ;;  %p5100_p5 = scmp.lt.s32.totalorder %s5098_s10, %s5091_s6 }
  0xd3   : > { %p5095_p10 = pneg %p5094_p0  ;;  %p5101_p2 = por %p5100_p5, %p5099_p8 }
  0xd5   : > { %p5102_p13 = pnand %p5101_p2, %p5095_p10 }
  0xd7   : > { %5105 = shalt.err (!%p5102_p13)
}
  0xd8   : > { %4558 = dma.hbm_to_vmem [thread:$0]  (!%p6116_p6), %s838_s8, 16, %s6136_s24, %s7293_s0  }
  0xd9   : > { %p7388_p2 = scmp.eq.s32.totalorder %s5939_s26, 0  ;;  %p7389_p13 = scmp.ne.s32.totalorder %s5592_s9, %s5588_s2 }
  0xda   : > { %s867_s3 = sand.u32 1, %s5596_s27   ;;  %s209_s17 = ssub.s32 %s6139_s12, %s6142_s5 }
  0xdb   : > { %p6180_p11 = por %p7389_p13, %p7388_p2  ;;  %s4098_s23 = sshll.u32 %s867_s3, 5 }
  0xdc   : > { %p210_p4 = scmp.eq.s32.totalorder %s209_s17, 0  ;;  %p7392_p1 = scmp.ne.s32.totalorder %s7387_s29, 0 }
  0xdd   : > { %s7390_s18 = scalar_select %p6180_p11, 1, 0 }
  0xde   : > { %s4477_s14 = scalar_select %p7392_p1, [#allocation3], [#allocation38] }
  0xdf   : > { %7391 = sst [smem:[#allocation83_spill]] %s7390_s18  ;;  %s7393_s20 = sadd.s32 1, %s5596_s27 }
  0xe0   : > { %s6192_s22 = scalar_select %p210_p4, %s5596_s27, %s7393_s20  }
  0xe1   : > { %s4478_s6 = scalar_select %p7392_p1, %s5660_s21, 0 }
  0xe2   : > { %p7394_p3 = scmp.lt.s32.totalorder %s5660_s21, 2  ;;  %s869_s2 = scalar_lea.vmem [#allocation14], %s4098_s23 }
  0xe3   : > { %s877_s24 = sshll.u32 %s869_s2, 4  ;;  %s5672_s5 = smov [#allocation19]   ;;  %s6209_s24 = int_to_ptr.vmem [resolvable:$true] %s877_s24 }
  0xe4   : > { %s7545_s14 = smov (!%p7394_p3, %s4477_s14), [#allocation44]  ;;  %p7395_p6 = pmov %p7394_p3 }
  0xe5   : > { %p7396_p7 = pmov %p7394_p3  ;;  %s662_s7 = sshll.u32 %s5672_s5, 4  ;;  %s663_s7 = int_to_ptr.vmem [resolvable:$true] %s662_s7 }
  0xe6   : > { %s7547_s6 = smov (!%p7395_p6, %s4478_s6), 0  ;;  %s5673_s25 = smov [#allocation22]  }
  0xe7   : > { %p6205_p9 = pnand %p7396_p7, %p7392_p1  ;;  %s870_s12 = sld [smem:[%s7545_s14 + %s7547_s6]] }
  0xe8   : > { %s688_s10 = sshll.u32 %s5673_s25, 4  ;;  %s5117_s3 = scalar_lea.vmem %s663_s7, 256  ;;  %s6221_s10 = int_to_ptr.vmem [resolvable:$true] %s688_s10 }
  0xe9   : > { %p5118_p12 = scmp.ne.s32.totalorder %s663_s7, %s5117_s3  ;;  %p7398_p0 = scmp.ne.s32.totalorder %s7358_s30, 0 }
  0xea   : > { %p5125_p5 = scmp.lt.s32.totalorder %s663_s7, %s663_s7  ;;  %p5126_p2 = scmp.lt.s32.totalorder %s5117_s3, %s5117_s3 }
  0xeb   : > { %p5120_p10 = pnand %p5118_p12, %p7398_p0 }
  0xec   : > { %p5127_p13 = por %p5126_p2, %p5125_p5 }
  0xed   : > { %p5121_p8 = pneg %p5120_p10 }
  0xef   : > { %p5128_p4 = pnand %p5127_p13, %p5121_p8 }
  0xf1   : > { %5131 = shalt.err (!%p5128_p4)
}
  0xf2   : > { %p7399_p1 = scmp.ne.s32.totalorder %s7357_s15, 0  ;;  %s7400_s11 = sld [smem:[#allocation96_spill]] }
  0xf3   : > { %s4173_s23 = sshll.u32 %s870_s12, 9  ;;  %s5674_s14 = smov [#allocation25]  }
  0xf4   : > { %s716_s20 = sshll.u32 %s5674_s14, 4  ;;  %s7401_s5 = sld [smem:[#allocation92_spill]]  ;;  %s6228_s20 = int_to_ptr.vmem [resolvable:$true] %s716_s20 }
  0xf5   : > { %s7295_s3 = scalar_lea.sflag [#allocation15], %s6028_s1  ;;  %p5134_p6 = pneg %p6205_p9 }
  0xf8   : > { %4518 = dma.hbm_to_vmem [thread:$0]  (!%p7399_p1), %s7400_s11, 256, %s663_s7, [#allocation18], %s7375_s28, %s7375_s28, %s7374_s4  }
  0xfa   : > { %s7402_s0 = smov %s7401_s5  ;;  %s6226_s25 = scalar_lea.hbm %s7401_s5, %s4173_s23 }
  0xfb   : > { %s5132_s29 = scalar_lea.hbm %s6226_s25, 512  ;;  %s5137_s17 = scalar_lea.hbm %s7402_s0, 2560 }
  0xfc   : > { %p5133_p3 = scmp.ne.s32.totalorder %s6226_s25, %s5132_s29  ;;  %p5138_p10 = scmp.lt.s32.totalorder %s6226_s25, %s7402_s0 }
  0xfd   : > { %p5139_p8 = scmp.lt.s32.totalorder %s5137_s17, %s5132_s29 }
  0xfe   : > { %p5135_p7 = pnand %p5134_p6, %p5133_p3 }
  0xff   : > { %p5140_p5 = por %p5139_p8, %p5138_p10 }
 0x100   : > { %p5136_p12 = pneg %p5135_p7 }
 0x102   : > { %p5141_p2 = pnand %p5140_p5, %p5136_p12 }
 0x104   : > { %5144 = shalt.err (!%p5141_p2)
}
 0x105   : > { %s5145_s23 = scalar_lea.vmem %s6209_s24, 512  ;;  %s5675_s2 = smov [#allocation14]  }
 0x106   : > { %p5146_p13 = scmp.ne.s32.totalorder %s6209_s24, %s5145_s23  ;;  %s5150_s5 = sshll.u32 %s5675_s2, 4  ;;  %s5151_s5 = int_to_ptr.vmem [resolvable:$false] %s5150_s5 }
 0x107   : > { %s5152_s12 = scalar_lea.vmem %s5151_s5, 1024  ;;  %p5153_p7 = scmp.lt.s32.totalorder %s6209_s24, %s5151_s5 }
 0x108   : > { %p5148_p4 = pnand %p5146_p13, %p5134_p6  ;;  %p5154_p11 = scmp.lt.s32.totalorder %s5152_s12, %s5145_s23 }
 0x10a   : > { %p5149_p3 = pneg %p5148_p4  ;;  %p5155_p1 = por %p5154_p11, %p5153_p7 }
 0x10c   : > { %p5156_p0 = pnand %p5155_p1, %p5149_p3 }
 0x10e   : > { %5159 = shalt.err (!%p5156_p0)
}
 0x10f   : > { %4568 = dma.hbm_to_vmem [thread:$0]  (!%p6205_p9), %s6226_s25, 512, %s6209_s24, %s7295_s3, %s7375_s28, %s7375_s28, %s7374_s4  }
 0x110   : > { %s5171_s29 = scalar_lea.vmem %s6221_s10, 512  ;;  %p7403_p12 = scmp.ne.s32.totalorder %s7358_s30, 0 }
 0x111   : > { %p5172_p6 = scmp.ne.s32.totalorder %s6221_s10, %s5171_s29  ;;  %p5179_p0 = scmp.lt.s32.totalorder %s6221_s10, %s6221_s10 }
 0x112   : > { %p5180_p10 = scmp.lt.s32.totalorder %s5171_s29, %s5171_s29 }
 0x113   : > { %p5174_p11 = pnand %p5172_p6, %p7403_p12 }
 0x114   : > { %p5181_p8 = por %p5180_p10, %p5179_p0 }
 0x115   : > { %p5175_p1 = pneg %p5174_p11 }
 0x117   : > { %p5182_p5 = pnand %p5181_p8, %p5175_p1 }
 0x119   : > { %5185 = shalt.err (!%p5182_p5)
}
 0x11a   : > { %p7404_p2 = scmp.ne.s32.totalorder %s7357_s15, 0  ;;  %s7405_s13 = sld [smem:[#allocation98_spill]] }
 0x11b   : > { %s5197_s24 = scalar_lea.vmem %s6228_s20, 16  ;;  %s5204_s25 = scalar_lea.vmem %s6228_s20, 32 }
 0x11c   : > { %p5198_p9 = scmp.ne.s32.totalorder %s6228_s20, %s5197_s24  ;;  %p5205_p3 = scmp.lt.s32.totalorder %s6228_s20, %s6228_s20 }
 0x11d   : > { %p5206_p7 = scmp.lt.s32.totalorder %s5204_s25, %s5197_s24 }
 0x11e   : > { %p5200_p13 = pnand %p5198_p9, %p7403_p12 }
 0x11f   : > { %p5207_p6 = por %p5206_p7, %p5205_p3 }
 0x120   : > { %4524 = dma.hbm_to_vmem [thread:$0]  (!%p7404_p2), %s7405_s13, 512, %s6221_s10, [#allocation21], %s7375_s28, %s7375_s28, %s7374_s4  }
 0x121   : > { %p5201_p4 = pneg %p5200_p13 }
 0x123   : > { %p5208_p11 = pnand %p5207_p6, %p5201_p4 }
 0x125   : > { %5211 = shalt.err (!%p5208_p11)
}
 0x126   : > { %s7406_s16 = sld [smem:[#allocation101_spill]]  ;;  %s5676_s10 = smov [#allocation28]  }
 0x127   : > { %s738_s6 = sshll.u32 %s5676_s10, 4  ;;  %s5677_s23 = smov [#allocation29]   ;;  %s739_s6 = int_to_ptr.vmem [resolvable:$true] %s738_s6 }
 0x128   : > { %s748_s2 = sshll.u32 %s5677_s23, 4  ;;  %s5223_s5 = scalar_lea.vmem %s739_s6, 16  ;;  %s749_s2 = int_to_ptr.vmem [resolvable:$true] %s748_s2 }
 0x129   : > { %p5224_p1 = scmp.ne.s32.totalorder %s739_s6, %s5223_s5  ;;  %s5230_s12 = scalar_lea.vmem %s739_s6, 32 }
 0x12a   : > { %p5231_p8 = scmp.lt.s32.totalorder %s739_s6, %s739_s6  ;;  %p5232_p5 = scmp.lt.s32.totalorder %s5230_s12, %s5223_s5 }
 0x12b   : > { %p5226_p0 = pnand %p5224_p1, %p7403_p12 }
 0x12c   : > { %4530 = dma.hbm_to_vmem [thread:$0]  (!%p7404_p2), %s7406_s16, 16, %s6228_s20, [#allocation24]  }
 0x12d   : > { %p5227_p10 = pneg %p5226_p0  ;;  %p5233_p9 = por %p5232_p5, %p5231_p8 }
 0x12f   : > { %p5234_p13 = pnand %p5233_p9, %p5227_p10 }
 0x131   : > { %5237 = shalt.err (!%p5234_p13)
}
 0x132   : > { %s7407_s8 = sld [smem:[#allocation103_spill]]  ;;  %s5249_s7 = scalar_lea.vmem %s749_s2, 512 }
 0x133   : > { %p5250_p4 = scmp.ne.s32.totalorder %s749_s2, %s5249_s7  ;;  %p5257_p6 = scmp.lt.s32.totalorder %s749_s2, %s749_s2 }
 0x134   : > { %p5258_p11 = scmp.lt.s32.totalorder %s5249_s7, %s5249_s7 }
 0x135   : > { %p5252_p3 = pnand %p5250_p4, %p7403_p12 }
 0x136   : > { %p5259_p1 = por %p5258_p11, %p5257_p6 }
 0x137   : > { %p5253_p7 = pneg %p5252_p3 }
 0x138   : > { %4536 = dma.hbm_to_vmem [thread:$0]  (!%p7404_p2), %s7407_s8, 16, %s739_s6, [#allocation27]  }
 0x139   : > { %p5260_p0 = pnand %p5259_p1, %p5253_p7 }
 0x13b   : > { %5263 = shalt.err (!%p5260_p0)
}
 0x13c   : > { %s7408_s17 = sld [smem:[#allocation104_spill]]  ;;  %s4078_s15 = sadd.s32 4294967294, %s5660_s21  }
 0x13d   : > { %s7409_s14 = sld [smem:[#allocation78_spill]]  ;;  %p7414_p5 = scmp.eq.s32.totalorder %s5660_s21, 0 }
 0x13e   : > { %s7410_s10 = sld [smem:[#allocation76_spill]]  ;;  %p7415_p13 = scmp.eq.s32.totalorder %s5939_s26, 0 }
 0x13f   : > { %s7411_s30 = sld [smem:[#allocation75_spill]]  ;;  %p571_p3 = scmp.eq.s32.totalorder %s5939_s26, 1 }
 0x140   : > { %s7412_s6 = sld [smem:[#allocation74_spill]]  ;;  %p577_p7 = scmp.eq.s32.totalorder %s4078_s15, 1 }
 0x141   : > { %s7419_s25 = sld [smem:[#allocation87_spill]]  ;;  %p7421_p11 = scmp.lt.s32.totalorder %s5660_s21, 2 }
 0x142   : > { %4539 = dma.hbm_to_vmem [thread:$0]  (!%p7404_p2), %s7408_s17, 512, %s749_s2, [#allocation30], %s7375_s28, %s7375_s28, %s7374_s4  }
 0x143   : > { %s69_s23 = ssub.s32 %s5660_s21, %s7409_s14  ;;  %s4091_s4 = sshll.u32 %s5660_s21, 7 }
 0x144   : > { %p70_p12 = scmp.eq.s32.totalorder %s69_s23, 0  ;;  %s72_s5 = sadd.s32 1, %s7410_s10 }
 0x145   : > { %p79_p10 = scmp.ne.s32.totalorder %s7410_s10, %s7411_s30  ;;  %s771_s29 = sand.u32 1, %s7410_s10  }
 0x146   : > { %p85_p8 = scmp.ne.s32.totalorder %s7411_s30, %s7412_s6  ;;  %s4090_s8 = sshll.u32 %s771_s29, 3 }
 0x147   : > { %s6308_s12 = scalar_select %p70_p12, %s7410_s10, %s72_s5  }
 0x148   : > { %p81_p9 = por %p7414_p5, %p79_p10  ;;  %p6314_p4 = por %p7415_p13, %p85_p8 }
 0x149   : > { %7413 = sst [smem:[#allocation84_spill]] %s6308_s12  ;;  %p6321_p2 = por %p571_p3, %p79_p10 }
 0x14a   : > { %s7416_s20 = scalar_select %p6314_p4, 1, 0 }
 0x14b   : > { %s7417_s28 = scalar_select %p6321_p2, 1, 0 }
 0x14c   : > { %p6325_p6 = por %p577_p7, %p85_p8  ;;  %s7420_s17 = smov %s7419_s25 }
 0x14d   : > { %s6332_s30 = scalar_lea.hbm %s7419_s25, %s4091_s4  ;;  %s775_s6 = scalar_lea.vmem [#allocation5], %s4090_s8 }
 0x14e   : > { %s7418_s2 = scalar_select %p6325_p6, 1, 0 }
 0x14f   : > { %s782_s10 = sshll.u32 %s775_s6, 4  ;;  %p6336_p1 = pnand %p7421_p11, %p81_p9  ;;  %s783_s10 = int_to_ptr.vmem [resolvable:$true] %s782_s10 }
 0x150   : > { %s772_s23 = scalar_lea.sflag [#allocation6], %s771_s29  ;;  %s5264_s5 = scalar_lea.hbm %s6332_s30, 128 }
 0x151   : > { %p5265_p0 = scmp.ne.s32.totalorder %s6332_s30, %s5264_s5  ;;  %p5266_p12 = pneg %p6336_p1 }
 0x152   : > { %s5269_s24 = scalar_lea.hbm %s7420_s17, 256  ;;  %p5270_p5 = scmp.lt.s32.totalorder %s6332_s30, %s7420_s17 }
 0x153   : > { %p5267_p10 = pnand %p5266_p12, %p5265_p0  ;;  %p5271_p9 = scmp.lt.s32.totalorder %s5269_s24, %s5264_s5 }
 0x155   : > { %p5268_p8 = pneg %p5267_p10  ;;  %p5272_p13 = por %p5271_p9, %p5270_p5 }
 0x157   : > { %p5273_p3 = pnand %p5272_p13, %p5268_p8 }
 0x159   : > { %5276 = shalt.err (!%p5273_p3)
}
 0x15a   : > { %s5277_s6 = scalar_lea.vmem %s783_s10, 128  ;;  %s5678_s29 = smov [#allocation5]  }
 0x15b   : > { %p5278_p7 = scmp.ne.s32.totalorder %s783_s10, %s5277_s6  ;;  %s5282_s3 = sshll.u32 %s5678_s29, 4  ;;  %s5283_s3 = int_to_ptr.vmem [resolvable:$false] %s5282_s3 }
 0x15c   : > { %s5284_s0 = scalar_lea.vmem %s5283_s3, 256  ;;  %p5285_p0 = scmp.lt.s32.totalorder %s783_s10, %s5283_s3 }
 0x15d   : > { %p5280_p11 = pnand %p5278_p7, %p5266_p12  ;;  %p5286_p10 = scmp.lt.s32.totalorder %s5284_s0, %s5277_s6 }
 0x15f   : > { %p5281_p6 = pneg %p5280_p11  ;;  %p5287_p2 = por %p5286_p10, %p5285_p0 }
 0x161   : > { %p5288_p4 = pnand %p5287_p2, %p5281_p6 }
 0x163   : > { %5291 = shalt.err (!%p5288_p4)
}
 0x164   : > { %s7423_s5 = sld [smem:[#allocation70_spill]]  ;;  %p7426_p6 = scmp.eq.s32.totalorder %s5660_s21, 0 }
 0x165   : > { %s7424_s4 = sld [smem:[#allocation71_spill]]  ;;  %p7427_p8 = scmp.eq.s32.totalorder %s5939_s26, 0 }
 0x166   : > { %s7425_s7 = sld [smem:[#allocation69_spill]]  ;;  %p7432_p9 = scmp.lt.s32.totalorder %s5660_s21, 2 }
 0x167   : > { %4543 = dma.hbm_to_vmem [thread:$0]  (!%p6336_p1), %s6332_s30, 128, %s783_s10, %s772_s23  }
 0x168   : > { %s123_s0 = sld [smem:[#allocation3 + %s5660_s21]]  ;;  %p7434_p3 = pmov %p7432_p9 }
 0x169   : > { %s124_s3 = sld [smem:[#allocation3 + %s7409_s14]]  ;;  %p7437_p10 = pmov %p7426_p6 }
 0x16a   : > { %s7428_s8 = sld [smem:[#allocation65_spill]]  ;;  %p7436_p7 = pmov %p7434_p3 }
 0x16b   : > { %p135_p4 = scmp.ne.s32.totalorder %s7424_s4, %s7423_s5  ;;  %s813_s15 = sand.u32 1, %s7424_s4  }
 0x16c   : > { %p141_p2 = scmp.ne.s32.totalorder %s7423_s5, %s7425_s7  ;;  %s128_s24 = sadd.s32 1, %s7424_s4 }
 0x16d   : > { %p137_p12 = por %p135_p4, %p7426_p6  ;;  %s7429_s25 = sld [smem:[#allocation66_spill]] }
 0x16e   : > { %p6366_p5 = por %p141_p2, %p7427_p8  ;;  %s7431_s30 = sld [smem:[#allocation64_spill]] }
 0x16f   : > { %s4468_s10 = scalar_select %p137_p12, [#allocation3], [#allocation35] }
 0x170   : > { %s7430_s6 = scalar_select %p6366_p5, 1, 0 }
 0x171   : > { %s4469_s23 = scalar_select %p137_p12, %s5660_s21, 0 }
 0x172   : > { %s125_s29 = ssub.s32 %s123_s0, %s124_s3  ;;  %s814_s5 = scalar_lea.vmem [#allocation10], %s813_s15 }
 0x173   : > { %s822_s7 = sshll.u32 %s814_s5, 4  ;;  %p126_p1 = scmp.eq.s32.totalorder %s125_s29, 0  ;;  %s6384_s7 = int_to_ptr.vmem [resolvable:$true] %s822_s7 }
 0x174   : > { %p6373_p13 = pnand %p7432_p9, %p137_p12  ;;  %s7549_s10 = smov (!%p7434_p3, %s4468_s10), [#allocation41] }
 0x175   : > { %s7551_s4 = smov (!%p126_p1, %s7424_s4), %s128_s24  ;;  %s7553_s23 = smov (!%p7436_p7, %s4469_s23), 0 }
 0x176   : > { %7435 = sst [smem:[#allocation85_spill]] %s7551_s4  ;;  %p191_p11 = scmp.ne.s32.totalorder %s7429_s25, %s7428_s8 }
 0x177   : > { %s815_s13 = sld [smem:[%s7549_s10 + %s7553_s23]]  ;;  %p197_p0 = scmp.ne.s32.totalorder %s7428_s8, %s7431_s30 }
 0x178   : > { %s6387_s0 = sld [smem:[#allocation3 + %s5660_s21]]  ;;  %p6399_p4 = por %p191_p11, %p7437_p10 }
 0x179   : > { %s6390_s3 = sld [smem:[#allocation3 + %s7409_s14]]  ;;  %p7440_p2 = pmov %p7427_p8 }
 0x17a   : > { %s7438_s5 = scalar_select %p6399_p4, 1, 0 }
 0x17b   : > { %s7439_s17 = sld [smem:[#allocation89_spill]]  ;;  %p6408_p6 = por %p197_p0, %p7440_p2 }
 0x17c   : > { %p5294_p8 = pneg %p6373_p13 }
 0x17d   : > { %s4095_s29 = sshll.u32 %s815_s13, 4 }
 0x17e   : > { %s7441_s10 = scalar_select %p6408_p6, 1, 0 }
 0x181   : > { %s820_s19 = scalar_lea.hbm %s7439_s17, %s4095_s29  ;;  %s5297_s30 = scalar_lea.hbm %s7439_s17, 80 }
 0x182   : > { %s5292_s23 = scalar_lea.hbm %s820_s19, 16  ;;  %p5298_p3 = scmp.lt.s32.totalorder %s820_s19, %s7439_s17 }
 0x183   : > { %p5293_p12 = scmp.ne.s32.totalorder %s820_s19, %s5292_s23  ;;  %p5299_p7 = scmp.lt.s32.totalorder %s5297_s30, %s5292_s23 }
 0x185   : > { %p5295_p1 = pnand %p5294_p8, %p5293_p12  ;;  %p5300_p11 = por %p5299_p7, %p5298_p3 }
 0x187   : > { %p5296_p9 = pneg %p5295_p1 }
 0x189   : > { %p5301_p0 = pnand %p5300_p11, %p5296_p9 }
 0x18b   : > { %5304 = shalt.err (!%p5301_p0)
}
 0x18c   : > { %s5305_s16 = scalar_lea.vmem %s6384_s7, 16  ;;  %s5679_s29 = smov [#allocation10]  }
 0x18d   : > { %p5306_p10 = scmp.ne.s32.totalorder %s6384_s7, %s5305_s16  ;;  %s5310_s24 = sshll.u32 %s5679_s29, 4  ;;  %s5311_s24 = int_to_ptr.vmem [resolvable:$false] %s5310_s24 }
 0x18e   : > { %s5312_s13 = scalar_lea.vmem %s5311_s24, 32  ;;  %p5313_p1 = scmp.lt.s32.totalorder %s6384_s7, %s5311_s24 }
 0x18f   : > { %p5308_p2 = pnand %p5306_p10, %p5294_p8  ;;  %p5314_p6 = scmp.lt.s32.totalorder %s5312_s13, %s5305_s16 }
 0x191   : > { %p5309_p12 = pneg %p5308_p2  ;;  %p5315_p5 = por %p5314_p6, %p5313_p1 }
 0x193   : > { %p5316_p4 = pnand %p5315_p5, %p5309_p12 }
 0x195   : > { %5319 = shalt.err (!%p5316_p4)
}
 0x196   : > { %s7442_s12 = scalar_lea.sflag [#allocation9], %s6028_s1  ;;  %s7443_s15 = sld [smem:[#allocation62_spill]] }
 0x197   : > { %s7444_s23 = sld [smem:[#allocation63_spill]]  ;;  %s184_s11 = sadd.s32 1, %s7429_s25 }
 0x198   : > { %4553 = dma.hbm_to_vmem [thread:$0]  (!%p6373_p13), %s820_s19, 16, %s6384_s7, %s7442_s12  }
 0x199   : > { %s7445_s8 = sld [smem:[#allocation61_spill]]  ;;  %s181_s30 = ssub.s32 %s6387_s0, %s6390_s3 }
 0x19a   : > { %p7446_p5 = scmp.ne.s32.totalorder %s7438_s5, 0  ;;  %p7447_p4 = scmp.lt.s32.totalorder %s5660_s21, 2 }
 0x19b   : > { %p182_p8 = scmp.eq.s32.totalorder %s181_s30, 0  ;;  %s7449_s29 = sand.u32 1, %s7429_s25  }
 0x19c   : > { %p6435_p6 = pnand %p7447_p4, %p7446_p5  ;;  %s850_s24 = scalar_lea.vmem [#allocation13], %s7449_s29 }
 0x19d   : > { %s858_s13 = sshll.u32 %s850_s24, 4  ;;  %s7555_s25 = smov (!%p182_p8, %s7429_s25), %s184_s11  ;;  %s6461_s13 = int_to_ptr.vmem [resolvable:$true] %s858_s13 }
 0x19e   : > { %s4474_s17 = scalar_select %p7446_p5, [#allocation3], [#allocation37] }
 0x19f   : > { %7450 = sst [smem:[#allocation61_spill]] %s7555_s25  ;;  %p7451_p13 = pmov %p7447_p4 }
 0x1a0   : > { %s4475_s19 = scalar_select %p7446_p5, %s5660_s21, 0 }
 0x1a1   : > { %s7557_s17 = smov (!%p7451_p13, %s4474_s17), [#allocation43]  ;;  %p7452_p9 = pmov %p7447_p4 }
 0x1a2   : > { %s6454_s0 = sld [smem:[#allocation3 + %s5660_s21]]  ;;  %p247_p3 = scmp.ne.s32.totalorder %s7444_s23, %s7443_s15 }
 0x1a3   : > { %s7559_s19 = smov (!%p7452_p9, %s4475_s19), 0  ;;  %s6457_s3 = sld [smem:[#allocation3 + %s7409_s14]] }
 0x1a4   : > { %s851_s7 = sld [smem:[%s7557_s17 + %s7559_s19]]  ;;  %p253_p7 = scmp.ne.s32.totalorder %s7443_s15, %s7445_s8 }
 0x1a5   : > { %p7453_p11 = scmp.eq.s32.totalorder %s5660_s21, 0  ;;  %s7455_s29 = sld [smem:[#allocation91_spill]] }
 0x1a6   : > { %p7457_p10 = scmp.eq.s32.totalorder %s5939_s26, 0  ;;  %p5322_p1 = pneg %p6435_p6 }
 0x1a7   : > { %p6467_p0 = por %p247_p3, %p7453_p11 }
 0x1a8   : > { %p6476_p2 = por %p253_p7, %p7457_p10 }
 0x1a9   : > { %s7454_s11 = scalar_select %p6467_p0, 1, 0 }
 0x1aa   : > { %s4097_s12 = sshll.u32 %s851_s7, 4 }
 0x1ab   : > { %s7456_s18 = smov %s7455_s29  ;;  %s856_s24 = scalar_lea.hbm %s7455_s29, %s4097_s12 }
 0x1ac   : > { %s7458_s17 = scalar_select %p6476_p2, 1, 0 }
 0x1ad   : > { %s5320_s14 = scalar_lea.hbm %s856_s24, 16  ;;  %s5325_s19 = scalar_lea.hbm %s7456_s18, 80 }
 0x1ae   : > { %p5321_p12 = scmp.ne.s32.totalorder %s856_s24, %s5320_s14  ;;  %p5326_p8 = scmp.lt.s32.totalorder %s856_s24, %s7456_s18 }
 0x1af   : > { %p5327_p13 = scmp.lt.s32.totalorder %s5325_s19, %s5320_s14 }
 0x1b0   : > { %p5323_p5 = pnand %p5322_p1, %p5321_p12 }
 0x1b1   : > { %p5328_p9 = por %p5327_p13, %p5326_p8 }
 0x1b2   : > { %p5324_p4 = pneg %p5323_p5 }
 0x1b4   : > { %p5329_p3 = pnand %p5328_p9, %p5324_p4 }
 0x1b6   : > { %5332 = shalt.err (!%p5329_p3)
}
 0x1b7   : > { %s5333_s12 = scalar_lea.vmem %s6461_s13, 16  ;;  %s5680_s5 = smov [#allocation13]  }
 0x1b8   : > { %p5334_p7 = scmp.ne.s32.totalorder %s6461_s13, %s5333_s12  ;;  %s5338_s30 = sshll.u32 %s5680_s5, 4  ;;  %s5339_s30 = int_to_ptr.vmem [resolvable:$false] %s5338_s30 }
 0x1b9   : > { %s5340_s29 = scalar_lea.vmem %s5339_s30, 32  ;;  %p5341_p12 = scmp.lt.s32.totalorder %s6461_s13, %s5339_s30 }
 0x1ba   : > { %p5336_p11 = pnand %p5334_p7, %p5322_p1  ;;  %p5342_p5 = scmp.lt.s32.totalorder %s5340_s29, %s5333_s12 }
 0x1bc   : > { %p5337_p10 = pneg %p5336_p11  ;;  %p5343_p2 = por %p5342_p5, %p5341_p12 }
 0x1be   : > { %p5344_p0 = pnand %p5343_p2, %p5337_p10 }
 0x1c0   : > { %5347 = shalt.err (!%p5344_p0)
}
 0x1c1   : > { %s7459_s4 = scalar_lea.sflag [#allocation12], %s6028_s1  ;;  %s240_s14 = sadd.s32 1, %s7444_s23 }
 0x1c2   : > { %4563 = dma.hbm_to_vmem [thread:$0]  (!%p6435_p6), %s856_s24, 16, %s6461_s13, %s7459_s4  }
 0x1c3   : > { %s237_s15 = ssub.s32 %s6454_s0, %s6457_s3  ;;  %s889_s8 = sand.u32 1, %s7444_s23  }
 0x1c4   : > { %p238_p0 = scmp.eq.s32.totalorder %s237_s15, 0  ;;  %p7460_p2 = scmp.ne.s32.totalorder %s7454_s11, 0 }
 0x1c5   : > { %p7461_p1 = scmp.lt.s32.totalorder %s5660_s21, 2  ;;  %s890_s0 = scalar_lea.vmem [#allocation16], %s889_s8 }
 0x1c6   : > { %s4480_s19 = scalar_select %p7460_p2, [#allocation3], [#allocation39] }
 0x1c7   : > { %p6504_p4 = pnand %p7461_p1, %p7460_p2  ;;  %s7561_s23 = smov (!%p238_p0, %s7444_s23), %s240_s14 }
 0x1c8   : > { %s4481_s7 = scalar_select %p7460_p2, %s5660_s21, 0 }
 0x1c9   : > { %p7463_p8 = pmov %p7461_p1  ;;  %p7464_p6 = pmov %p7461_p1 }
 0x1ca   : > { %s898_s3 = sshll.u32 %s890_s0, 4  ;;  %s7465_s30 = sld [smem:[#allocation93_spill]]  ;;  %s899_s3 = int_to_ptr.vmem [resolvable:$true] %s898_s3 }
 0x1cb   : > { %s7563_s19 = smov (!%p7463_p8, %s4480_s19), [#allocation45]  ;;  %s7565_s7 = smov (!%p7464_p6, %s4481_s7), 0 }
 0x1cc   : > { %s891_s13 = sld [smem:[%s7563_s19 + %s7565_s7]]  ;;  %p5350_p9 = pneg %p6504_p4 }
 0x1d0   : > { %s7466_s15 = smov %s7465_s30 }
 0x1d1   : > { %s5353_s18 = scalar_lea.hbm %s7466_s15, 80 }
 0x1d2   : > { %s4101_s24 = sshll.u32 %s891_s13, 4 }
 0x1d3   : > { %s896_s29 = scalar_lea.hbm %s7465_s30, %s4101_s24 }
 0x1d4   : > { %s5348_s4 = scalar_lea.hbm %s896_s29, 16  ;;  %p5354_p11 = scmp.lt.s32.totalorder %s896_s29, %s7466_s15 }
 0x1d5   : > { %p5349_p13 = scmp.ne.s32.totalorder %s896_s29, %s5348_s4  ;;  %p5355_p10 = scmp.lt.s32.totalorder %s5353_s18, %s5348_s4 }
 0x1d7   : > { %p5351_p3 = pnand %p5350_p9, %p5349_p13  ;;  %p5356_p12 = por %p5355_p10, %p5354_p11 }
 0x1d9   : > { %p5352_p7 = pneg %p5351_p3 }
 0x1db   : > { %p5357_p5 = pnand %p5356_p12, %p5352_p7 }
 0x1dd   : > { %5360 = shalt.err (!%p5357_p5)
}
 0x1de   : > { %s5361_s8 = scalar_lea.vmem %s899_s3, 16  ;;  %s5681_s7 = smov [#allocation16]  }
 0x1df   : > { %p5362_p0 = scmp.ne.s32.totalorder %s899_s3, %s5361_s8  ;;  %s5366_s13 = sshll.u32 %s5681_s7, 4  ;;  %s5367_s13 = int_to_ptr.vmem [resolvable:$false] %s5366_s13 }
 0x1e0   : > { %s5368_s0 = scalar_lea.vmem %s5367_s13, 32  ;;  %p5369_p8 = scmp.lt.s32.totalorder %s899_s3, %s5367_s13 }
 0x1e1   : > { %p5364_p2 = pnand %p5362_p0, %p5350_p9  ;;  %p5370_p6 = scmp.lt.s32.totalorder %s5368_s0, %s5361_s8 }
 0x1e3   : > { %p5365_p1 = pneg %p5364_p2  ;;  %p5371_p13 = por %p5370_p6, %p5369_p8 }
 0x1e5   : > { %p5372_p3 = pnand %p5371_p13, %p5365_p1 }
 0x1e7   : > { %5375 = shalt.err (!%p5372_p3)
}
 0x1e8   : > { %s7467_s18 = scalar_lea.sflag [#allocation15], %s6028_s1  ;;  %s7468_s25 = sld [smem:[#allocation77_spill]] }
 0x1e9   : > { %4573 = dma.hbm_to_vmem [thread:$0]  (!%p6504_p4), %s896_s29, 16, %s899_s3, %s7467_s18  }
 0x1ee   : > { %p7469_p7 = scmp.ne.s32.totalorder %s7468_s25, 0 }
 0x1ef   : > { %s7470_s24 = sld [smem:[#allocation75_spill]] (!%p7469_p7)  ;;  %p7471_p9 = scmp.ne.s32.totalorder (!%p7469_p7), %s7416_s20, 0 }
 0x1f0   : > { %907 = sbr.rel (%p7469_p7) target bundleno = 13060 (0x3304), region = 104 }
 0x1f5   : > { %s6538_s12 = sand.u32 1, %s7470_s24  }
 0x1f6   : > { %s6541_s5 = sshll.u32 %s6538_s12, 3  ;;  %s910_s30 = scalar_lea.sflag [#allocation6], %s6538_s12 }
 0x1f7   : > { %s913_s4 = scalar_lea.vmem [#allocation5], %s6541_s5 }
 0x1f8   : > { %5519 = dma.done.wait (%p7471_p9), %s910_s30, 128  }
 0x1f9   : > { %5521 = vsyncadd (%p7471_p9), %s910_s30, 4294967168  ;;  %s7472_s1 = sld [smem:[#allocation72_spill]]  ;;  %s918_s3 = sand.u32 1, %s5939_s26  }
 0x1fa   : > { %s7473_s16 = sld [smem:[#allocation79_spill]]  ;;  %s919_s14 = scalar_lea.sflag [#allocation9], %s918_s3 }
 0x1ff   : > { %s920_s29 = sand.u32 1, %s7472_s1  }
 0x200   : > { %s4104_s11 = sshll.u32 %s920_s29, 5  ;;  %p7474_p4 = scmp.ne.s32.totalorder %s7473_s16, 0 }
 0x201   : > { %s6551_s19 = scalar_lea.vmem [#allocation8], %s4104_s11 }
 0x202   : > { %5523 = dma.done.wait (%p7474_p4), %s919_s14, 512  }
 0x203   : > { %5525 = vsyncadd (%p7474_p4), %s919_s14, 4294966784  ;;  %s7475_s8 = sld [smem:[#allocation70_spill]]  ;;  %p7476_p11 = scmp.ne.s32.totalorder %s7430_s6, 0 }
 0x209   : > { %s929_s7 = sand.u32 1, %s7475_s8  }
 0x20a   : > { %s6558_s13 = scalar_lea.vmem [#allocation10], %s929_s7 }
 0x20b   : > { %5527 = dma.done.wait (%p7476_p11), %s919_s14, 16  }
 0x20c   : > { %5529 = vsyncadd (%p7476_p11), %s919_s14, 4294967280  ;;  %s7477_s20 = sld [smem:[#allocation67_spill]]  ;;  %s936_s25 = scalar_lea.sflag [#allocation12], %s918_s3 }
 0x20d   : > { %s7478_s0 = sld [smem:[#allocation81_spill]] }
 0x212   : > { %s937_s18 = sand.u32 1, %s7477_s20  }
 0x213   : > { %s6565_s24 = scalar_lea.vmem [#allocation11], %s937_s18  ;;  %p7479_p10 = scmp.ne.s32.totalorder %s7478_s0, 0 }
 0x215   : > { %5531 = dma.done.wait (%p7479_p10), %s936_s25, 16  }
 0x216   : > { %5533 = vsyncadd (%p7479_p10), %s936_s25, 4294967280  ;;  %s7480_s30 = sld [smem:[#allocation65_spill]]  ;;  %p7481_p12 = scmp.ne.s32.totalorder %s7441_s10, 0 }
 0x21c   : > { %s945_s1 = sand.u32 1, %s7480_s30  }
 0x21d   : > { %s6572_s16 = scalar_lea.vmem [#allocation13], %s945_s1 }
 0x21e   : > { %5535 = dma.done.wait (%p7481_p12), %s936_s25, 16  }
 0x21f   : > { %5537 = vsyncadd (%p7481_p12), %s936_s25, 4294967280  ;;  %s7482_s6 = sld [smem:[#allocation83_spill]]  ;;  %s953_s29 = sand.u32 1, %s5592_s9  }
 0x220   : > { %s4105_s11 = sshll.u32 %s953_s29, 5  ;;  %s952_s14 = scalar_lea.sflag [#allocation15], %s918_s3 }
 0x221   : > { %s6579_s8 = scalar_lea.vmem [#allocation14], %s4105_s11 }
 0x225   : > { %p7483_p5 = scmp.ne.s32.totalorder %s7482_s6, 0 }
 0x227   : > { %5539 = dma.done.wait (%p7483_p5), %s952_s14, 512  }
 0x228   : > { %5541 = vsyncadd (%p7483_p5), %s952_s14, 4294966784  ;;  %s7484_s7 = sld [smem:[#allocation62_spill]]  ;;  %p7485_p0 = scmp.ne.s32.totalorder %s7458_s17, 0 }
 0x22e   : > { %s962_s20 = sand.u32 1, %s7484_s7  }
 0x22f   : > { %s6586_s0 = scalar_lea.vmem [#allocation16], %s962_s20 }
 0x230   : > { %5543 = dma.done.wait (%p7485_p0), %s952_s14, 16  }
 0x231   : > { %5545 = vsyncadd (%p7485_p0), %s952_s14, 4294967280  ;;  %p7486_p2 = scmp.eq.s32.totalorder %s5939_s26, 0 }
 0x233   : > { %5547 = dma.done.wait (%p7486_p2), [#allocation18], 272   ;;  %p7487_p1 = pmov %p7486_p2 }
 0x235   : > { %5549 = vsyncadd (%p7487_p1), [#allocation18], 4294967024  ;;  %p7488_p8 = pmov %p7487_p1 }
 0x236   : > { %p7489_p6 = pmov %p7487_p1 }
 0x237   : > { %5551 = dma.done.wait (%p7488_p8), [#allocation21], 768  }
 0x238   : > { %5553 = vsyncadd (%p7489_p6), [#allocation21], 4294966528  ;;  %p7490_p13 = pmov %p7487_p1 }
 0x239   : > { %p7491_p3 = pmov %p7487_p1 }
 0x23a   : > { %5555 = dma.done.wait (%p7490_p13), [#allocation24], 32  }
 0x23b   : > { %5557 = vsyncadd (%p7491_p3), [#allocation24], 4294967264  ;;  %p7492_p7 = pmov %p7487_p1 }
 0x23c   : > { %p7493_p9 = pmov %p7487_p1 }
 0x23d   : > { %5559 = dma.done.wait (%p7492_p7), [#allocation27], 32  }
 0x23e   : > { %5561 = vsyncadd (%p7493_p9), [#allocation27], 4294967264  ;;  %p7494_p4 = pmov %p7487_p1 }
 0x23f   : > { %p7495_p11 = pmov %p7487_p1 }
 0x240   : > { %5563 = dma.done.wait (%p7494_p4), [#allocation30], 512  }
 0x241   : > { %5565 = vsyncadd (%p7495_p11), [#allocation30], 4294966784  ;;  %v5682_v0 = vmov 0.0   ;;  %vm5683_vm0 = vmmov 0   ;;  %v1112_v1 = vld [vmem:[%s6551_s19 + $0x18] sm:$0xff]  ;;  %v1111_v2 = vld [vmem:[%s6551_s19 + $0x10] sm:$0xff] }
 0x242   : > { %4257 = vmatprep.subr.mxu0 %v5682_v0  ;;  %4265 = vmatprep.mubr.msk.f32.mxu0 %vm5683_vm0, %v5682_v0  ;;  %v1110_v3 = vld [vmem:[%s6551_s19 + $0x8] sm:$0xff]  ;;  %v1109_v4 = vld [vmem:[%s6551_s19] sm:$0xff]  ;;  %v1108_v5 = vld [vmem:[%s913_s4] sm:$0xff]  ;;  %vm1120_vm1 = vcmask 261120   ;;  %s7496_s4 = sld [smem:[#allocation94_spill]]  ;;  %s5684_s1 = smov 80  }
 0x243   : > { %4268 = vmatprep.subr.mxu1 %v5682_v0  ;;  %4276 = vmatprep.mubr.msk.f32.mxu1 %vm5683_vm0, %v5682_v0  ;;  %v4118_v6 = vld [vmem:[%s6558_s13] ss:$0 sm:$0xff]  ;;  %v1228_v16 = vld [vmem:[%s6579_s8 + $0x18] sm:$0xff]  ;;  %v1227_v17 = vld [vmem:[%s6579_s8 + $0x10] sm:$0xff]  ;;  %s6693_s6 = sld [smem:[#allocation4 + %s5939_s26]]  ;;  %vm1398_vm2 = vcmask 130048  }
 0x244   : > { %4258 = vmatpush3.msra.mxu0 %v1112_v1  ;;  %4269 = vmatpush3.msra.mxu1 %v1228_v16  ;;  %v1226_v18 = vld [vmem:[%s6579_s8 + $0x8] sm:$0xff]  ;;  %v1225_v19 = vld [vmem:[%s6579_s8] sm:$0xff]  ;;  %s5686_s8 = smov 96   ;;  %vm2366_vm3 = vcmask 1040384   ;;  %vm2368_vm4 = vcmask 1041408   ;;  %vm2370_vm5 = vcmask 1042432  }
 0x245   : > { %4259 = vmatprep.subr.mxu0 %v5682_v0  ;;  %4270 = vmatprep.subr.mxu1 %v5682_v0  ;;  %v4120_v26 = vld [vmem:[%s6565_s24] ss:$0 sm:$0xff]  ;;  %v6658_v33 = vld [vmem:[#allocation19 + $0x8] sm:$0xff]  ;;  %v4124_v42 = vld [vmem:[#allocation17] ss:$0 sm:$0xff]  ;;  %vm2372_vm6 = vcmask 1043456  }
 0x246   : > { %4260 = vmatpush3.msra.mxu0 %v1111_v2  ;;  %4271 = vmatpush3.msra.mxu1 %v1227_v17  ;;  %v4121_v28 = vld [vmem:[%s6572_s16] ss:$0 sm:$0xff]  ;;  %s5685_s16 = smov 16   ;;  %vm2374_vm7 = vcmask 1044480   ;;  %vm2376_vm8 = vcmask 1045504   ;;  %vm2378_vm9 = vcmask 1046528  }
 0x247   : > { %4261 = vmatprep.subr.mxu0 %v5682_v0  ;;  %4272 = vmatprep.subr.mxu1 %v5682_v0  ;;  %v6666_v35 = vld [vmem:[#allocation19] sm:$0xff]  ;;  %p7503_p3 = scmp.ne.s32.totalorder %s7417_s28, 0 }
 0x248   : > { %4262 = vmatpush3.msra.mxu0 %v1110_v3  ;;  %4273 = vmatpush3.msra.mxu1 %v1226_v18  ;;  %s7497_s19 = smov %s7496_s4  ;;  %v1312_v20 = vld [vmem:[%s7496_s4 + $0x18] sm:$0xff]  ;;  %v4122_v36 = vld [vmem:[%s6586_s0] ss:$0 sm:$0xff] }
 0x249   : > { %4263 = vmatprep.subr.mxu0 %v5682_v0  ;;  %4274 = vmatprep.subr.mxu1 %v5682_v0  ;;  %v1311_v21 = vld [vmem:[%s7497_s19 + $0x10] sm:$0xff]  ;;  %v1310_v32 = vld [vmem:[%s7497_s19 + $0x8] sm:$0xff]  ;;  %v1309_v34 = vld [vmem:[%s7497_s19] sm:$0xff]  ;;  %p1395_p10 = scmp.gt.s32.totalorder %s6693_s6, 0  ;;  %p1505_p12 = scmp.gt.s32.totalorder %s6693_s6, 1 }
 0x24a   : > { %4264 = vmatpush3.msra.mxu0 %v1109_v4  ;;  %4275 = vmatpush3.msra.mxu1 %v1225_v19  ;;  %p1629_p5 = scmp.gt.s32.totalorder %s6693_s6, 2  ;;  %p1754_p0 = scmp.gt.s32.totalorder %s6693_s6, 3 }
 0x24b   : > { %4266 = vmatmul.mubr.msk.f32.vlgmr.msra.gmra.mxu0 %vm1120_vm1, %v1108_v5  ;;  %4279 = vmatprep.subr.mxu0 %v5682_v0  ;;  %s1396_s29 = scalar_select %p1395_p10, 1, 0 }
 0x24c   : > { %4287 = vmatprep.mubr.msk.f32.mxu0 %vm5683_vm0, %v5682_v0  ;;  %4290 = vmatprep.subr.mxu1 %v5682_v0  ;;  %s1506_s7 = scalar_select %p1505_p12, 1, 0 }
 0x24d   : > { %4280 = vmatpush3.msra.mxu0 %v1312_v20  ;;  %s1397_s11 = scvt.s32.f32 %s1396_s29  ;;  %p1879_p2 = scmp.gt.s32.totalorder %s6693_s6, 4 }
 0x24e   : > { %4281 = vmatprep.subr.mxu0 %v5682_v0  ;;  %s1507_s20 = scvt.s32.f32 %s1506_s7  ;;  %p2004_p1 = scmp.gt.s32.totalorder %s6693_s6, 5 }
 0x24f   : > { %4282 = vmatpush3.msra.mxu0 %v1311_v21  ;;  %s1499_s14 = ssub.f32 1.0, %s1397_s11  ;;  %v6696_v61 = vstv %s1397_s11  ;;  %s5687_s7 = smov 64  }
 0x250   : > { %4283 = vmatprep.subr.mxu0 %v5682_v0  ;;  %s1616_s0 = ssub.f32 1.0, %s1507_s20  ;;  %v6718_v20 = vstv %s1507_s20  ;;  %p2129_p8 = scmp.gt.s32.totalorder %s6693_s6, 6 }
 0x251   : > { %4284 = vmatpush3.msra.mxu0 %v1310_v32  ;;  %v1500_v58 = vstv %s1499_s14  ;;  %s1630_s10 = scalar_select %p1629_p5, 1, 0 }
 0x252   : > { %4285 = vmatprep.subr.mxu0 %v5682_v0  ;;  %v1501_v62 = vmul.f32 0.0, %v1500_v58  ;;  %v6715_v16 = vstv %s1616_s0  ;;  %s1755_s3 = scalar_select %p1754_p0, 1, 0 }
 0x253   : > { %4286 = vmatpush3.msra.mxu0 %v1309_v34  ;;  %s1631_s17 = scvt.s32.f32 %s1630_s10  ;;  %p2254_p6 = scmp.gt.s32.totalorder %s6693_s6, 7 }
 0x254   : > { %4304 = vmatprep.subr.mxu0 %v5682_v0  ;;  %s1756_s13 = scvt.s32.f32 %s1755_s3  ;;  %s5688_s6 = smov 32  }
 0x255   : > { %s1741_s4 = ssub.f32 1.0, %s1631_s17 }
 0x256   : > { %s1866_s18 = ssub.f32 1.0, %s1756_s13 }
 0x257   : > { %s1880_s25 = scalar_select %p1879_p2, 1, 0 }
 0x258   : > { %s2005_s29 = scalar_select %p2004_p1, 1, 0 }
 0x259   : > { %s1881_s24 = scvt.s32.f32 %s1880_s25  ;;  %s7500_s25 = sld [smem:[#allocation105_spill]] }
 0x25a   : > { %s2006_s11 = scvt.s32.f32 %s2005_s29 }
 0x25b   : > { %s1991_s30 = ssub.f32 1.0, %s1881_s24 }
 0x25c   : > { %s2116_s14 = ssub.f32 1.0, %s2006_s11 }
 0x25d   : > { %s2130_s20 = scalar_select %p2129_p8, 1, 0 }
 0x25f   : > { %s2131_s0 = scvt.s32.f32 %s2130_s20 }
 0x261   : > { %s2241_s10 = ssub.f32 1.0, %s2131_s0 }
 0x30b   : > { %v1190_v7 = vpop.f32.mrf.mxu0 }
 0x30c   : > { %v1191_v8 = vadd.f32 %v4118_v6, %v1190_v7 }
 0x30d   : > { %v4267_v9 = vpop.f32.mrf.mxu0 }
 0x30e   : > { %v1194_v10 = vsel %vm1120_vm1, %v1191_v8, 0.0 }
 0x30f   : > { %1195 = vadd.xlane.f32.xlu0 %v1194_v10 }
 0x398   : > { %v1196_v11 = vpop.xlane.xlu0 %1195 }
 0x399   : > { %v1198_v12 = vmul.f32 0.03125, %v1196_v11 }
 0x39b   : > { %v1199_v13 = vsub.f32 %v1191_v8, %v1198_v12 }
 0x39d   : > { %v1200_v14 = vmul.f32 %v1199_v13, %v1199_v13 }
 0x39f   : > { %v1201_v15 = vsel %vm1120_vm1, %v1200_v14, 0.0 }
 0x3a0   : > { %1202 = vadd.xlane.f32.xlu0 %v1201_v15 }
 0x429   : > { %v1203_v22 = vpop.xlane.xlu0 %1202 }
 0x42a   : > { %v1204_v23 = vmul.f32 0.03125, %v1203_v22 }
 0x42c   : > { %v1205_v24 = vadd.f32 1e-05, %v1204_v23 }
 0x42e   : > { %4798 = vrsqrt.f32 %v1205_v24 }
 0x43b   : > { %v4799_v25 = vpop.eup %4798 }
 0x43c   : > { %v1207_v27 = vmul.f32 %v4799_v25, %v1199_v13 }
 0x43e   : > { %v1215_v29 = vmul.f32 %v4120_v26, %v1207_v27 }
 0x440   : > { %v1223_v30 = vadd.f32 %v4121_v28, %v1215_v29 }
 0x442   : > { %v1224_v31 = vmax.f32 %v1223_v30, 0.0 }
 0x444   : > { %4277 = vmatmul.mubr.msk.f32.vlgmr.msra.gmra.mxu1 %vm1120_vm1, %v1224_v31 }
 0x445   : > { %4294 = vmatprep.mubr.msk.f32.mxu1 %vm5683_vm0, %v5682_v0  ;;  %4291 = vmatpush3.msra.mxu1 %v6658_v33 }
 0x446   : > { %4292 = vmatprep.subr.mxu1 %v5682_v0 }
 0x447   : > { %4293 = vmatpush3.msra.mxu1 %v6666_v35 }
 0x448   : > { %4295 = vmatmul.mubr.f32.vlgmr.msra.gmra.mxu1 %v5682_v0  ;;  %4297 = vmatprep.subr.mxu1 %v5682_v0 }
 0x449   : > { %4298 = vmatpush3.msra.mxu1 %v6658_v33  ;;  %4301 = vmatprep.mubr.msk.f32.mxu1 %vm5683_vm0, %v5682_v0 }
 0x44a   : > { %4299 = vmatprep.subr.mxu1 %v5682_v0 }
 0x44b   : > { %4300 = vmatpush3.msra.mxu1 %v6666_v35 }
 0x44c   : > { %4311 = vmatprep.subr.mxu1 %v5682_v0 }
 0x504   : > { %v1305_v37 = vpop.f32.mrf.mxu1 }
 0x505   : > { %v1306_v38 = vadd.f32 %v4122_v36, %v1305_v37 }
 0x506   : > { %v4278_v39 = vpop.f32.mrf.mxu1 }
 0x507   : > { %4288 = vmatmul.mubr.msk.f32.vlgmr.msra.gmra.mxu0 %vm1120_vm1, %v1306_v38 }
 0x508   : > { %4305 = vmatpush3.msra.mxu0 %v6658_v33  ;;  %4308 = vmatprep.mubr.msk.f32.mxu0 %vm5683_vm0, %v5682_v0  ;;  %v1468_v40 = vpop.f32.mrf.mxu1 }
 0x509   : > { %4306 = vmatprep.subr.mxu0 %v5682_v0 }
 0x50a   : > { %4307 = vmatpush3.msra.mxu0 %v6666_v35  ;;  %v4296_v41 = vpop.f32.mrf.mxu1 }
 0x50b   : > { %4318 = vmatprep.subr.mxu0 %v5682_v0 }
 0x5c7   : > { %v1389_v43 = vpop.f32.mrf.mxu0 }
 0x5c8   : > { %v6686_v44 = vadd.f32 %v4124_v42, %v1389_v43 }
 0x5c9   : > { %v4289_v45 = vpop.f32.mrf.mxu0 }
 0x5ca   : > { %v1472_v46 = vadd.f32 %v1468_v40, %v6686_v44 }
 0x5cc   : > { %4800 = vtanh.f32 %v1472_v46  ;;  %v4126_v48 = vmul.f32 -1.442695, %v1472_v46 }
 0x5ce   : > { %4802 = vpow2.f32 %v4126_v48 }
 0x5d9   : > { %v4801_v47 = vpop.eup %4800 }
 0x5da   : > { %1482 = vrot.lane.b32.xlu1 %v4801_v47, %s5684_s1 }
 0x5db   : > { %v4803_v49 = vpop.eup %4802 }
 0x5dc   : > { %v1476_v50 = vadd.f32 1.0, %v4803_v49  ;;  %v6736_v49 = vstv %s1741_s4 }
 0x5de   : > { %4804 = vrcp.f32 %v1476_v50 }
 0x5eb   : > { %v4805_v51 = vpop.eup %4804 }
 0x5ec   : > { %v1480_v54 = vmul.f32 0.0, %v4805_v51 }
 0x64c   : > { %v1483_v52 = vpop.permute.xlu1 %1482 }
 0x64d   : > { %v1485_v53 = vmul.f32 %v4805_v51, %v1483_v52 }
 0x64f   : > { %1487 = vrot.lane.b32.xlu1 %v1485_v53, %s5685_s16  ;;  %v6739_v53 = vstv %s1631_s17  ;;  %s2255_s17 = scalar_select %p2254_p6, 1, 0 }
 0x651   : > { %s2256_s4 = scvt.s32.f32 %s2255_s17 }
 0x653   : > { %s2483_s3 = ssub.f32 1.0, %s2256_s4 }
 0x6c1   : > { %v1488_v55 = vpop.permute.xlu1 %1487 }
 0x6c2   : > { %v1490_v56 = vadd.f32 %v1488_v55, %v1480_v54 }
 0x6c4   : > { %4806 = vtanh.f32 %v1490_v56  ;;  %v1503_v14 = vmul.f32 %v6696_v61, %v1490_v56 }
 0x6c6   : > { %v1504_v15 = vadd.f32 %v1503_v14, %v1501_v62 }
 0x6c8   : > { %v1595_v17 = vrot.slane %v1504_v15, 7  ;;  %v1624_v18 = vmul.f32 %v6715_v16, %v1504_v15 }
 0x6ca   : > { %v1626_v23 = vrot.slane %v1624_v18, 7 }
 0x6d1   : > { %v4807_v57 = vpop.eup %4806 }
 0x6d2   : > { %1493 = vrot.lane.b32.xlu0 %v4807_v57, %s5685_s16 }
 0x744   : > { %v1494_v59 = vpop.permute.xlu0 %1493 }
 0x745   : > { %v1496_v60 = vmul.f32 %v4805_v51, %v1494_v59 }
 0x747   : > { %v6699_v63 = vmul.f32 %v6696_v61, %v1496_v60 }
 0x749   : > { %v1502_v1 = vadd.f32 %v1501_v62, %v6699_v63 }
 0x74b   : > { %1509 = vrot.lane.b32.xlu1 %v1502_v1, %s5686_s8  ;;  %v1618_v27 = vmul.f32 %v6715_v16, %v1502_v1 }
 0x74d   : > { %v1620_v31 = vrot.slane %v1618_v27, 7 }
 0x7bd   : > { %v1510_v2 = vpop.permute.xlu1 %1509 }
 0x7be   : > { %4302 = vmatmul.mubr.msk.f32.vlgmr.msra.gmra.mxu1 %vm1398_vm2, %v1510_v2 }
 0x7bf   : > { %4312 = vmatpush3.msra.mxu1 %v6658_v33  ;;  %4315 = vmatprep.mubr.msk.f32.mxu1 %vm5683_vm0, %v5682_v0 }
 0x7c0   : > { %4313 = vmatprep.subr.mxu1 %v5682_v0 }
 0x7c1   : > { %4314 = vmatpush3.msra.mxu1 %v6666_v35 }
 0x7c2   : > { %4325 = vmatprep.subr.mxu1 %v5682_v0 }
 0x87e   : > { %v1579_v3 = vpop.f32.mrf.mxu1 }
 0x87f   : > { %v1584_v4 = vrot.slane %v1579_v3, 7 }
 0x880   : > { %v4303_v5 = vpop.f32.mrf.mxu1 }
 0x881   : > { %v1586_v6 = vadd.f32 %v1584_v4, %v6686_v44 }
 0x883   : > { %4808 = vtanh.f32 %v1586_v6  ;;  %v4128_v8 = vmul.f32 -1.442695, %v1586_v6 }
 0x885   : > { %4810 = vpow2.f32 %v4128_v8 }
 0x890   : > { %v4809_v7 = vpop.eup %4808 }
 0x891   : > { %1599 = vrot.lane.b32.xlu1 %v4809_v7, %s5684_s1 }
 0x892   : > { %v4811_v9 = vpop.eup %4810 }
 0x893   : > { %v1590_v10 = vadd.f32 1.0, %v4811_v9 }
 0x895   : > { %4812 = vrcp.f32 %v1590_v10 }
 0x8a2   : > { %v4813_v11 = vpop.eup %4812 }
 0x8a3   : > { %v1597_v19 = vmul.f32 %v4813_v11, %v1595_v17 }
 0x903   : > { %v1600_v12 = vpop.permute.xlu1 %1599 }
 0x904   : > { %v1602_v13 = vmul.f32 %v4813_v11, %v1600_v12 }
 0x906   : > { %1604 = vrot.lane.b32.xlu1 %v1602_v13, %s5685_s16 }
 0x978   : > { %v1605_v21 = vpop.permute.xlu1 %1604 }
 0x979   : > { %v1607_v22 = vadd.f32 %v1605_v21, %v1597_v19  ;;  %v6760_v21 = vstv %s1866_s18 }
 0x97b   : > { %4814 = vtanh.f32 %v1607_v22  ;;  %v1623_v24 = vmul.f32 %v6718_v20, %v1607_v22 }
 0x97d   : > { %v1628_v25 = vadd.f32 %v1626_v23, %v1623_v24 }
 0x97f   : > { %v1720_v50 = vrot.slane %v1628_v25, 7  ;;  %v1749_v51 = vmul.f32 %v6736_v49, %v1628_v25  ;;  %v6763_v25 = vstv %s1756_s13  ;;  %s7498_s13 = sld [smem:[#allocation100_spill]] }
 0x981   : > { %v1751_v56 = vrot.slane %v1749_v51, 7 }
 0x988   : > { %v4815_v26 = vpop.eup %4814 }
 0x989   : > { %1610 = vrot.lane.b32.xlu1 %v4815_v26, %s5685_s16 }
 0x9fb   : > { %v1611_v28 = vpop.permute.xlu1 %1610 }
 0x9fc   : > { %v1613_v29 = vmul.f32 %v4813_v11, %v1611_v28 }
 0x9fe   : > { %v1615_v30 = vmul.f32 %v6718_v20, %v1613_v29 }
 0xa00   : > { %v1622_v32 = vadd.f32 %v1620_v31, %v1615_v30  ;;  %v2367_v4 = vsel %vm2366_vm3, %v6699_v63, %v1615_v30 }
 0xa02   : > { %v1633_v34 = vrot.slane %v1622_v32, 1  ;;  %v1743_v60 = vmul.f32 %v6736_v49, %v1622_v32 }
 0xa04   : > { %1634 = vrot.lane.b32.xlu1 %v1633_v34, %s5686_s8  ;;  %v1745_v2 = vrot.slane %v1743_v60, 7 }
 0xa76   : > { %v1635_v36 = vpop.permute.xlu1 %1634 }
 0xa77   : > { %4309 = vmatmul.mubr.msk.f32.vlgmr.msra.gmra.mxu0 %vm1398_vm2, %v1635_v36 }
 0xa78   : > { %4319 = vmatpush3.msra.mxu0 %v6658_v33  ;;  %4322 = vmatprep.mubr.msk.f32.mxu0 %vm5683_vm0, %v5682_v0 }
 0xa79   : > { %4320 = vmatprep.subr.mxu0 %v5682_v0 }
 0xa7a   : > { %4321 = vmatpush3.msra.mxu0 %v6666_v35 }
 0xa7b   : > { %4332 = vmatprep.subr.mxu0 %v5682_v0 }
 0xb37   : > { %v1704_v37 = vpop.f32.mrf.mxu0 }
 0xb38   : > { %v1709_v38 = vrot.slane %v1704_v37, 6 }
 0xb39   : > { %v4310_v39 = vpop.f32.mrf.mxu0 }
 0xb3a   : > { %v1711_v40 = vadd.f32 %v1709_v38, %v6686_v44 }
 0xb3c   : > { %4816 = vtanh.f32 %v1711_v40  ;;  %v4130_v42 = vmul.f32 -1.442695, %v1711_v40 }
 0xb3e   : > { %4818 = vpow2.f32 %v4130_v42 }
 0xb49   : > { %v4817_v41 = vpop.eup %4816 }
 0xb4a   : > { %1724 = vrot.lane.b32.xlu1 %v4817_v41, %s5684_s1 }
 0xb4b   : > { %v4819_v43 = vpop.eup %4818 }
 0xb4c   : > { %v1715_v45 = vadd.f32 1.0, %v4819_v43 }
 0xb4e   : > { %4820 = vrcp.f32 %v1715_v45 }
 0xb5b   : > { %v4821_v46 = vpop.eup %4820 }
 0xb5c   : > { %v1722_v52 = vmul.f32 %v4821_v46, %v1720_v50 }
 0xbbc   : > { %v1725_v47 = vpop.permute.xlu1 %1724 }
 0xbbd   : > { %v1727_v48 = vmul.f32 %v4821_v46, %v1725_v47 }
 0xbbf   : > { %1729 = vrot.lane.b32.xlu0 %v1727_v48, %s5685_s16 }
 0xc31   : > { %v1730_v54 = vpop.permute.xlu0 %1729 }
 0xc32   : > { %v1732_v55 = vadd.f32 %v1730_v54, %v1722_v52 }
 0xc34   : > { %4822 = vtanh.f32 %v1732_v55  ;;  %v1748_v57 = vmul.f32 %v6739_v53, %v1732_v55 }
 0xc36   : > { %v1753_v58 = vadd.f32 %v1751_v56, %v1748_v57  ;;  %v6782_v57 = vstv %s1991_s30 }
 0xc38   : > { %v1845_v22 = vrot.slane %v1753_v58, 7  ;;  %v1874_v23 = vmul.f32 %v6760_v21, %v1753_v58 }
 0xc3a   : > { %v1876_v28 = vrot.slane %v1874_v23, 7 }
 0xc41   : > { %v4823_v59 = vpop.eup %4822 }
 0xc42   : > { %1735 = vrot.lane.b32.xlu1 %v4823_v59, %s5685_s16 }
 0xcb4   : > { %v1736_v62 = vpop.permute.xlu1 %1735 }
 0xcb5   : > { %v1738_v1 = vmul.f32 %v4821_v46, %v1736_v62  ;;  %v6785_v62 = vstv %s1881_s24  ;;  %s4168_s24 = sshll.u32 %s5939_s26, 7 }
 0xcb7   : > { %v1740_v3 = vmul.f32 %v6739_v53, %v1738_v1 }
 0xcb9   : > { %v1747_v5 = vadd.f32 %v1745_v2, %v1740_v3  ;;  %v2369_v6 = vsel %vm2368_vm4, %v2367_v4, %v1740_v3 }
 0xcbb   : > { %v1758_v7 = vrot.slane %v1747_v5, 2  ;;  %v1868_v32 = vmul.f32 %v6760_v21, %v1747_v5 }
 0xcbd   : > { %1759 = vrot.lane.b32.xlu0 %v1758_v7, %s5686_s8  ;;  %v1870_v37 = vrot.slane %v1868_v32, 7  ;;  %v6807_v32 = vstv %s2006_s11 }
 0xd2f   : > { %v1760_v8 = vpop.permute.xlu0 %1759 }
 0xd30   : > { %4316 = vmatmul.mubr.msk.f32.vlgmr.msra.gmra.mxu1 %vm1398_vm2, %v1760_v8 }
 0xd31   : > { %4326 = vmatpush3.msra.mxu1 %v6658_v33  ;;  %4329 = vmatprep.mubr.msk.f32.mxu1 %vm5683_vm0, %v5682_v0 }
 0xd32   : > { %4327 = vmatprep.subr.mxu1 %v5682_v0 }
 0xd33   : > { %4328 = vmatpush3.msra.mxu1 %v6666_v35 }
 0xd34   : > { %4339 = vmatprep.subr.mxu1 %v5682_v0 }
 0xdf0   : > { %v1829_v63 = vpop.f32.mrf.mxu1 }
 0xdf1   : > { %v1834_v9 = vrot.slane %v1829_v63, 5 }
 0xdf2   : > { %v4317_v10 = vpop.f32.mrf.mxu1 }
 0xdf3   : > { %v1836_v11 = vadd.f32 %v1834_v9, %v6686_v44 }
 0xdf5   : > { %4824 = vtanh.f32 %v1836_v11  ;;  %v4132_v13 = vmul.f32 -1.442695, %v1836_v11 }
 0xdf7   : > { %4826 = vpow2.f32 %v4132_v13 }
 0xe02   : > { %v4825_v12 = vpop.eup %4824 }
 0xe03   : > { %1849 = vrot.lane.b32.xlu1 %v4825_v12, %s5684_s1 }
 0xe04   : > { %v4827_v14 = vpop.eup %4826 }
 0xe05   : > { %v1840_v15 = vadd.f32 1.0, %v4827_v14 }
 0xe07   : > { %4828 = vrcp.f32 %v1840_v15 }
 0xe14   : > { %v4829_v17 = vpop.eup %4828 }
 0xe15   : > { %v1847_v24 = vmul.f32 %v4829_v17, %v1845_v22 }
 0xe75   : > { %v1850_v18 = vpop.permute.xlu1 %1849 }
 0xe76   : > { %v1852_v19 = vmul.f32 %v4829_v17, %v1850_v18 }
 0xe78   : > { %1854 = vrot.lane.b32.xlu0 %v1852_v19, %s5685_s16 }
 0xeea   : > { %v1855_v26 = vpop.permute.xlu0 %1854 }
 0xeeb   : > { %v1857_v27 = vadd.f32 %v1855_v26, %v1847_v24 }
 0xeed   : > { %4830 = vtanh.f32 %v1857_v27  ;;  %v1873_v29 = vmul.f32 %v6763_v25, %v1857_v27 }
 0xeef   : > { %v1878_v30 = vadd.f32 %v1876_v28, %v1873_v29  ;;  %v6804_v28 = vstv %s2116_s14  ;;  %s1083_s14 = scalar_lea.vmem [#allocation31], %s6541_s5 }
 0xef0   : > { %s3733_s30 = sshll.u32 %s1083_s14, 4  ;;  %s3734_s30 = int_to_ptr.vmem [resolvable:$true] %s3733_s30 }
 0xef1   : > { %v1970_v58 = vrot.slane %v1878_v30, 7  ;;  %v1999_v59 = vmul.f32 %v6782_v57, %v1878_v30 }
 0xef3   : > { %v2001_v3 = vrot.slane %v1999_v59, 7 }
 0xefa   : > { %v4831_v31 = vpop.eup %4830 }
 0xefb   : > { %1860 = vrot.lane.b32.xlu1 %v4831_v31, %s5685_s16 }
 0xf6d   : > { %v1861_v34 = vpop.permute.xlu1 %1860 }
 0xf6e   : > { %v1863_v36 = vmul.f32 %v4829_v17, %v1861_v34 }
 0xf70   : > { %v1865_v38 = vmul.f32 %v6763_v25, %v1863_v36 }
 0xf72   : > { %v1872_v39 = vadd.f32 %v1870_v37, %v1865_v38  ;;  %v2371_v40 = vsel %vm2370_vm5, %v2369_v6, %v1865_v38 }
 0xf74   : > { %v1883_v41 = vrot.slane %v1872_v39, 3  ;;  %v1993_v7 = vmul.f32 %v6782_v57, %v1872_v39 }
 0xf76   : > { %1884 = vrot.lane.b32.xlu0 %v1883_v41, %s5686_s8  ;;  %v1995_v9 = vrot.slane %v1993_v7, 7 }
 0xfe8   : > { %v1885_v42 = vpop.permute.xlu0 %1884 }
 0xfe9   : > { %4323 = vmatmul.mubr.msk.f32.vlgmr.msra.gmra.mxu0 %vm1398_vm2, %v1885_v42 }
 0xfea   : > { %4333 = vmatpush3.msra.mxu0 %v6658_v33  ;;  %4336 = vmatprep.mubr.msk.f32.mxu0 %vm5683_vm0, %v5682_v0 }
 0xfeb   : > { %4334 = vmatprep.subr.mxu0 %v5682_v0 }
 0xfec   : > { %4335 = vmatpush3.msra.mxu0 %v6666_v35 }
 0xfed   : > { %4346 = vmatprep.subr.mxu0 %v5682_v0 }
0x10a9   : > { %v1954_v43 = vpop.f32.mrf.mxu0 }
0x10aa   : > { %v1959_v45 = vrot.slane %v1954_v43, 4 }
0x10ab   : > { %v4324_v46 = vpop.f32.mrf.mxu0 }
0x10ac   : > { %v1961_v47 = vadd.f32 %v1959_v45, %v6686_v44 }
0x10ae   : > { %4832 = vtanh.f32 %v1961_v47  ;;  %v4134_v50 = vmul.f32 -1.442695, %v1961_v47 }
0x10b0   : > { %4834 = vpow2.f32 %v4134_v50 }
0x10bb   : > { %v4833_v48 = vpop.eup %4832 }
0x10bc   : > { %1974 = vrot.lane.b32.xlu1 %v4833_v48, %s5684_s1 }
0x10bd   : > { %v4835_v51 = vpop.eup %4834 }
0x10be   : > { %v1965_v52 = vadd.f32 1.0, %v4835_v51  ;;  %v6822_v51 = vld [vmem:[#allocation20 + $0x8] sm:$0xff] }
0x10c0   : > { %4836 = vrcp.f32 %v1965_v52 }
0x10cd   : > { %v4837_v54 = vpop.eup %4836 }
0x10ce   : > { %v1972_v60 = vmul.f32 %v4837_v54, %v1970_v58 }
0x112e   : > { %v1975_v55 = vpop.permute.xlu1 %1974 }
0x112f   : > { %v1977_v56 = vmul.f32 %v4837_v54, %v1975_v55 }
0x1131   : > { %1979 = vrot.lane.b32.xlu0 %v1977_v56, %s5685_s16 }
0x11a3   : > { %v1980_v1 = vpop.permute.xlu0 %1979 }
0x11a4   : > { %v1982_v2 = vadd.f32 %v1980_v1, %v1972_v60 }
0x11a6   : > { %4838 = vtanh.f32 %v1982_v2  ;;  %v1998_v4 = vmul.f32 %v6785_v62, %v1982_v2 }
0x11a8   : > { %v2003_v5 = vadd.f32 %v2001_v3, %v1998_v4 }
0x11aa   : > { %v2095_v29 = vrot.slane %v2003_v5, 7  ;;  %v2124_v30 = vmul.f32 %v6804_v28, %v2003_v5 }
0x11ac   : > { %v2126_v37 = vrot.slane %v2124_v30, 7 }
0x11b3   : > { %v4839_v6 = vpop.eup %4838 }
0x11b4   : > { %1985 = vrot.lane.b32.xlu1 %v4839_v6, %s5685_s16 }
0x1226   : > { %v1986_v8 = vpop.permute.xlu1 %1985 }
0x1227   : > { %v1988_v63 = vmul.f32 %v4837_v54, %v1986_v8  ;;  %v6825_v54 = vld [vmem:[#allocation20] sm:$0xff] }
0x1229   : > { %v1990_v10 = vmul.f32 %v6785_v62, %v1988_v63 }
0x122b   : > { %v1997_v11 = vadd.f32 %v1995_v9, %v1990_v10  ;;  %v2373_v12 = vsel %vm2372_vm6, %v2371_v40, %v1990_v10 }
0x122d   : > { %v2008_v13 = vrot.slane %v1997_v11, 4  ;;  %v2118_v41 = vmul.f32 %v6804_v28, %v1997_v11 }
0x122f   : > { %2009 = vrot.lane.b32.xlu0 %v2008_v13, %s5686_s8  ;;  %v2120_v45 = vrot.slane %v2118_v41, 7 }
0x12a1   : > { %v2010_v14 = vpop.permute.xlu0 %2009 }
0x12a2   : > { %4330 = vmatmul.mubr.msk.f32.vlgmr.msra.gmra.mxu1 %vm1398_vm2, %v2010_v14 }
0x12a3   : > { %4340 = vmatpush3.msra.mxu1 %v6658_v33  ;;  %4343 = vmatprep.mubr.msk.f32.mxu1 %vm5683_vm0, %v5682_v0 }
0x12a4   : > { %4341 = vmatprep.subr.mxu1 %v5682_v0 }
0x12a5   : > { %4342 = vmatpush3.msra.mxu1 %v6666_v35 }
0x12a6   : > { %4353 = vmatprep.subr.mxu1 %v5682_v0 }
0x1362   : > { %v2079_v15 = vpop.f32.mrf.mxu1 }
0x1363   : > { %v2084_v17 = vrot.slane %v2079_v15, 3  ;;  %v6847_v15 = vstv %s2241_s10  ;;  %s3711_s10 = scalar_lea.sflag [#allocation7], %s6538_s12 }
0x1364   : > { %v4331_v18 = vpop.f32.mrf.mxu1 }
0x1365   : > { %v2086_v19 = vadd.f32 %v2084_v17, %v6686_v44 }
0x1367   : > { %4840 = vtanh.f32 %v2086_v19  ;;  %v4136_v33 = vmul.f32 -1.442695, %v2086_v19 }
0x1369   : > { %4842 = vpow2.f32 %v4136_v33 }
0x1374   : > { %v4841_v22 = vpop.eup %4840 }
0x1375   : > { %2099 = vrot.lane.b32.xlu1 %v4841_v22, %s5684_s1  ;;  %v6852_v22 = vstv %s2131_s0  ;;  %s7499_s0 = sld [smem:[#allocation106_spill]] }
0x1376   : > { %v4843_v23 = vpop.eup %4842 }
0x1377   : > { %v2090_v24 = vadd.f32 1.0, %v4843_v23 }
0x1379   : > { %4844 = vrcp.f32 %v2090_v24 }
0x1386   : > { %v4845_v26 = vpop.eup %4844 }
0x1387   : > { %v2097_v31 = vmul.f32 %v4845_v26, %v2095_v29 }
0x13e7   : > { %v2100_v27 = vpop.permute.xlu1 %2099 }
0x13e8   : > { %v2102_v35 = vmul.f32 %v4845_v26, %v2100_v27 }
0x13ea   : > { %2104 = vrot.lane.b32.xlu0 %v2102_v35, %s5685_s16 }
0x145c   : > { %v2105_v34 = vpop.permute.xlu0 %2104 }
0x145d   : > { %v2107_v36 = vadd.f32 %v2105_v34, %v2097_v31 }
0x145f   : > { %4846 = vtanh.f32 %v2107_v36  ;;  %v2123_v38 = vmul.f32 %v6807_v32, %v2107_v36 }
0x1461   : > { %v6810_v39 = vadd.f32 %v2126_v37, %v2123_v38 }
0x1463   : > { %v2220_v17 = vrot.slane %v6810_v39, 7  ;;  %v2249_v18 = vmul.f32 %v6847_v15, %v6810_v39 }
0x1465   : > { %v2251_v27 = vrot.slane %v2249_v18, 7 }
0x146c   : > { %v4847_v40 = vpop.eup %4846 }
0x146d   : > { %2110 = vrot.lane.b32.xlu1 %v4847_v40, %s5685_s16 }
0x14df   : > { %v2111_v42 = vpop.permute.xlu1 %2110 }
0x14e0   : > { %v2113_v43 = vmul.f32 %v4845_v26, %v2111_v42 }
0x14e2   : > { %v2115_v46 = vmul.f32 %v6807_v32, %v2113_v43 }
0x14e4   : > { %v6815_v47 = vadd.f32 %v2120_v45, %v2115_v46  ;;  %v6818_v48 = vsel %vm2374_vm7, %v2373_v12, %v2115_v46 }
0x14e6   : > { %v2133_v50 = vrot.slane %v6815_v47, 5  ;;  %v2243_v38 = vmul.f32 %v6847_v15, %v6815_v47  ;;  %v2484_v47 = vstv %s2483_s3  ;;  %s5690_s3 = smov [#allocation31]  }
0x14e8   : > { %2134 = vrot.lane.b32.xlu0 %v2133_v50, %s5686_s8  ;;  %v2245_v42 = vrot.slane %v2243_v38, 7 }
0x155a   : > { %v2135_v52 = vpop.permute.xlu0 %2134 }
0x155b   : > { %4337 = vmatmul.mubr.msk.f32.vlgmr.msra.gmra.mxu0 %vm1398_vm2, %v2135_v52 }
0x155c   : > { %4347 = vmatpush3.msra.mxu0 %v6822_v51  ;;  %4350 = vmatprep.mubr.msk.f32.mxu0 %vm5683_vm0, %v5682_v0 }
0x155d   : > { %4348 = vmatprep.subr.mxu0 %v5682_v0 }
0x155e   : > { %4349 = vmatpush3.msra.mxu0 %v6825_v54 }
0x155f   : > { %4351 = vmatmul.mubr.f32.vlgmr.msra.gmra.mxu0 %v5682_v0  ;;  %4360 = vmatprep.subr.mxu0 %v5682_v0 }
0x1560   : > { %4361 = vmatpush3.msra.mxu0 %v6822_v51  ;;  %4364 = vmatprep.mubr.msk.f32.mxu0 %vm5683_vm0, %v5682_v0 }
0x1561   : > { %4362 = vmatprep.subr.mxu0 %v5682_v0 }
0x1562   : > { %4363 = vmatpush3.msra.mxu0 %v6825_v54 }
0x1563   : > { %4374 = vmatprep.subr.mxu0 %v5682_v0 }
0x161b   : > { %v2204_v55 = vpop.f32.mrf.mxu0 }
0x161c   : > { %v2209_v56 = vrot.slane %v2204_v55, 2 }
0x161d   : > { %v4338_v58 = vpop.f32.mrf.mxu0 }
0x161e   : > { %v2211_v59 = vadd.f32 %v2209_v56, %v6686_v44  ;;  %v6869_v56 = vstv %s2256_s4  ;;  %v2485_v58 = vmul.f32 0.0, %v2484_v47  ;;  %s5376_s4 = scalar_lea.vmem %s3734_s30, 128 }
0x161f   : > { %v2448_v60 = vpop.f32.mrf.mxu0  ;;  %p5377_p13 = scmp.ne.s32.totalorder %s3734_s30, %s5376_s4 }
0x1620   : > { %4848 = vtanh.f32 %v2211_v59  ;;  %v2453_v1 = vrot.slane %v2448_v60, 1  ;;  %v4138_v4 = vmul.f32 -1.442695, %v2211_v59 }
0x1621   : > { %v4352_v2 = vpop.f32.mrf.mxu0  ;;  %p5378_p7 = pnand %p5377_p13, %p7503_p3 }
0x1622   : > { %2454 = vrot.lane.b32.xlu1 %v2453_v1, %s5687_s7  ;;  %4850 = vpow2.f32 %v4138_v4 }
0x1623   : > { %p5379_p9 = pneg %p5378_p7 }
0x162d   : > { %v4849_v3 = vpop.eup %4848 }
0x162e   : > { %2224 = vrot.lane.b32.xlu0 %v4849_v3, %s5684_s1 }
0x162f   : > { %v4851_v5 = vpop.eup %4850 }
0x1630   : > { %v2215_v6 = vadd.f32 1.0, %v4851_v5 }
0x1632   : > { %4852 = vrcp.f32 %v2215_v6 }
0x163f   : > { %v4853_v63 = vpop.eup %4852 }
0x1640   : > { %v2222_v19 = vmul.f32 %v4853_v63, %v2220_v17 }
0x1694   : > { %v2455_v7 = vpop.permute.xlu1 %2454 }
0x1695   : > { %v2457_v8 = vadd.f32 %v2455_v7, %v6686_v44 }
0x1697   : > { %4854 = vtanh.f32 %v2457_v8  ;;  %v4141_v12 = vmul.f32 -1.442695, %v2457_v8 }
0x1699   : > { %4856 = vpow2.f32 %v4141_v12 }
0x16a0   : > { %v2225_v9 = vpop.permute.xlu0 %2224 }
0x16a1   : > { %v2227_v10 = vmul.f32 %v4853_v63, %v2225_v9 }
0x16a3   : > { %2229 = vrot.lane.b32.xlu0 %v2227_v10, %s5685_s16 }
0x16a4   : > { %v4855_v11 = vpop.eup %4854 }
0x16a5   : > { %2467 = vrot.lane.b32.xlu1 %v4855_v11, %s5684_s1 }
0x16a6   : > { %v4857_v13 = vpop.eup %4856 }
0x16a7   : > { %v2461_v14 = vadd.f32 1.0, %v4857_v13 }
0x16a9   : > { %4858 = vrcp.f32 %v2461_v14 }
0x16b6   : > { %v4859_v24 = vpop.eup %4858 }
0x16b7   : > { %v2465_v34 = vmul.f32 0.0, %v4859_v24 }
0x1715   : > { %v2230_v33 = vpop.permute.xlu0 %2229 }
0x1716   : > { %v2232_v23 = vadd.f32 %v2230_v33, %v2222_v19 }
0x1717   : > { %v2468_v26 = vpop.permute.xlu1 %2467 }
0x1718   : > { %4860 = vtanh.f32 %v2232_v23  ;;  %v2248_v35 = vmul.f32 %v6852_v22, %v2232_v23  ;;  %v2470_v29 = vmul.f32 %v4859_v24, %v2468_v26 }
0x171a   : > { %v6855_v30 = vadd.f32 %v2251_v27, %v2248_v35  ;;  %2472 = vrot.lane.b32.xlu1 %v2470_v29, %s5685_s16 }
0x1725   : > { %v4861_v31 = vpop.eup %4860 }
0x1726   : > { %2235 = vrot.lane.b32.xlu0 %v4861_v31, %s5685_s16 }
0x178c   : > { %v2473_v36 = vpop.permute.xlu1 %2472 }
0x178d   : > { %v2475_v37 = vadd.f32 %v2473_v36, %v2465_v34 }
0x178f   : > { %4862 = vtanh.f32 %v2475_v37  ;;  %v2487_v18 = vmul.f32 %v2475_v37, %v6869_v56 }
0x1791   : > { %v2488_v19 = vadd.f32 %v2487_v18, %v2485_v58 }
0x1793   : > { %v2579_v33 = vrot.slane %v2488_v19, 1  ;;  %v2605_v23 = vmul.f32 %v2488_v19, %v6847_v15 }
0x1795   : > { %v2607_v35 = vrot.slane %v2605_v23, 1 }
0x1798   : > { %v2236_v39 = vpop.permute.xlu0 %2235 }
0x1799   : > { %v2238_v40 = vmul.f32 %v4853_v63, %v2236_v39 }
0x179b   : > { %v2240_v41 = vmul.f32 %v6852_v22, %v2238_v40 }
0x179c   : > { %v4863_v43 = vpop.eup %4862 }
0x179d   : > { %2478 = vrot.lane.b32.xlu1 %v4863_v43, %s5685_s16  ;;  %v2247_v45 = vadd.f32 %v2245_v42, %v2240_v41  ;;  %v6865_v46 = vsel %vm2376_vm8, %v6818_v48, %v2240_v41 }
0x179f   : > { %v2258_v50 = vrot.slane %v2247_v45, 6 }
0x17a1   : > { %2259 = vrot.lane.b32.xlu0 %v2258_v50, %s5686_s8 }
0x180f   : > { %v2479_v52 = vpop.permute.xlu1 %2478 }
0x1810   : > { %v2481_v55 = vmul.f32 %v4859_v24, %v2479_v52 }
0x1812   : > { %v6872_v59 = vmul.f32 %v2481_v55, %v6869_v56 }
0x1813   : > { %v2260_v60 = vpop.permute.xlu0 %2259 }
0x1814   : > { %v2486_v48 = vadd.f32 %v2485_v58, %v6872_v59  ;;  %4344 = vmatmul.mubr.msk.f32.vlgmr.msra.gmra.mxu1 %vm1398_vm2, %v2260_v60 }
0x1815   : > { %4354 = vmatpush3.msra.mxu1 %v6822_v51  ;;  %4357 = vmatprep.mubr.msk.f32.mxu1 %vm5683_vm0, %v5682_v0 }
0x1816   : > { %v2490_v1 = vrot.slane %v2486_v48, 7  ;;  %4355 = vmatprep.subr.mxu1 %v5682_v0  ;;  %v2599_v36 = vmul.f32 %v2486_v48, %v6847_v15 }
0x1817   : > { %4356 = vmatpush3.msra.mxu1 %v6825_v54 }
0x1818   : > { %2491 = vrot.lane.b32.xlu1 %v2490_v1, %s5688_s6  ;;  %4367 = vmatprep.subr.mxu1 %v5682_v0  ;;  %v2601_v37 = vrot.slane %v2599_v36, 1 }
0x188a   : > { %v2492_v2 = vpop.permute.xlu1 %2491 }
0x188b   : > { %4358 = vmatmul.mubr.msk.f32.vlgmr.msra.gmra.mxu1 %vm1398_vm2, %v2492_v2 }
0x188c   : > { %4368 = vmatpush3.msra.mxu1 %v6822_v51  ;;  %4371 = vmatprep.mubr.msk.f32.mxu1 %vm5683_vm0, %v5682_v0 }
0x188d   : > { %4369 = vmatprep.subr.mxu1 %v5682_v0 }
0x188e   : > { %4370 = vmatpush3.msra.mxu1 %v6825_v54 }
0x188f   : > { %4381 = vmatprep.subr.mxu1 %v5682_v0 }
0x18d4   : > { %v6890_v3 = vpop.f32.mrf.mxu1 }
0x18d6   : > { %v4345_v4 = vpop.f32.mrf.mxu1 }
0x194b   : > { %v2561_v5 = vpop.f32.mrf.mxu1 }
0x194c   : > { %v2566_v6 = vrot.slane %v2561_v5, 2 }
0x194d   : > { %v4359_v7 = vpop.f32.mrf.mxu1 }
0x194e   : > { %2567 = vrot.lane.b32.xlu0 %v2566_v6, %s5687_s7 }
0x19c0   : > { %v2568_v8 = vpop.permute.xlu0 %2567 }
0x19c1   : > { %v2570_v63 = vadd.f32 %v2568_v8, %v6686_v44 }
0x19c3   : > { %4864 = vtanh.f32 %v2570_v63  ;;  %v4143_v10 = vmul.f32 -1.442695, %v2570_v63 }
0x19c5   : > { %4866 = vpow2.f32 %v4143_v10 }
0x19d0   : > { %v4865_v9 = vpop.eup %4864 }
0x19d1   : > { %2583 = vrot.lane.b32.xlu1 %v4865_v9, %s5684_s1 }
0x19d2   : > { %v4867_v11 = vpop.eup %4866 }
0x19d3   : > { %v2574_v12 = vadd.f32 1.0, %v4867_v11 }
0x19d5   : > { %4868 = vrcp.f32 %v2574_v12 }
0x19e2   : > { %v4869_v13 = vpop.eup %4868 }
0x19e3   : > { %v2581_v24 = vmul.f32 %v4869_v13, %v2579_v33 }
0x1a43   : > { %v2584_v14 = vpop.permute.xlu1 %2583 }
0x1a44   : > { %v2586_v17 = vmul.f32 %v4869_v13, %v2584_v14 }
0x1a46   : > { %2588 = vrot.lane.b32.xlu0 %v2586_v17, %s5685_s16 }
0x1ab8   : > { %v2589_v26 = vpop.permute.xlu0 %2588 }
0x1ab9   : > { %v2591_v27 = vadd.f32 %v2589_v26, %v2581_v24 }
0x1abb   : > { %4870 = vtanh.f32 %v2591_v27  ;;  %v2604_v29 = vmul.f32 %v2591_v27, %v6852_v22 }
0x1abd   : > { %v2609_v31 = vadd.f32 %v2607_v35, %v2604_v29 }
0x1abf   : > { %v2700_v4 = vrot.slane %v2609_v31, 1  ;;  %v2726_v5 = vmul.f32 %v2609_v31, %v6804_v28 }
0x1ac1   : > { %v2728_v63 = vrot.slane %v2726_v5, 1 }
0x1ac8   : > { %v4871_v34 = vpop.eup %4870 }
0x1ac9   : > { %2594 = vrot.lane.b32.xlu1 %v4871_v34, %s5685_s16 }
0x1b3b   : > { %v2595_v38 = vpop.permute.xlu1 %2594 }
0x1b3c   : > { %v2597_v39 = vmul.f32 %v4869_v13, %v2595_v38 }
0x1b3e   : > { %v6902_v40 = vmul.f32 %v2597_v39, %v6852_v22 }
0x1b40   : > { %v2603_v41 = vadd.f32 %v2601_v37, %v6902_v40 }
0x1b42   : > { %v2611_v42 = vrot.slane %v2603_v41, 6  ;;  %v2720_v12 = vmul.f32 %v2603_v41, %v6804_v28 }
0x1b44   : > { %2612 = vrot.lane.b32.xlu0 %v2611_v42, %s5688_s6  ;;  %v2722_v17 = vrot.slane %v2720_v12, 1 }
0x1bb6   : > { %v2613_v43 = vpop.permute.xlu0 %2612 }
0x1bb7   : > { %4365 = vmatmul.mubr.msk.f32.vlgmr.msra.gmra.mxu0 %vm1398_vm2, %v2613_v43 }
0x1bb8   : > { %4375 = vmatpush3.msra.mxu0 %v6822_v51  ;;  %4378 = vmatprep.mubr.msk.f32.mxu0 %vm5683_vm0, %v5682_v0 }
0x1bb9   : > { %4376 = vmatprep.subr.mxu0 %v5682_v0 }
0x1bba   : > { %4377 = vmatpush3.msra.mxu0 %v6825_v54 }
0x1bbb   : > { %4388 = vmatprep.subr.mxu0 %v5682_v0 }
0x1c77   : > { %v2682_v15 = vpop.f32.mrf.mxu0 }
0x1c78   : > { %v2687_v22 = vrot.slane %v2682_v15, 3 }
0x1c79   : > { %v4366_v45 = vpop.f32.mrf.mxu0 }
0x1c7a   : > { %2688 = vrot.lane.b32.xlu1 %v2687_v22, %s5687_s7 }
0x1cec   : > { %v2689_v50 = vpop.permute.xlu1 %2688 }
0x1ced   : > { %v2691_v47 = vadd.f32 %v2689_v50, %v6686_v44 }
0x1cef   : > { %4872 = vtanh.f32 %v2691_v47  ;;  %v4145_v55 = vmul.f32 -1.442695, %v2691_v47 }
0x1cf1   : > { %4874 = vpow2.f32 %v4145_v55 }
0x1cfc   : > { %v4873_v52 = vpop.eup %4872 }
0x1cfd   : > { %2704 = vrot.lane.b32.xlu0 %v4873_v52, %s5684_s1 }
0x1cfe   : > { %v4875_v58 = vpop.eup %4874 }
0x1cff   : > { %v2695_v60 = vadd.f32 1.0, %v4875_v58 }
0x1d01   : > { %4876 = vrcp.f32 %v2695_v60 }
0x1d0e   : > { %v4877_v48 = vpop.eup %4876 }
0x1d0f   : > { %v2702_v6 = vmul.f32 %v4877_v48, %v2700_v4 }
0x1d6f   : > { %v2705_v1 = vpop.permute.xlu0 %2704 }
0x1d70   : > { %v2707_v2 = vmul.f32 %v4877_v48, %v2705_v1 }
0x1d72   : > { %2709 = vrot.lane.b32.xlu1 %v2707_v2, %s5685_s16 }
0x1de4   : > { %v2710_v7 = vpop.permute.xlu1 %2709 }
0x1de5   : > { %v2712_v8 = vadd.f32 %v2710_v7, %v2702_v6 }
0x1de7   : > { %4878 = vtanh.f32 %v2712_v8  ;;  %v2725_v9 = vmul.f32 %v2712_v8, %v6807_v32 }
0x1de9   : > { %v2730_v10 = vadd.f32 %v2728_v63, %v2725_v9 }
0x1deb   : > { %v2821_v37 = vrot.slane %v2730_v10, 1  ;;  %v2847_v41 = vmul.f32 %v2730_v10, %v6782_v57 }
0x1ded   : > { %v2849_v22 = vrot.slane %v2847_v41, 1 }
0x1df4   : > { %v4879_v11 = vpop.eup %4878 }
0x1df5   : > { %2715 = vrot.lane.b32.xlu0 %v4879_v11, %s5685_s16 }
0x1e67   : > { %v2716_v13 = vpop.permute.xlu0 %2715 }
0x1e68   : > { %v2718_v14 = vmul.f32 %v4877_v48, %v2716_v13 }
0x1e6a   : > { %v6922_v18 = vmul.f32 %v2718_v14, %v6807_v32 }
0x1e6c   : > { %v2724_v19 = vadd.f32 %v2722_v17, %v6922_v18 }
0x1e6e   : > { %v2732_v33 = vrot.slane %v2724_v19, 5  ;;  %v2841_v52 = vmul.f32 %v2724_v19, %v6782_v57 }
0x1e70   : > { %2733 = vrot.lane.b32.xlu1 %v2732_v33, %s5688_s6  ;;  %v2843_v60 = vrot.slane %v2841_v52, 1 }
0x1ee2   : > { %v2734_v23 = vpop.permute.xlu1 %2733 }
0x1ee3   : > { %4372 = vmatmul.mubr.msk.f32.vlgmr.msra.gmra.mxu1 %vm1398_vm2, %v2734_v23 }
0x1ee4   : > { %4382 = vmatpush3.msra.mxu1 %v6822_v51  ;;  %4385 = vmatprep.mubr.msk.f32.mxu1 %vm5683_vm0, %v5682_v0 }
0x1ee5   : > { %4383 = vmatprep.subr.mxu1 %v5682_v0 }
0x1ee6   : > { %4384 = vmatpush3.msra.mxu1 %v6825_v54 }
0x1ee7   : > { %4395 = vmatprep.subr.mxu1 %v5682_v0 }
0x1fa3   : > { %v2803_v28 = vpop.f32.mrf.mxu1 }
0x1fa4   : > { %v2808_v32 = vrot.slane %v2803_v28, 4 }
0x1fa5   : > { %v4373_v24 = vpop.f32.mrf.mxu1 }
0x1fa6   : > { %2809 = vrot.lane.b32.xlu0 %v2808_v32, %s5687_s7 }
0x2018   : > { %v2810_v26 = vpop.permute.xlu0 %2809 }
0x2019   : > { %v2812_v27 = vadd.f32 %v2810_v26, %v6686_v44 }
0x201b   : > { %4880 = vtanh.f32 %v2812_v27  ;;  %v4147_v29 = vmul.f32 -1.442695, %v2812_v27 }
0x201d   : > { %4882 = vpow2.f32 %v4147_v29 }
0x2028   : > { %v4881_v35 = vpop.eup %4880 }
0x2029   : > { %2825 = vrot.lane.b32.xlu1 %v4881_v35, %s5684_s1 }
0x202a   : > { %v4883_v31 = vpop.eup %4882 }
0x202b   : > { %v2816_v34 = vadd.f32 1.0, %v4883_v31 }
0x202d   : > { %4884 = vrcp.f32 %v2816_v34 }
0x203a   : > { %v4885_v36 = vpop.eup %4884 }
0x203b   : > { %v2823_v42 = vmul.f32 %v4885_v36, %v2821_v37 }
0x209b   : > { %v2826_v38 = vpop.permute.xlu1 %2825 }
0x209c   : > { %v2828_v39 = vmul.f32 %v4885_v36, %v2826_v38 }
0x209e   : > { %2830 = vrot.lane.b32.xlu0 %v2828_v39, %s5685_s16 }
0x2110   : > { %v2831_v43 = vpop.permute.xlu0 %2830 }
0x2111   : > { %v2833_v15 = vadd.f32 %v2831_v43, %v2823_v42 }
0x2113   : > { %4886 = vtanh.f32 %v2833_v15  ;;  %v2846_v45 = vmul.f32 %v2833_v15, %v6785_v62 }
0x2115   : > { %v2851_v50 = vadd.f32 %v2849_v22, %v2846_v45 }
0x2117   : > { %v2942_v14 = vrot.slane %v2851_v50, 1  ;;  %v2968_v17 = vmul.f32 %v2851_v50, %v6760_v21 }
0x2119   : > { %v2970_v28 = vrot.slane %v2968_v17, 1 }
0x2120   : > { %v4887_v47 = vpop.eup %4886 }
0x2121   : > { %2836 = vrot.lane.b32.xlu1 %v4887_v47, %s5685_s16 }
0x2193   : > { %v2837_v55 = vpop.permute.xlu1 %2836 }
0x2194   : > { %v2839_v58 = vmul.f32 %v4885_v36, %v2837_v55 }
0x2196   : > { %v6942_v48 = vmul.f32 %v2839_v58, %v6785_v62 }
0x2198   : > { %v2845_v1 = vadd.f32 %v2843_v60, %v6942_v48 }
0x219a   : > { %v2853_v2 = vrot.slane %v2845_v1, 4  ;;  %v2962_v27 = vmul.f32 %v2845_v1, %v6760_v21 }
0x219c   : > { %2854 = vrot.lane.b32.xlu0 %v2853_v2, %s5688_s6  ;;  %v2964_v31 = vrot.slane %v2962_v27, 1 }
0x220e   : > { %v2855_v4 = vpop.permute.xlu0 %2854 }
0x220f   : > { %4379 = vmatmul.mubr.msk.f32.vlgmr.msra.gmra.mxu0 %vm1398_vm2, %v2855_v4 }
0x2210   : > { %4389 = vmatpush3.msra.mxu0 %v6822_v51  ;;  %4392 = vmatprep.mubr.msk.f32.mxu0 %vm5683_vm0, %v5682_v0 }
0x2211   : > { %4390 = vmatprep.subr.mxu0 %v5682_v0 }
0x2212   : > { %4391 = vmatpush3.msra.mxu0 %v6825_v54 }
0x2213   : > { %4402 = vmatprep.subr.mxu0 %v5682_v0 }
0x22cf   : > { %v2924_v57 = vpop.f32.mrf.mxu0 }
0x22d0   : > { %v2929_v62 = vrot.slane %v2924_v57, 5 }
0x22d1   : > { %v4380_v5 = vpop.f32.mrf.mxu0 }
0x22d2   : > { %2930 = vrot.lane.b32.xlu1 %v2929_v62, %s5687_s7 }
0x2344   : > { %v2931_v6 = vpop.permute.xlu1 %2930 }
0x2345   : > { %v2933_v7 = vadd.f32 %v2931_v6, %v6686_v44 }
0x2347   : > { %4888 = vtanh.f32 %v2933_v7  ;;  %v4149_v63 = vmul.f32 -1.442695, %v2933_v7 }
0x2349   : > { %4890 = vpow2.f32 %v4149_v63 }
0x2354   : > { %v4889_v8 = vpop.eup %4888 }
0x2355   : > { %2946 = vrot.lane.b32.xlu0 %v4889_v8, %s5684_s1 }
0x2356   : > { %v4891_v9 = vpop.eup %4890 }
0x2357   : > { %v2937_v10 = vadd.f32 1.0, %v4891_v9 }
0x2359   : > { %4892 = vrcp.f32 %v2937_v10 }
0x2366   : > { %v4893_v11 = vpop.eup %4892 }
0x2367   : > { %v2944_v19 = vmul.f32 %v4893_v11, %v2942_v14 }
0x23c7   : > { %v2947_v12 = vpop.permute.xlu0 %2946 }
0x23c8   : > { %v2949_v13 = vmul.f32 %v4893_v11, %v2947_v12 }
0x23ca   : > { %2951 = vrot.lane.b32.xlu1 %v2949_v13, %s5685_s16 }
0x243c   : > { %v2952_v33 = vpop.permute.xlu1 %2951 }
0x243d   : > { %v2954_v23 = vadd.f32 %v2952_v33, %v2944_v19 }
0x243f   : > { %4894 = vtanh.f32 %v2954_v23  ;;  %v2967_v32 = vmul.f32 %v2954_v23, %v6763_v25 }
0x2441   : > { %v2972_v24 = vadd.f32 %v2970_v28, %v2967_v32 }
0x2443   : > { %v3063_v47 = vrot.slane %v2972_v24, 1  ;;  %v3089_v52 = vmul.f32 %v2972_v24, %v6736_v49 }
0x2445   : > { %v3091_v1 = vrot.slane %v3089_v52, 1 }
0x244c   : > { %v4895_v26 = vpop.eup %4894 }
0x244d   : > { %2957 = vrot.lane.b32.xlu0 %v4895_v26, %s5685_s16 }
0x24bf   : > { %v2958_v35 = vpop.permute.xlu0 %2957 }
0x24c0   : > { %v2960_v29 = vmul.f32 %v4893_v11, %v2958_v35 }
0x24c2   : > { %v6962_v34 = vmul.f32 %v2960_v29, %v6763_v25 }
0x24c4   : > { %v2966_v36 = vadd.f32 %v2964_v31, %v6962_v34 }
0x24c6   : > { %v2974_v38 = vrot.slane %v2966_v36, 3  ;;  %v3083_v62 = vmul.f32 %v2966_v36, %v6736_v49 }
0x24c8   : > { %2975 = vrot.lane.b32.xlu1 %v2974_v38, %s5688_s6  ;;  %v3085_v7 = vrot.slane %v3083_v62, 1 }
0x253a   : > { %v2976_v39 = vpop.permute.xlu1 %2975 }
0x253b   : > { %4386 = vmatmul.mubr.msk.f32.vlgmr.msra.gmra.mxu1 %vm1398_vm2, %v2976_v39 }
0x253c   : > { %4396 = vmatpush3.msra.mxu1 %v6822_v51  ;;  %4399 = vmatprep.mubr.msk.f32.mxu1 %vm5683_vm0, %v5682_v0 }
0x253d   : > { %4397 = vmatprep.subr.mxu1 %v5682_v0 }
0x253e   : > { %4398 = vmatpush3.msra.mxu1 %v6825_v54 }
0x253f   : > { %4413 = vmatprep.subr.mxu1 %v5682_v0 }
0x25fb   : > { %v3045_v21 = vpop.f32.mrf.mxu1 }
0x25fc   : > { %v3050_v25 = vrot.slane %v3045_v21, 6 }
0x25fd   : > { %v4387_v37 = vpop.f32.mrf.mxu1 }
0x25fe   : > { %3051 = vrot.lane.b32.xlu0 %v3050_v25, %s5687_s7 }
0x2670   : > { %v3052_v41 = vpop.permute.xlu0 %3051 }
0x2671   : > { %v3054_v42 = vadd.f32 %v3052_v41, %v6686_v44 }
0x2673   : > { %4896 = vtanh.f32 %v3054_v42  ;;  %v4151_v51 = vmul.f32 -1.442695, %v3054_v42 }
0x2675   : > { %4898 = vpow2.f32 %v4151_v51 }
0x2680   : > { %v4897_v43 = vpop.eup %4896 }
0x2681   : > { %3067 = vrot.lane.b32.xlu1 %v4897_v43, %s5684_s1 }
0x2682   : > { %v4899_v15 = vpop.eup %4898 }
0x2683   : > { %v3058_v22 = vadd.f32 1.0, %v4899_v15 }
0x2685   : > { %4900 = vrcp.f32 %v3058_v22  ;;  %v2334_v22 = vrot.slane %v6890_v3, 1 }
0x2692   : > { %v4901_v54 = vpop.eup %4900 }
0x2693   : > { %v3065_v55 = vmul.f32 %v4901_v54, %v3063_v47 }
0x26f3   : > { %v3068_v45 = vpop.permute.xlu1 %3067 }
0x26f4   : > { %v3070_v50 = vmul.f32 %v4901_v54, %v3068_v45 }
0x26f6   : > { %3072 = vrot.lane.b32.xlu0 %v3070_v50, %s5685_s16 }
0x2768   : > { %v3073_v58 = vpop.permute.xlu0 %3072 }
0x2769   : > { %v3075_v60 = vadd.f32 %v3073_v58, %v3065_v55 }
0x276b   : > { %4902 = vtanh.f32 %v3075_v60  ;;  %v3088_v2 = vmul.f32 %v3075_v60, %v6739_v53 }
0x276d   : > { %v3093_v4 = vadd.f32 %v3091_v1, %v3088_v2 }
0x276f   : > { %v3184_v24 = vrot.slane %v3093_v4, 1  ;;  %v3210_v26 = vmul.f32 %v3093_v4, %v6715_v16 }
0x2771   : > { %v3212_v31 = vrot.slane %v3210_v26, 1  ;;  %v3427_v26 = vld [vmem:[%s7498_s13 + $0x18] sm:$0xff] }
0x2778   : > { %v4903_v57 = vpop.eup %4902 }
0x2779   : > { %3078 = vrot.lane.b32.xlu1 %v4903_v57, %s5685_s16 }
0x27eb   : > { %v3079_v5 = vpop.permute.xlu1 %3078 }
0x27ec   : > { %v3081_v6 = vmul.f32 %v4901_v54, %v3079_v5  ;;  %v2345_v5 = vrot.slane %v6855_v30, 7  ;;  %v3343_v30 = vld [vmem:[#allocation22 + $0x18] sm:$0xff] }
0x27ee   : > { %v6982_v8 = vmul.f32 %v3081_v6, %v6739_v53 }
0x27f0   : > { %v3087_v63 = vadd.f32 %v3085_v7, %v6982_v8 }
0x27f2   : > { %v3095_v9 = vrot.slane %v3087_v63, 2  ;;  %v3204_v21 = vmul.f32 %v3087_v63, %v6715_v16  ;;  %v2336_v16 = vadd.f32 %v2334_v22, %v6686_v44 }
0x27f4   : > { %3096 = vrot.lane.b32.xlu0 %v3095_v9, %s5688_s6  ;;  %v3206_v42 = vrot.slane %v3204_v21, 1  ;;  %v4140_v50 = vmul.f32 -1.442695, %v2336_v16 }
0x2866   : > { %v3097_v10 = vpop.permute.xlu0 %3096 }
0x2867   : > { %4393 = vmatmul.mubr.msk.f32.vlgmr.msra.gmra.mxu0 %vm1398_vm2, %v3097_v10 }
0x2868   : > { %4410 = vmatprep.mubr.msk.f32.mxu0 %vm5683_vm0, %v5682_v0  ;;  %4403 = vmatpush3.msra.mxu0 %v3343_v30 }
0x2869   : > { %4404 = vmatprep.subr.mxu0 %v5682_v0 }
0x2927   : > { %v3166_v11 = vpop.f32.mrf.mxu0 }
0x2928   : > { %v3171_v12 = vrot.slane %v3166_v11, 7 }
0x2929   : > { %v4394_v49 = vpop.f32.mrf.mxu0 }
0x292a   : > { %3172 = vrot.lane.b32.xlu1 %v3171_v12, %s5687_s7 }
0x299c   : > { %v3173_v13 = vpop.permute.xlu1 %3172 }
0x299d   : > { %v3175_v53 = vadd.f32 %v3173_v13, %v6686_v44 }
0x299f   : > { %4904 = vtanh.f32 %v3175_v53  ;;  %v4153_v17 = vmul.f32 -1.442695, %v3175_v53 }
0x29a1   : > { %4906 = vpow2.f32 %v4153_v17 }
0x29ac   : > { %v4905_v14 = vpop.eup %4904 }
0x29ad   : > { %3188 = vrot.lane.b32.xlu0 %v4905_v14, %s5684_s1 }
0x29ae   : > { %v4907_v19 = vpop.eup %4906 }
0x29af   : > { %v3179_v33 = vadd.f32 1.0, %v4907_v19  ;;  %v3342_v19 = vld [vmem:[#allocation22 + $0x10] sm:$0xff] }
0x29b0   : > { %4405 = vmatpush3.msra.mxu0 %v3342_v19 }
0x29b1   : > { %4908 = vrcp.f32 %v3179_v33  ;;  %4406 = vmatprep.subr.mxu0 %v5682_v0 }
0x29be   : > { %v4909_v23 = vpop.eup %4908 }
0x29bf   : > { %v3186_v27 = vmul.f32 %v4909_v23, %v3184_v24  ;;  %v3340_v24 = vld [vmem:[#allocation22] sm:$0xff] }
0x2a1f   : > { %v3189_v28 = vpop.permute.xlu0 %3188 }
0x2a20   : > { %v3191_v32 = vmul.f32 %v4909_v23, %v3189_v28  ;;  %v3341_v28 = vld [vmem:[#allocation22 + $0x8] sm:$0xff] }
0x2a21   : > { %4407 = vmatpush3.msra.mxu0 %v3341_v28 }
0x2a22   : > { %3193 = vrot.lane.b32.xlu1 %v3191_v32, %s5685_s16  ;;  %4408 = vmatprep.subr.mxu0 %v5682_v0 }
0x2a23   : > { %4409 = vmatpush3.msra.mxu0 %v3340_v24 }
0x2a24   : > { %4424 = vmatprep.subr.mxu0 %v5682_v0 }
0x2a94   : > { %v3194_v35 = vpop.permute.xlu1 %3193 }
0x2a95   : > { %v3196_v29 = vadd.f32 %v3194_v35, %v3186_v27  ;;  %v3426_v27 = vld [vmem:[%s7498_s13 + $0x10] sm:$0xff] }
0x2a97   : > { %4910 = vtanh.f32 %v3196_v29  ;;  %v3209_v36 = vmul.f32 %v3196_v29, %v6718_v20 }
0x2a98   : > { %4912 = vtanh.f32 %v2336_v16 }
0x2a99   : > { %v3214_v38 = vadd.f32 %v3212_v31, %v3209_v36  ;;  %4914 = vpow2.f32 %v4140_v50 }
0x2a9b   : > { %v3304_v12 = vrot.slane %v3214_v38, 1 }
0x2aa4   : > { %v4911_v39 = vpop.eup %4910 }
0x2aa5   : > { %3199 = vrot.lane.b32.xlu0 %v4911_v39, %s5685_s16  ;;  %v4913_v45 = vpop.eup %4912 }
0x2aa6   : > { %v4915_v47 = vpop.eup %4914 }
0x2aa7   : > { %v2340_v52 = vadd.f32 1.0, %v4915_v47  ;;  %v3541_v47 = vld [vmem:[#allocation29 + $0x18] sm:$0xff] }
0x2aa9   : > { %4916 = vrcp.f32 %v2340_v52  ;;  %v3540_v52 = vld [vmem:[#allocation29 + $0x10] sm:$0xff] }
0x2ab6   : > { %v4917_v3 = vpop.eup %4916 }
0x2ab7   : > { %v2347_v6 = vmul.f32 %v4917_v3, %v2345_v5 }
0x2b17   : > { %v3200_v25 = vpop.permute.xlu0 %3199 }
0x2b18   : > { %v3202_v37 = vmul.f32 %v4909_v23, %v3200_v25 }
0x2b1a   : > { %v6998_v41 = vmul.f32 %v3202_v37, %v6718_v20 }
0x2b1c   : > { %v3208_v43 = vadd.f32 %v3206_v42, %v6998_v41  ;;  %v4158_v42 = vld [vmem:[#allocation25] ss:$0 sm:$0xff] }
0x2b1e   : > { %v3216_v51 = vrot.slane %v3208_v43, 1 }
0x2b20   : > { %3217 = vrot.lane.b32.xlu1 %v3216_v51, %s5688_s6  ;;  %s5380_s6 = sshll.u32 %s5690_s3, 4  ;;  %s5381_s6 = int_to_ptr.vmem [resolvable:$false] %s5380_s6 }
0x2b21   : > { %p5383_p4 = scmp.lt.s32.totalorder %s3734_s30, %s5381_s6 }
0x2b92   : > { %v3218_v15 = vpop.permute.xlu1 %3217 }
0x2b93   : > { %4400 = vmatmul.mubr.msk.f32.vlgmr.msra.gmra.mxu1 %vm1398_vm2, %v3218_v15 }
0x2b94   : > { %4421 = vmatprep.mubr.msk.f32.mxu1 %vm5683_vm0, %v5682_v0  ;;  %4414 = vmatpush3.msra.mxu1 %v3427_v26 }
0x2b95   : > { %4415 = vmatprep.subr.mxu1 %v5682_v0 }
0x2b96   : > { %4416 = vmatpush3.msra.mxu1 %v3426_v27 }
0x2b97   : > { %4417 = vmatprep.subr.mxu1 %v5682_v0 }
0x2c53   : > { %v3287_v54 = vpop.f32.mrf.mxu1 }
0x2c54   : > { %3292 = vrot.lane.b32.xlu0 %v3287_v54, %s5687_s7  ;;  %s7501_s7 = sld [smem:[#allocation108_spill]] }
0x2c55   : > { %v4401_v20 = vpop.f32.mrf.mxu1 }
0x2c58   : > { %2349 = vrot.lane.b32.xlu0 %v4913_v45, %s5684_s1 }
0x2c5a   : > { %s7502_s17 = smov %s7501_s7  ;;  %s3731_s20 = scalar_lea.hbm %s7501_s7, %s4168_s24 }
0x2cc6   : > { %v3293_v55 = vpop.permute.xlu0 %3292 }
0x2cc7   : > { %v3295_v58 = vadd.f32 %v3293_v55, %v6686_v44  ;;  %v3539_v55 = vld [vmem:[#allocation29 + $0x8] sm:$0xff] }
0x2cc9   : > { %4918 = vtanh.f32 %v3295_v58  ;;  %v4155_v4 = vmul.f32 -1.442695, %v3295_v58  ;;  %v3538_v58 = vld [vmem:[#allocation29] sm:$0xff] }
0x2cca   : > { %v2350_v60 = vpop.permute.xlu0 %2349 }
0x2ccb   : > { %v2352_v1 = vmul.f32 %v4917_v3, %v2350_v60  ;;  %4920 = vpow2.f32 %v4155_v4  ;;  %v3624_v60 = vld [vmem:[%s7499_s0 + $0x10] sm:$0xff] }
0x2ccd   : > { %2354 = vrot.lane.b32.xlu0 %v2352_v1, %s5685_s16 }
0x2cd6   : > { %v4919_v2 = vpop.eup %4918 }
0x2cd7   : > { %3308 = vrot.lane.b32.xlu1 %v4919_v2, %s5684_s1  ;;  %s5382_s1 = scalar_lea.vmem %s5381_s6, 256 }
0x2cd8   : > { %v4921_v57 = vpop.eup %4920  ;;  %p5384_p11 = scmp.lt.s32.totalorder %s5382_s1, %s5376_s4 }
0x2cd9   : > { %v3299_v62 = vadd.f32 1.0, %v4921_v57 }
0x2cda   : > { %p5385_p10 = por %p5384_p11, %p5383_p4 }
0x2cdb   : > { %4922 = vrcp.f32 %v3299_v62  ;;  %v4160_v62 = vld [vmem:[#allocation26] ss:$0 sm:$0xff] }
0x2cdc   : > { %p5386_p12 = pnand %p5385_p10, %p5379_p9 }
0x2ce8   : > { %v4923_v44 = vpop.eup %4922 }
0x2ce9   : > { %v3306_v49 = vmul.f32 %v4923_v44, %v3304_v12 }
0x2d3f   : > { %v2355_v7 = vpop.permute.xlu0 %2354 }
0x2d40   : > { %v2357_v63 = vadd.f32 %v2355_v7, %v2347_v6  ;;  %v4161_v6 = vld [vmem:[#allocation28] ss:$0 sm:$0xff] }
0x2d42   : > { %4924 = vtanh.f32 %v2357_v63 }
0x2d49   : > { %v3309_v9 = vpop.permute.xlu1 %3308 }
0x2d4a   : > { %v3311_v10 = vmul.f32 %v4923_v44, %v3309_v9  ;;  %v3623_v9 = vld [vmem:[%s7499_s0 + $0x8] sm:$0xff] }
0x2d4c   : > { %3313 = vrot.lane.b32.xlu1 %v3311_v10, %s5685_s16  ;;  %v3622_v10 = vld [vmem:[%s7499_s0] sm:$0xff] }
0x2d4f   : > { %v4925_v11 = vpop.eup %4924 }
0x2d50   : > { %2360 = vrot.lane.b32.xlu0 %v4925_v11, %s5685_s16  ;;  %v4162_v11 = vld [vmem:[%s7500_s25] ss:$0 sm:$0xff] }
0x2dbe   : > { %v3314_v13 = vpop.permute.xlu1 %3313 }
0x2dbf   : > { %v3316_v53 = vadd.f32 %v3314_v13, %v3306_v49 }
0x2dc1   : > { %4926 = vtanh.f32 %v3316_v53 }
0x2dc2   : > { %v2361_v14 = vpop.permute.xlu0 %2360 }
0x2dc3   : > { %v2363_v17 = vmul.f32 %v4917_v3, %v2361_v14  ;;  %v3625_v3 = vld [vmem:[%s7499_s0 + $0x18] sm:$0xff] }
0x2dc5   : > { %v2365_v23 = vmul.f32 %v6869_v56, %v2363_v17 }
0x2dc7   : > { %v2379_v32 = vsel %vm2378_vm9, %v6865_v46, %v2365_v23 }
0x2dce   : > { %v4927_v33 = vpop.eup %4926 }
0x2dcf   : > { %3319 = vrot.lane.b32.xlu1 %v4927_v33, %s5685_s16 }
0x2dd3   : > { %3332 = vrot.lane.b32.xlu1 %v2379_v32, %s5686_s8  ;;  %s5689_s8 = smov 48  }
0x2e41   : > { %v3320_v56 = vpop.permute.xlu1 %3319 }
0x2e42   : > { %v3322_v35 = vmul.f32 %v4923_v44, %v3320_v56 }
0x2e44   : > { %v3323_v46 = vmul.f32 %v3322_v35, %v6696_v61 }
0x2e45   : > { %v3333_v25 = vpop.permute.xlu1 %3332 }
0x2e46   : > { %v3324_v29 = vsel %vm2366_vm3, %v3323_v46, %v6998_v41 }
0x2e47   : > { %v3325_v31 = vsel %vm2368_vm4, %v3324_v29, %v6982_v8 }
0x2e48   : > { %v3326_v36 = vsel %vm2370_vm5, %v3325_v31, %v6962_v34 }
0x2e49   : > { %v3327_v38 = vsel %vm2372_vm6, %v3326_v36, %v6942_v48 }
0x2e4a   : > { %v3328_v39 = vsel %vm2374_vm7, %v3327_v38, %v6922_v18  ;;  %v4156_v18 = vld [vmem:[#allocation23] ss:$0 sm:$0xff] }
0x2e4b   : > { %v3329_v61 = vsel %vm2376_vm8, %v3328_v39, %v6902_v40  ;;  %v3425_v40 = vld [vmem:[%s7498_s13 + $0x8] sm:$0xff] }
0x2e4c   : > { %v3330_v21 = vsel %vm2378_vm9, %v3329_v61, %v6872_v59  ;;  %4418 = vmatpush3.msra.mxu1 %v3425_v40  ;;  %v3424_v59 = vld [vmem:[%s7498_s13] sm:$0xff] }
0x2e4d   : > { %3336 = vrot.lane.b32.xlu0 %v3330_v21, %s5689_s8  ;;  %4419 = vmatprep.subr.mxu1 %v5682_v0  ;;  %s1090_s8 = scalar_lea.vmem [#allocation32], %s6541_s5 }
0x2e4e   : > { %4420 = vmatpush3.msra.mxu1 %v3424_v59 }
0x2e4f   : > { %4435 = vmatprep.subr.mxu1 %v5682_v0 }
0x2ebf   : > { %v3337_v8 = vpop.permute.xlu0 %3336 }
0x2ec0   : > { %v3339_v34 = vsel %vm1398_vm2, %v3333_v25, %v3337_v8 }
0x2ec1   : > { %4411 = vmatmul.mubr.msk.f32.vlgmr.msra.gmra.mxu0 %vm1120_vm1, %v3339_v34 }
0x2ec2   : > { %4432 = vmatprep.mubr.msk.f32.mxu0 %vm5683_vm0, %v5682_v0  ;;  %4425 = vmatpush3.msra.mxu0 %v3541_v47 }
0x2ec3   : > { %4426 = vmatprep.subr.mxu0 %v5682_v0 }
0x2ec4   : > { %4427 = vmatpush3.msra.mxu0 %v3540_v52 }
0x2ec5   : > { %4428 = vmatprep.subr.mxu0 %v5682_v0 }
0x2ec6   : > { %4429 = vmatpush3.msra.mxu0 %v3539_v55 }
0x2ec7   : > { %4430 = vmatprep.subr.mxu0 %v5682_v0 }
0x2ec8   : > { %4431 = vmatpush3.msra.mxu0 %v3538_v58 }
0x2f81   : > { %v3420_v48 = vpop.f32.mrf.mxu0 }
0x2f82   : > { %v3421_v37 = vadd.f32 %v4156_v18, %v3420_v48 }
0x2f83   : > { %v4412_v41 = vpop.f32.mrf.mxu0 }
0x2f84   : > { %4422 = vmatmul.mubr.msk.f32.vlgmr.msra.gmra.mxu1 %vm1120_vm1, %v3421_v37  ;;  %3706 = vst.msk [vmem:[%s1083_s14] sm:$0xff] %vm1120_vm1, %v3421_v37 }
0x2f85   : > { %4443 = vmatprep.mubr.msk.f32.mxu1 %vm5683_vm0, %v5682_v0  ;;  %4436 = vmatpush3.msra.mxu1 %v3625_v3 }
0x2f86   : > { %4437 = vmatprep.subr.mxu1 %v5682_v0 }
0x2f87   : > { %4438 = vmatpush3.msra.mxu1 %v3624_v60 }
0x2f88   : > { %4439 = vmatprep.subr.mxu1 %v5682_v0 }
0x2f89   : > { %4440 = vmatpush3.msra.mxu1 %v3623_v9 }
0x2f8a   : > { %4441 = vmatprep.subr.mxu1 %v5682_v0 }
0x2f8b   : > { %4442 = vmatpush3.msra.mxu1 %v3622_v10 }
0x3044   : > { %v3504_v43 = vpop.f32.mrf.mxu1 }
0x3045   : > { %v3505_v51 = vadd.f32 %v4158_v42, %v3504_v43 }
0x3046   : > { %v4423_v15 = vpop.f32.mrf.mxu1 }
0x3047   : > { %v3508_v22 = vsel %vm1120_vm1, %v3505_v51, 0.0 }
0x3048   : > { %3509 = vadd.xlane.f32.xlu1 %v3508_v22 }
0x30d1   : > { %v3510_v16 = vpop.xlane.xlu1 %3509 }
0x30d2   : > { %v3511_v54 = vmul.f32 0.03125, %v3510_v16 }
0x30d4   : > { %v3512_v20 = vsub.f32 %v3505_v51, %v3511_v54 }
0x30d6   : > { %v3513_v45 = vmul.f32 %v3512_v20, %v3512_v20 }
0x30d8   : > { %v3514_v50 = vsel %vm1120_vm1, %v3513_v45, 0.0 }
0x30d9   : > { %3515 = vadd.xlane.f32.xlu0 %v3514_v50 }
0x3162   : > { %v3516_v1 = vpop.xlane.xlu0 %3515 }
0x3163   : > { %v3517_v2 = vmul.f32 0.03125, %v3516_v1 }
0x3165   : > { %v3518_v4 = vadd.f32 1e-05, %v3517_v2 }
0x3167   : > { %4928 = vrsqrt.f32 %v3518_v4 }
0x3174   : > { %v4929_v57 = vpop.eup %4928 }
0x3175   : > { %v3520_v5 = vmul.f32 %v4929_v57, %v3512_v20 }
0x3177   : > { %v3528_v7 = vmul.f32 %v4160_v62, %v3520_v5 }
0x3179   : > { %v3536_v63 = vadd.f32 %v4161_v6, %v3528_v7 }
0x317b   : > { %v3537_v44 = vmax.f32 %v3536_v63, 0.0 }
0x317d   : > { %4433 = vmatmul.mubr.msk.f32.vlgmr.msra.gmra.mxu0 %vm1120_vm1, %v3537_v44 }
0x323d   : > { %v3618_v12 = vpop.f32.mrf.mxu0 }
0x323e   : > { %v3619_v49 = vadd.f32 %v4162_v11, %v3618_v12 }
0x323f   : > { %v4434_v13 = vpop.f32.mrf.mxu0 }
0x3240   : > { %4444 = vmatmul.mubr.msk.f32.vlgmr.msra.gmra.mxu1 %vm1120_vm1, %v3619_v49  ;;  %3707 = vst.msk [vmem:[%s1090_s8] sm:$0xff] %vm1120_vm1, %v3619_v49 }
0x3241   : > { %5389 = shalt.err (!%p5386_p12)
}
0x3242   : > { %s5390_s14 = scalar_lea.hbm %s3731_s20, 128  ;;  %s5394_s25 = scalar_lea.hbm %s7502_s17, 256 }
0x3243   : > { %p5391_p5 = scmp.ne.s32.totalorder %s3731_s20, %s5390_s14  ;;  %p5395_p1 = scmp.lt.s32.totalorder %s3731_s20, %s7502_s17 }
0x3244   : > { %p5396_p8 = scmp.lt.s32.totalorder %s5394_s25, %s5390_s14 }
0x3245   : > { %p5392_p0 = pnand %p5391_p5, %p7503_p3 }
0x3246   : > { %p5397_p6 = por %p5396_p8, %p5395_p1 }
0x3247   : > { %p5393_p2 = pneg %p5392_p0 }
0x3249   : > { %p5398_p13 = pnand %p5397_p6, %p5393_p2 }
0x324b   : > { %5401 = shalt.err (!%p5398_p13)
}
0x324c   : > { %4508 = dma.vmem_to_hbm [thread:$0]  (%p7503_p3), %s3734_s30, 128, %s3731_s20, %s3711_s10  }
0x324d   : > { %s7504_s3 = sld [smem:[#allocation109_spill]]  ;;  %s3746_s1 = sshll.u32 %s1090_s8, 4  ;;  %s3747_s1 = int_to_ptr.vmem [resolvable:$true] %s3746_s1 }
0x324e   : > { %s3716_s18 = scalar_lea.sflag [#allocation33], %s6538_s12  ;;  %s5402_s14 = scalar_lea.vmem %s3747_s1, 128 }
0x324f   : > { %p5403_p7 = scmp.ne.s32.totalorder %s3747_s1, %s5402_s14  ;;  %s5691_s25 = smov [#allocation32]  }
0x3250   : > { %s5406_s29 = sshll.u32 %s5691_s25, 4  ;;  %s5407_s29 = int_to_ptr.vmem [resolvable:$false] %s5406_s29 }
0x3251   : > { %p5404_p9 = pnand %p5403_p7, %p7503_p3  ;;  %s5408_s11 = scalar_lea.vmem %s5407_s29, 256 }
0x3252   : > { %p5409_p11 = scmp.lt.s32.totalorder %s3747_s1, %s5407_s29  ;;  %p5410_p10 = scmp.lt.s32.totalorder %s5408_s11, %s5402_s14 }
0x3253   : > { %s7505_s16 = smov %s7504_s3  ;;  %s3744_s6 = scalar_lea.hbm %s7504_s3, %s4168_s24 }
0x3254   : > { %p5405_p4 = pneg %p5404_p9  ;;  %p5411_p12 = por %p5410_p10, %p5409_p11 }
0x3256   : > { %p5412_p5 = pnand %p5411_p12, %p5405_p4 }
0x3258   : > { %5415 = shalt.err (!%p5412_p5)
}
0x3259   : > { %s5416_s30 = scalar_lea.hbm %s3744_s6, 128  ;;  %s5420_s8 = scalar_lea.hbm %s7505_s16, 256 }
0x325a   : > { %p5417_p0 = scmp.ne.s32.totalorder %s3744_s6, %s5416_s30  ;;  %p5421_p8 = scmp.lt.s32.totalorder %s3744_s6, %s7505_s16 }
0x325b   : > { %p5422_p6 = scmp.lt.s32.totalorder %s5420_s8, %s5416_s30 }
0x325c   : > { %p5418_p2 = pnand %p5417_p0, %p7503_p3 }
0x325d   : > { %p5423_p13 = por %p5422_p6, %p5421_p8 }
0x325e   : > { %p5419_p1 = pneg %p5418_p2 }
0x3260   : > { %p5424_p7 = pnand %p5423_p13, %p5419_p1 }
0x3262   : > { %5427 = shalt.err (!%p5424_p7)
}
0x3263   : > { %4509 = dma.vmem_to_hbm [thread:$0]  (%p7503_p3), %s3747_s1, 128, %s3744_s6, %s3716_s18   ;;  %vm3708_vm10 = vcmask 39936  }
0x3264   : > { %p1103_p9 = scmp.lt.s32.totalorder %s5939_s26, 1  ;;  %s7506_s3 = sld [smem:[#allocation107_spill]] }
0x3265   : > { %s7507_s29 = sld [smem:[#allocation110_spill]] }
0x3266   : > { %s7567_s26 = smov (!%p1103_p9, %s5939_s26), 1 }
0x3267   : > { %s4117_s10 = sshll.u32 %s7567_s26, 3 }
0x326a   : > { %v4164_v0 = vld [vmem:[%s7506_s3] ss:$0 sm:$0xff] }
0x326b   : > { %s1106_s11 = scalar_lea.vmem %s7507_s29, %s4117_s10 }
0x3300   : > { %v3702_v53 = vpop.f32.mrf.mxu1 }
0x3301   : > { %v3703_v14 = vadd.f32 %v4164_v0, %v3702_v53 }
0x3302   : > { %v4445_v17 = vpop.f32.mrf.mxu1 }
0x3303   : > { %3709 = vst.msk [vmem:[%s1106_s11] sm:$0xff] %vm3708_vm10, %v3703_v14 }
0x3304 PF: > { %s7508_s28 = sld [smem:[#allocation74_spill]]  ;;  %p7509_p3 = scmp.ne.s32.totalorder %s7418_s2, 0 }
0x3305   : > { %p7510_p4 = scmp.ge.s32.totalorder %s5660_s21, 2 }
0x3307   : > { %p4575_p11 = pnand %p7510_p4, %p7509_p3 }
0x3309   : > { %p4576_p10 = pneg %p4575_p11 }
0x330a   : > { %s3761_s6 = sand.u32 1, %s7508_s28  }
0x330b   : > { %s3762_s26 = scalar_lea.sflag [#allocation7], %s3761_s6 }
0x330c   : > { %5567 = dma.done.wait (%p4576_p10), %s3762_s26, 128  }
0x330d   : > { %5569 = vsyncadd (%p4576_p10), %s3762_s26, 4294967168  ;;  %s3771_s1 = scalar_lea.sflag [#allocation33], %s3761_s6 }
0x330e   : > { %5571 = dma.done.wait (%p4576_p10), %s3771_s1, 128  }
0x330f   : > { %5573 = vsyncadd (%p4576_p10), %s3771_s1, 4294967168  ;;  %s7511_s21 = sld [smem:[#allocation78_spill]]  ;;  %s7526_s26 = smov %s7561_s23 }
0x3310   : > { %s7512_s1 = sld [smem:[#allocation62_spill]]  ;;  %s7528_s2 = smov %s5592_s9 }
0x3311   : > { %s7513_s20 = sld [smem:[#allocation63_spill]]  ;;  %s7530_s9 = smov %s5596_s27 }
0x3312   : > { %s7514_s5 = sld [smem:[#allocation65_spill]]  ;;  %s7532_s27 = smov %s6192_s22 }
0x3313   : > { %s7515_s28 = sld [smem:[#allocation66_spill]] }
0x3314   : > { %s7516_s10 = sld [smem:[#allocation61_spill]] }
0x3315   : > { %s7517_s6 = sld [smem:[#allocation67_spill]]  ;;  %p62_p12 = scmp.ge.s32.totalorder %s7511_s21, 4  }
0x3316   : > { %s7518_s18 = sld [smem:[#allocation68_spill]] }
0x3317   : > { %s7519_s29 = sld [smem:[#allocation82_spill]] }
0x3318   : > { %s7520_s3 = sld [smem:[#allocation70_spill]] }
0x3319   : > { %s7521_s7 = sld [smem:[#allocation71_spill]] }
0x331a   : > { %s7522_s30 = sld [smem:[#allocation85_spill]] }
0x331b   : > { %s7523_s8 = sld [smem:[#allocation72_spill]] }
0x331c   : > { %s7524_s4 = sld [smem:[#allocation73_spill]] }
0x331d   : > { %s7525_s25 = sld [smem:[#allocation80_spill]] }
0x331e   : > { %s7527_s12 = sld [smem:[#allocation75_spill]] }
0x331f   : > { %s7529_s24 = sld [smem:[#allocation76_spill]] }
0x3320   : > { %s7531_s23 = sld [smem:[#allocation84_spill]]  ;;  %64 = sbr.rel (!%p62_p12) target bundleno = 65 (0x41), region = 286 }
0x3321   : > { %7534 = sst [smem:[#allocation61_spill]] %s7518_s18 }
0x3324   : > { %s7535_s22 = smov %s7527_s12 }
0x3325   :  { %3783 = vsyncpa [#allocation6], 1 }
0x3326   :  { %3785 = vsyncpa [#allocation6 + $0x1], 1 }
0x3327   :  { %3786 = vsyncpa [#allocation9], 1 }
0x3328   :  { %3788 = vsyncpa [#allocation9 + $0x1], 1 }
0x3329   :  { %3789 = vsyncpa [#allocation12], 1 }
0x332a   :  { %3791 = vsyncpa [#allocation12 + $0x1], 1 }
0x332b   :  { %3792 = vsyncpa [#allocation15], 1 }
0x332c   :  { %3794 = vsyncpa [#allocation15 + $0x1], 1 }
0x332d   :  { %3795 = vsyncpa [#allocation18], 1 }
0x332e   :  { %3796 = vsyncpa [#allocation21], 1 }
0x332f   :  { %3797 = vsyncpa [#allocation24], 1 }
0x3330   :  { %3798 = vsyncpa [#allocation27], 1 }
0x3331   :  { %3799 = vsyncpa [#allocation30], 1 }
0x3332   :  { %3800 = vsyncpa [#allocation7], 1 }
0x3333   :  { %3802 = vsyncpa [#allocation7 + $0x1], 1 }
0x3334   :  { %3803 = vsyncpa [#allocation33], 1 }
0x3335   :  { %3805 = vsyncpa [#allocation33 + $0x1], 1 }

</bundles_post_ra>
